<compile_context>
chip_gen: v5e
topology: v5e:2x2
jax: 0.10.0
libtpu: 0.0.40
codegen_flags: <defaults>
</compile_context>

<pallas_src>
import math

import jax
import jax.numpy as jnp
from jax.experimental import pallas as pl
from jax.experimental.pallas import tpu as pltpu

# ---------------- model hyper-parameters (small, consistent with the module) ----
B = 2                               # batch
S = 4                               # number of crops (sequence length)
C = 3                               # image channels
H = W = 16                          # crop spatial size
PATCH = 4                           # synthetic backbone patch size
P = (H // PATCH) * (W // PATCH)     # patches per crop = 16
D = C * PATCH * PATCH               # im2col row length = 48
DP = 128                            # im2col row length padded to full lane width
FEAT = 128                          # num_features (d_model), divisible by nhead=8
NHEAD = 8
DH = FEAT // NHEAD                  # head dim = 16
FFH = FEAT // 2                     # dim_feedforward = 64
NLAYERS = 2
LN_EPS = 1e-5
ATTN_SCALE = 1.0 / math.sqrt(DH)


# ---------------------------- fused Pallas kernel --------------------------------

def _layernorm(x, g, b):
    mu = jnp.mean(x, axis=-1, keepdims=True)
    var = jnp.mean((x - mu) ** 2, axis=-1, keepdims=True)
    return (x - mu) * jax.lax.rsqrt(var + LN_EPS) * g + b


def fused_forward_kernel(patches_ref, cw_ref, cb_ref, pool_ref,
                         wqkv_ref, bqkv_ref, wo_ref, bo_ref,
                         ln1g_ref, ln1b_ref, w1_ref, b1_ref, w2_ref, b2_ref,
                         ln2g_ref, ln2b_ref,
                         pw1_ref, pb1_ref, pw2_ref, pb2_ref,
                         feat_ref, probs_ref):
    # ---- synthetic backbone: one matmul over all S crops of this batch element.
    px = patches_ref[0]                                                   # (S*P, DP)
    y = jnp.dot(px, cw_ref[...], preferred_element_type=jnp.float32) + cb_ref[...]
    y = jnp.maximum(y, 0.0)                                               # conv + ReLU
    # global spatial mean per crop as a (S, S*P) pooling matmul -> (S, F)
    enc = jnp.dot(pool_ref[...], y, preferred_element_type=jnp.float32)

    # ---- 2 post-norm transformer encoder layers (dropout = identity). ----
    x = enc                                                               # (S, F)
    for l in range(NLAYERS):
        qkv = jnp.dot(x, wqkv_ref[l], preferred_element_type=jnp.float32) + bqkv_ref[l]
        q = qkv[:, :FEAT].reshape(S, NHEAD, DH).transpose(1, 0, 2)        # (Hh, S, DH)
        k = qkv[:, FEAT:2 * FEAT].reshape(S, NHEAD, DH).transpose(1, 0, 2)
        v = qkv[:, 2 * FEAT:].reshape(S, NHEAD, DH).transpose(1, 0, 2)

        # one head-batched contraction instead of a per-head loop
        s = jnp.einsum('hqd,hkd->hqk', q, k,
                       preferred_element_type=jnp.float32) * ATTN_SCALE   # (Hh,S,S)
        s = s - jnp.max(s, axis=-1, keepdims=True)
        p = jnp.exp(s)
        p = p / jnp.sum(p, axis=-1, keepdims=True)
        o = jnp.einsum('hqk,hkd->hqd', p, v,
                       preferred_element_type=jnp.float32)                # (Hh,S,DH)
        attn = o.transpose(1, 0, 2).reshape(S, FEAT)                      # (S, F)
        attn = jnp.dot(attn, wo_ref[l], preferred_element_type=jnp.float32) + bo_ref[l]

        x1 = _layernorm(x + attn, ln1g_ref[l], ln1b_ref[l])
        hdn = jnp.dot(x1, w1_ref[l], preferred_element_type=jnp.float32) + b1_ref[l]
        hdn = jnp.maximum(hdn, 0.0)
        ff = jnp.dot(hdn, w2_ref[l], preferred_element_type=jnp.float32) + b2_ref[l]
        x = _layernorm(x1 + ff, ln2g_ref[l], ln2b_ref[l])

    # ---- policy head: fc_weights + softmax over crops + weighted feature mix ----
    hdn = jnp.dot(x, pw1_ref[...], preferred_element_type=jnp.float32) + pb1_ref[...]
    hdn = jnp.maximum(hdn, 0.0)                                           # (S, FFH)
    # final logit as a VPU reduction (no 1-column MXU matmul)
    logit = jnp.sum(hdn * pw2_ref[...], axis=-1, keepdims=True) + pb2_ref[...]  # (S,1)
    m = jnp.max(logit, axis=0, keepdims=True)
    e = jnp.exp(logit - m)
    p = e / jnp.sum(e, axis=0, keepdims=True)                             # (S,1) softmax over S

    feat_ref[0] = jnp.sum(enc * p, axis=0, keepdims=True)                 # (1, F) lane-dense
    probs_ref[0] = p.reshape(1, S)                                        # (1, S)


# ---------------------------- glue (plain JAX, jitted) ----------------------------

def _im2col(x, p):
    n, c, h, w = x.shape
    x = x.reshape(n, c, h // p, p, w // p, p)
    x = x.transpose(0, 2, 4, 1, 3, 5)                                     # (n, h/p, w/p, c, p, p)
    return x.reshape(n, (h // p) * (w // p), c * p * p)                   # (n, P, D)


def _full_spec(arr):
    nd = arr.ndim
    return pl.BlockSpec(arr.shape, lambda i, _nd=nd: (0,) * _nd)


@jax.jit
def rem_crops_encoder_forward(crops, params):
    b, s, c, h, w = crops.shape

    # im2col every crop, group per batch element, pad patch rows to 128 lanes.
    flat = crops.reshape(b * s, c, h, w)
    patches = _im2col(flat, PATCH).reshape(b, s * P, D)
    patches = jnp.pad(patches, ((0, 0), (0, 0), (0, DP - D)))             # (B, S*P, 128)
    conv_w = jnp.pad(params["conv_w"], ((0, DP - D), (0, 0)))             # (128, F)

    # mean-over-patches pooling matrix: (S, S*P), block-diagonal 1/P.
    pool = jnp.kron(jnp.eye(S, dtype=jnp.float32),
                    jnp.ones((1, P), jnp.float32)) / P

    weights = [conv_w, params["conv_b"], pool,
               params["wqkv"], params["bqkv"], params["wo"], params["bo"],
               params["ln1g"], params["ln1b"], params["w1"], params["b1"],
               params["w2"], params["b2"], params["ln2g"], params["ln2b"],
               params["pw1"], params["pb1"], params["pw2"], params["pb2"]]

    feat, probs = pl.pallas_call(
        fused_forward_kernel,
        out_shape=(jax.ShapeDtypeStruct((b, 1, FEAT), jnp.float32),
                   jax.ShapeDtypeStruct((b, 1, S), jnp.float32)),
        grid=(b,),
        in_specs=[pl.BlockSpec((1, S * P, DP), lambda i: (i, 0, 0))]
                 + [_full_spec(wt) for wt in weights],
        out_specs=(pl.BlockSpec((1, 1, FEAT), lambda i: (i, 0, 0)),
                   pl.BlockSpec((1, 1, S), lambda i: (i, 0, 0))),
        compiler_params=pltpu.CompilerParams(dimension_semantics=("parallel",)),
    )(patches, *weights)

    features = feat[:, 0, :]                                              # (B, F)
    crops_probs = probs[:, 0, :]                                          # (B, S)
    selected_crops = jnp.argmax(crops_probs, axis=1)                      # (B,)
    return features, crops_probs, selected_crops


def init_params(key):
    sc = 0.05
    ks = iter(jax.random.split(key, 24))
    nrm = lambda shape: sc * jax.random.normal(next(ks), shape, dtype=jnp.float32)
    return {
        "conv_w": nrm((D, FEAT)),
        "conv_b": nrm((1, FEAT)),
        # transformer layers stacked along a leading NLAYERS axis
        "wqkv": nrm((NLAYERS, FEAT, 3 * FEAT)),
        "bqkv": nrm((NLAYERS, 1, 3 * FEAT)),
        "wo":   nrm((NLAYERS, FEAT, FEAT)),
        "bo":   nrm((NLAYERS, 1, FEAT)),
        "ln1g": jnp.ones((NLAYERS, 1, FEAT), jnp.float32),
        "ln1b": jnp.zeros((NLAYERS, 1, FEAT), jnp.float32),
        "w1":   nrm((NLAYERS, FEAT, FFH)),
        "b1":   nrm((NLAYERS, 1, FFH)),
        "w2":   nrm((NLAYERS, FFH, FEAT)),
        "b2":   nrm((NLAYERS, 1, FEAT)),
        "ln2g": jnp.ones((NLAYERS, 1, FEAT), jnp.float32),
        "ln2b": jnp.zeros((NLAYERS, 1, FEAT), jnp.float32),
        # policy head (fc_weights); pw2 stored as a row for the VPU reduction
        "pw1":  nrm((FEAT, FFH)),
        "pb1":  nrm((1, FFH)),
        "pw2":  nrm((1, FFH)),
        "pb2":  nrm((1, 1)),
    }


if __name__ == "__main__":
    key = jax.random.PRNGKey(0)
    k_in, k_par = jax.random.split(key)
    crops = jax.random.normal(k_in, (B, S, C, H, W), dtype=jnp.float32)
    params = init_params(k_par)

    features, crops_probs, selected_crops = rem_crops_encoder_forward(crops, params)
    jax.block_until_ready((features, crops_probs, selected_crops))

    assert features.shape == (B, FEAT)
    assert crops_probs.shape == (B, S)
    assert selected_crops.shape == (B,)
    assert bool(jnp.all(jnp.isfinite(features)))
    assert bool(jnp.allclose(jnp.sum(crops_probs, axis=1), 1.0, atol=1e-5))
    print("KERNEL_OK")
</pallas_src>

<mosaic_0001>
module attributes {stable_mosaic.version = 11 : i64} {
  func.func @fused_forward_kernel(%arg0: i32, %arg1: memref<1x64x128xf32, #tpu.memory_space<vmem>>, %arg2: memref<128x128xf32, #tpu.memory_space<vmem>>, %arg3: memref<1x128xf32, #tpu.memory_space<vmem>>, %arg4: memref<4x64xf32, #tpu.memory_space<vmem>>, %arg5: memref<2x128x384xf32, #tpu.memory_space<vmem>>, %arg6: memref<2x1x384xf32, #tpu.memory_space<vmem>>, %arg7: memref<2x128x128xf32, #tpu.memory_space<vmem>>, %arg8: memref<2x1x128xf32, #tpu.memory_space<vmem>>, %arg9: memref<2x1x128xf32, #tpu.memory_space<vmem>>, %arg10: memref<2x1x128xf32, #tpu.memory_space<vmem>>, %arg11: memref<2x128x64xf32, #tpu.memory_space<vmem>>, %arg12: memref<2x1x64xf32, #tpu.memory_space<vmem>>, %arg13: memref<2x64x128xf32, #tpu.memory_space<vmem>>, %arg14: memref<2x1x128xf32, #tpu.memory_space<vmem>>, %arg15: memref<2x1x128xf32, #tpu.memory_space<vmem>>, %arg16: memref<2x1x128xf32, #tpu.memory_space<vmem>>, %arg17: memref<128x64xf32, #tpu.memory_space<vmem>>, %arg18: memref<1x64xf32, #tpu.memory_space<vmem>>, %arg19: memref<1x64xf32, #tpu.memory_space<vmem>>, %arg20: memref<1x1xf32, #tpu.memory_space<vmem>>, %arg21: memref<1x1x128xf32, #tpu.memory_space<vmem>>, %arg22: memref<1x1x4xf32, #tpu.memory_space<vmem>>) attributes {dimension_semantics = [#tpu.dimension_semantics<parallel>], iteration_bounds = array<i64: 2>, scalar_prefetch = 0 : i64, scratch_operands = 0 : i64, tpu.core_type = #tpu.core_type<tc>, window_params = [{transform_indices = @transform_0, window_bounds = array<i64: 1, 64, 128>}, {pipeline_mode = #tpu.pipeline_mode<synchronous>, transform_indices = @transform_1, window_bounds = array<i64: 128, 128>}, {pipeline_mode = #tpu.pipeline_mode<synchronous>, transform_indices = @transform_2, window_bounds = array<i64: 1, 128>}, {pipeline_mode = #tpu.pipeline_mode<synchronous>, transform_indices = @transform_3, window_bounds = array<i64: 4, 64>}, {pipeline_mode = #tpu.pipeline_mode<synchronous>, transform_indices = @transform_4, window_bounds = array<i64: 2, 128, 384>}, {pipeline_mode = #tpu.pipeline_mode<synchronous>, transform_indices = @transform_5, window_bounds = array<i64: 2, 1, 384>}, {pipeline_mode = #tpu.pipeline_mode<synchronous>, transform_indices = @transform_6, window_bounds = array<i64: 2, 128, 128>}, {pipeline_mode = #tpu.pipeline_mode<synchronous>, transform_indices = @transform_7, window_bounds = array<i64: 2, 1, 128>}, {pipeline_mode = #tpu.pipeline_mode<synchronous>, transform_indices = @transform_8, window_bounds = array<i64: 2, 1, 128>}, {pipeline_mode = #tpu.pipeline_mode<synchronous>, transform_indices = @transform_9, window_bounds = array<i64: 2, 1, 128>}, {pipeline_mode = #tpu.pipeline_mode<synchronous>, transform_indices = @transform_10, window_bounds = array<i64: 2, 128, 64>}, {pipeline_mode = #tpu.pipeline_mode<synchronous>, transform_indices = @transform_11, window_bounds = array<i64: 2, 1, 64>}, {pipeline_mode = #tpu.pipeline_mode<synchronous>, transform_indices = @transform_12, window_bounds = array<i64: 2, 64, 128>}, {pipeline_mode = #tpu.pipeline_mode<synchronous>, transform_indices = @transform_13, window_bounds = array<i64: 2, 1, 128>}, {pipeline_mode = #tpu.pipeline_mode<synchronous>, transform_indices = @transform_14, window_bounds = array<i64: 2, 1, 128>}, {pipeline_mode = #tpu.pipeline_mode<synchronous>, transform_indices = @transform_15, window_bounds = array<i64: 2, 1, 128>}, {pipeline_mode = #tpu.pipeline_mode<synchronous>, transform_indices = @transform_16, window_bounds = array<i64: 128, 64>}, {pipeline_mode = #tpu.pipeline_mode<synchronous>, transform_indices = @transform_17, window_bounds = array<i64: 1, 64>}, {pipeline_mode = #tpu.pipeline_mode<synchronous>, transform_indices = @transform_18, window_bounds = array<i64: 1, 64>}, {pipeline_mode = #tpu.pipeline_mode<synchronous>, transform_indices = @transform_19, window_bounds = array<i64: 1, 1>}, {transform_indices = @transform_20, window_bounds = array<i64: 1, 1, 128>}, {transform_indices = @transform_21, window_bounds = array<i64: 1, 1, 4>}]} {
    %c0 = arith.constant 0 : index
    %c0_0 = arith.constant 0 : index
    %c0_1 = arith.constant 0 : index
    %0 = vector.load %arg1[%c0, %c0_0, %c0_1] : memref<1x64x128xf32, #tpu.memory_space<vmem>>, vector<1x64x128xf32>
    %1 = vector.shape_cast %0 : vector<1x64x128xf32> to vector<64x128xf32>
    %c0_2 = arith.constant 0 : index
    %c0_3 = arith.constant 0 : index
    %2 = vector.load %arg2[%c0_2, %c0_3] : memref<128x128xf32, #tpu.memory_space<vmem>>, vector<128x128xf32>
    %cst = arith.constant dense<0.000000e+00> : vector<64x128xf32>
    %3 = tpu.matmul %1, %2, %cst {dimension_numbers = #tpu.dot_dimension_numbers<[1], [0], [0], [1], [0, 0, 1, 1], [], []>} : vector<64x128xf32>, vector<128x128xf32>, vector<64x128xf32> -> vector<64x128xf32>
    %c0_4 = arith.constant 0 : index
    %c0_5 = arith.constant 0 : index
    %4 = vector.load %arg3[%c0_4, %c0_5] : memref<1x128xf32, #tpu.memory_space<vmem>>, vector<1x128xf32>
    %5 = vector.broadcast %4 : vector<1x128xf32> to vector<64x128xf32>
    %6 = arith.addf %3, %5 : vector<64x128xf32>
    %cst_6 = arith.constant 0.000000e+00 : f32
    %7 = vector.broadcast %cst_6 : f32 to vector<64x128xf32>
    %8 = arith.maximumf %6, %7 : vector<64x128xf32>
    %c0_7 = arith.constant 0 : index
    %c0_8 = arith.constant 0 : index
    %9 = vector.load %arg4[%c0_7, %c0_8] : memref<4x64xf32, #tpu.memory_space<vmem>>, vector<4x64xf32>
    %cst_9 = arith.constant dense<0.000000e+00> : vector<4x128xf32>
    %10 = tpu.matmul %9, %8, %cst_9 {dimension_numbers = #tpu.dot_dimension_numbers<[1], [0], [0], [1], [0, 0, 1, 1], [], []>} : vector<4x64xf32>, vector<64x128xf32>, vector<4x128xf32> -> vector<4x128xf32>
    %c0_10 = arith.constant 0 : index
    %c0_11 = arith.constant 0 : index
    %c0_12 = arith.constant 0 : index
    %11 = vector.load %arg5[%c0_10, %c0_11, %c0_12] : memref<2x128x384xf32, #tpu.memory_space<vmem>>, vector<1x128x384xf32>
    %12 = vector.shape_cast %11 : vector<1x128x384xf32> to vector<128x384xf32>
    %cst_13 = arith.constant dense<0.000000e+00> : vector<4x384xf32>
    %13 = tpu.matmul %10, %12, %cst_13 {dimension_numbers = #tpu.dot_dimension_numbers<[1], [0], [0], [1], [0, 0, 1, 1], [], []>} : vector<4x128xf32>, vector<128x384xf32>, vector<4x384xf32> -> vector<4x384xf32>
    %c0_14 = arith.constant 0 : index
    %c0_15 = arith.constant 0 : index
    %c0_16 = arith.constant 0 : index
    %14 = vector.load %arg6[%c0_14, %c0_15, %c0_16] : memref<2x1x384xf32, #tpu.memory_space<vmem>>, vector<1x1x384xf32>
    %15 = vector.shape_cast %14 : vector<1x1x384xf32> to vector<1x384xf32>
    %16 = vector.broadcast %15 : vector<1x384xf32> to vector<4x384xf32>
    %17 = arith.addf %13, %16 : vector<4x384xf32>
    %18 = vector.extract_strided_slice %17 {offsets = [0, 0], sizes = [4, 128], strides = [1, 1]} : vector<4x384xf32> to vector<4x128xf32>
    %19 = vector.shape_cast %18 : vector<4x128xf32> to vector<4x8x16xf32>
    %20 = tpu.transpose %19, [1, 0, 2] : vector<4x8x16xf32> -> vector<8x4x16xf32>
    %21 = vector.extract_strided_slice %17 {offsets = [0, 128], sizes = [4, 128], strides = [1, 1]} : vector<4x384xf32> to vector<4x128xf32>
    %22 = vector.shape_cast %21 : vector<4x128xf32> to vector<4x8x16xf32>
    %23 = tpu.transpose %22, [1, 0, 2] : vector<4x8x16xf32> -> vector<8x4x16xf32>
    %24 = vector.extract_strided_slice %17 {offsets = [0, 256], sizes = [4, 128], strides = [1, 1]} : vector<4x384xf32> to vector<4x128xf32>
    %25 = vector.shape_cast %24 : vector<4x128xf32> to vector<4x8x16xf32>
    %26 = tpu.transpose %25, [1, 0, 2] : vector<4x8x16xf32> -> vector<8x4x16xf32>
    "tpu.trace_start"() <{level = 10 : i32, message = "hqd,hkd->hqk"}> : () -> ()
    %cst_17 = arith.constant dense<0.000000e+00> : vector<8x4x4xf32>
    %27 = tpu.matmul %20, %23, %cst_17 {dimension_numbers = #tpu.dot_dimension_numbers<[2], [2], [1], [1], [0, 0, 0, 1, 1, 1], [0], [0]>} : vector<8x4x16xf32>, vector<8x4x16xf32>, vector<8x4x4xf32> -> vector<8x4x4xf32>
    "tpu.trace_stop"() : () -> ()
    %cst_18 = arith.constant 2.500000e-01 : f32
    %28 = vector.broadcast %cst_18 : f32 to vector<8x4x4xf32>
    %29 = arith.mulf %27, %28 : vector<8x4x4xf32>
    %cst_19 = arith.constant dense<0xFF800000> : vector<8x4xf32>
    %30 = vector.multi_reduction <maximumf>, %29, %cst_19 [2] : vector<8x4x4xf32> to vector<8x4xf32>
    %31 = vector.shape_cast %30 : vector<8x4xf32> to vector<8x4x1xf32>
    %32 = vector.broadcast %31 : vector<8x4x1xf32> to vector<8x4x4xf32>
    %33 = arith.subf %29, %32 : vector<8x4x4xf32>
    %34 = math.exp %33 : vector<8x4x4xf32>
    %cst_20 = arith.constant dense<0.000000e+00> : vector<8x4xf32>
    %35 = vector.multi_reduction <add>, %34, %cst_20 [2] : vector<8x4x4xf32> to vector<8x4xf32>
    %36 = vector.shape_cast %35 : vector<8x4xf32> to vector<8x4x1xf32>
    %37 = vector.broadcast %36 : vector<8x4x1xf32> to vector<8x4x4xf32>
    %38 = arith.divf %34, %37 : vector<8x4x4xf32>
    "tpu.trace_start"() <{level = 10 : i32, message = "hqk,hkd->hqd"}> : () -> ()
    %cst_21 = arith.constant dense<0.000000e+00> : vector<8x4x16xf32>
    %39 = tpu.matmul %38, %26, %cst_21 {dimension_numbers = #tpu.dot_dimension_numbers<[2], [1], [1], [2], [0, 0, 0, 1, 1, 2], [0], [0]>} : vector<8x4x4xf32>, vector<8x4x16xf32>, vector<8x4x16xf32> -> vector<8x4x16xf32>
    "tpu.trace_stop"() : () -> ()
    %40 = tpu.transpose %39, [1, 0, 2] : vector<8x4x16xf32> -> vector<4x8x16xf32>
    %41 = vector.shape_cast %40 : vector<4x8x16xf32> to vector<4x128xf32>
    %c0_22 = arith.constant 0 : index
    %c0_23 = arith.constant 0 : index
    %c0_24 = arith.constant 0 : index
    %42 = vector.load %arg7[%c0_22, %c0_23, %c0_24] : memref<2x128x128xf32, #tpu.memory_space<vmem>>, vector<1x128x128xf32>
    %43 = vector.shape_cast %42 : vector<1x128x128xf32> to vector<128x128xf32>
    %cst_25 = arith.constant dense<0.000000e+00> : vector<4x128xf32>
    %44 = tpu.matmul %41, %43, %cst_25 {dimension_numbers = #tpu.dot_dimension_numbers<[1], [0], [0], [1], [0, 0, 1, 1], [], []>} : vector<4x128xf32>, vector<128x128xf32>, vector<4x128xf32> -> vector<4x128xf32>
    %c0_26 = arith.constant 0 : index
    %c0_27 = arith.constant 0 : index
    %c0_28 = arith.constant 0 : index
    %45 = vector.load %arg8[%c0_26, %c0_27, %c0_28] : memref<2x1x128xf32, #tpu.memory_space<vmem>>, vector<1x1x128xf32>
    %46 = vector.shape_cast %45 : vector<1x1x128xf32> to vector<1x128xf32>
    %47 = vector.broadcast %46 : vector<1x128xf32> to vector<4x128xf32>
    %48 = arith.addf %44, %47 : vector<4x128xf32>
    %49 = arith.addf %10, %48 : vector<4x128xf32>
    %c0_29 = arith.constant 0 : index
    %c0_30 = arith.constant 0 : index
    %c0_31 = arith.constant 0 : index
    %50 = vector.load %arg9[%c0_29, %c0_30, %c0_31] : memref<2x1x128xf32, #tpu.memory_space<vmem>>, vector<1x1x128xf32>
    %51 = vector.shape_cast %50 : vector<1x1x128xf32> to vector<1x128xf32>
    %c0_32 = arith.constant 0 : index
    %c0_33 = arith.constant 0 : index
    %c0_34 = arith.constant 0 : index
    %52 = vector.load %arg10[%c0_32, %c0_33, %c0_34] : memref<2x1x128xf32, #tpu.memory_space<vmem>>, vector<1x1x128xf32>
    %53 = vector.shape_cast %52 : vector<1x1x128xf32> to vector<1x128xf32>
    %cst_35 = arith.constant dense<0.000000e+00> : vector<4xf32>
    %54 = vector.multi_reduction <add>, %49, %cst_35 [1] : vector<4x128xf32> to vector<4xf32>
    %55 = vector.shape_cast %54 : vector<4xf32> to vector<4x1xf32>
    %cst_36 = arith.constant 1.280000e+02 : f32
    %56 = vector.broadcast %cst_36 : f32 to vector<4x1xf32>
    %57 = arith.divf %55, %56 : vector<4x1xf32>
    %58 = vector.broadcast %57 : vector<4x1xf32> to vector<4x128xf32>
    %59 = arith.subf %49, %58 : vector<4x128xf32>
    %60 = arith.mulf %59, %59 : vector<4x128xf32>
    %cst_37 = arith.constant dense<0.000000e+00> : vector<4xf32>
    %61 = vector.multi_reduction <add>, %60, %cst_37 [1] : vector<4x128xf32> to vector<4xf32>
    %62 = vector.shape_cast %61 : vector<4xf32> to vector<4x1xf32>
    %cst_38 = arith.constant 1.280000e+02 : f32
    %63 = vector.broadcast %cst_38 : f32 to vector<4x1xf32>
    %64 = arith.divf %62, %63 : vector<4x1xf32>
    %65 = vector.broadcast %57 : vector<4x1xf32> to vector<4x128xf32>
    %66 = arith.subf %49, %65 : vector<4x128xf32>
    %cst_39 = arith.constant 9.99999974E-6 : f32
    %67 = vector.broadcast %cst_39 : f32 to vector<4x1xf32>
    %68 = arith.addf %64, %67 : vector<4x1xf32>
    %69 = math.rsqrt %68 : vector<4x1xf32>
    %70 = vector.broadcast %69 : vector<4x1xf32> to vector<4x128xf32>
    %71 = arith.mulf %66, %70 : vector<4x128xf32>
    %72 = vector.broadcast %51 : vector<1x128xf32> to vector<4x128xf32>
    %73 = arith.mulf %71, %72 : vector<4x128xf32>
    %74 = vector.broadcast %53 : vector<1x128xf32> to vector<4x128xf32>
    %75 = arith.addf %73, %74 : vector<4x128xf32>
    %c0_40 = arith.constant 0 : index
    %c0_41 = arith.constant 0 : index
    %c0_42 = arith.constant 0 : index
    %76 = vector.load %arg11[%c0_40, %c0_41, %c0_42] : memref<2x128x64xf32, #tpu.memory_space<vmem>>, vector<1x128x64xf32>
    %77 = vector.shape_cast %76 : vector<1x128x64xf32> to vector<128x64xf32>
    %cst_43 = arith.constant dense<0.000000e+00> : vector<4x64xf32>
    %78 = tpu.matmul %75, %77, %cst_43 {dimension_numbers = #tpu.dot_dimension_numbers<[1], [0], [0], [1], [0, 0, 1, 1], [], []>} : vector<4x128xf32>, vector<128x64xf32>, vector<4x64xf32> -> vector<4x64xf32>
    %c0_44 = arith.constant 0 : index
    %c0_45 = arith.constant 0 : index
    %c0_46 = arith.constant 0 : index
    %79 = vector.load %arg12[%c0_44, %c0_45, %c0_46] : memref<2x1x64xf32, #tpu.memory_space<vmem>>, vector<1x1x64xf32>
    %80 = vector.shape_cast %79 : vector<1x1x64xf32> to vector<1x64xf32>
    %81 = vector.broadcast %80 : vector<1x64xf32> to vector<4x64xf32>
    %82 = arith.addf %78, %81 : vector<4x64xf32>
    %cst_47 = arith.constant 0.000000e+00 : f32
    %83 = vector.broadcast %cst_47 : f32 to vector<4x64xf32>
    %84 = arith.maximumf %82, %83 : vector<4x64xf32>
    %c0_48 = arith.constant 0 : index
    %c0_49 = arith.constant 0 : index
    %c0_50 = arith.constant 0 : index
    %85 = vector.load %arg13[%c0_48, %c0_49, %c0_50] : memref<2x64x128xf32, #tpu.memory_space<vmem>>, vector<1x64x128xf32>
    %86 = vector.shape_cast %85 : vector<1x64x128xf32> to vector<64x128xf32>
    %cst_51 = arith.constant dense<0.000000e+00> : vector<4x128xf32>
    %87 = tpu.matmul %84, %86, %cst_51 {dimension_numbers = #tpu.dot_dimension_numbers<[1], [0], [0], [1], [0, 0, 1, 1], [], []>} : vector<4x64xf32>, vector<64x128xf32>, vector<4x128xf32> -> vector<4x128xf32>
    %c0_52 = arith.constant 0 : index
    %c0_53 = arith.constant 0 : index
    %c0_54 = arith.constant 0 : index
    %88 = vector.load %arg14[%c0_52, %c0_53, %c0_54] : memref<2x1x128xf32, #tpu.memory_space<vmem>>, vector<1x1x128xf32>
    %89 = vector.shape_cast %88 : vector<1x1x128xf32> to vector<1x128xf32>
    %90 = vector.broadcast %89 : vector<1x128xf32> to vector<4x128xf32>
    %91 = arith.addf %87, %90 : vector<4x128xf32>
    %92 = arith.addf %75, %91 : vector<4x128xf32>
    %c0_55 = arith.constant 0 : index
    %c0_56 = arith.constant 0 : index
    %c0_57 = arith.constant 0 : index
    %93 = vector.load %arg15[%c0_55, %c0_56, %c0_57] : memref<2x1x128xf32, #tpu.memory_space<vmem>>, vector<1x1x128xf32>
    %94 = vector.shape_cast %93 : vector<1x1x128xf32> to vector<1x128xf32>
    %c0_58 = arith.constant 0 : index
    %c0_59 = arith.constant 0 : index
    %c0_60 = arith.constant 0 : index
    %95 = vector.load %arg16[%c0_58, %c0_59, %c0_60] : memref<2x1x128xf32, #tpu.memory_space<vmem>>, vector<1x1x128xf32>
    %96 = vector.shape_cast %95 : vector<1x1x128xf32> to vector<1x128xf32>
    %cst_61 = arith.constant dense<0.000000e+00> : vector<4xf32>
    %97 = vector.multi_reduction <add>, %92, %cst_61 [1] : vector<4x128xf32> to vector<4xf32>
    %98 = vector.shape_cast %97 : vector<4xf32> to vector<4x1xf32>
    %cst_62 = arith.constant 1.280000e+02 : f32
    %99 = vector.broadcast %cst_62 : f32 to vector<4x1xf32>
    %100 = arith.divf %98, %99 : vector<4x1xf32>
    %101 = vector.broadcast %100 : vector<4x1xf32> to vector<4x128xf32>
    %102 = arith.subf %92, %101 : vector<4x128xf32>
    %103 = arith.mulf %102, %102 : vector<4x128xf32>
    %cst_63 = arith.constant dense<0.000000e+00> : vector<4xf32>
    %104 = vector.multi_reduction <add>, %103, %cst_63 [1] : vector<4x128xf32> to vector<4xf32>
    %105 = vector.shape_cast %104 : vector<4xf32> to vector<4x1xf32>
    %cst_64 = arith.constant 1.280000e+02 : f32
    %106 = vector.broadcast %cst_64 : f32 to vector<4x1xf32>
    %107 = arith.divf %105, %106 : vector<4x1xf32>
    %108 = vector.broadcast %100 : vector<4x1xf32> to vector<4x128xf32>
    %109 = arith.subf %92, %108 : vector<4x128xf32>
    %cst_65 = arith.constant 9.99999974E-6 : f32
    %110 = vector.broadcast %cst_65 : f32 to vector<4x1xf32>
    %111 = arith.addf %107, %110 : vector<4x1xf32>
    %112 = math.rsqrt %111 : vector<4x1xf32>
    %113 = vector.broadcast %112 : vector<4x1xf32> to vector<4x128xf32>
    %114 = arith.mulf %109, %113 : vector<4x128xf32>
    %115 = vector.broadcast %94 : vector<1x128xf32> to vector<4x128xf32>
    %116 = arith.mulf %114, %115 : vector<4x128xf32>
    %117 = vector.broadcast %96 : vector<1x128xf32> to vector<4x128xf32>
    %118 = arith.addf %116, %117 : vector<4x128xf32>
    %c1 = arith.constant 1 : index
    %c0_66 = arith.constant 0 : index
    %c0_67 = arith.constant 0 : index
    %119 = vector.load %arg5[%c1, %c0_66, %c0_67] : memref<2x128x384xf32, #tpu.memory_space<vmem>>, vector<1x128x384xf32>
    %120 = vector.shape_cast %119 : vector<1x128x384xf32> to vector<128x384xf32>
    %cst_68 = arith.constant dense<0.000000e+00> : vector<4x384xf32>
    %121 = tpu.matmul %118, %120, %cst_68 {dimension_numbers = #tpu.dot_dimension_numbers<[1], [0], [0], [1], [0, 0, 1, 1], [], []>} : vector<4x128xf32>, vector<128x384xf32>, vector<4x384xf32> -> vector<4x384xf32>
    %c1_69 = arith.constant 1 : index
    %c0_70 = arith.constant 0 : index
    %c0_71 = arith.constant 0 : index
    %122 = vector.load %arg6[%c1_69, %c0_70, %c0_71] : memref<2x1x384xf32, #tpu.memory_space<vmem>>, vector<1x1x384xf32>
    %123 = vector.shape_cast %122 : vector<1x1x384xf32> to vector<1x384xf32>
    %124 = vector.broadcast %123 : vector<1x384xf32> to vector<4x384xf32>
    %125 = arith.addf %121, %124 : vector<4x384xf32>
    %126 = vector.extract_strided_slice %125 {offsets = [0, 0], sizes = [4, 128], strides = [1, 1]} : vector<4x384xf32> to vector<4x128xf32>
    %127 = vector.shape_cast %126 : vector<4x128xf32> to vector<4x8x16xf32>
    %128 = tpu.transpose %127, [1, 0, 2] : vector<4x8x16xf32> -> vector<8x4x16xf32>
    %129 = vector.extract_strided_slice %125 {offsets = [0, 128], sizes = [4, 128], strides = [1, 1]} : vector<4x384xf32> to vector<4x128xf32>
    %130 = vector.shape_cast %129 : vector<4x128xf32> to vector<4x8x16xf32>
    %131 = tpu.transpose %130, [1, 0, 2] : vector<4x8x16xf32> -> vector<8x4x16xf32>
    %132 = vector.extract_strided_slice %125 {offsets = [0, 256], sizes = [4, 128], strides = [1, 1]} : vector<4x384xf32> to vector<4x128xf32>
    %133 = vector.shape_cast %132 : vector<4x128xf32> to vector<4x8x16xf32>
    %134 = tpu.transpose %133, [1, 0, 2] : vector<4x8x16xf32> -> vector<8x4x16xf32>
    "tpu.trace_start"() <{level = 10 : i32, message = "hqd,hkd->hqk"}> : () -> ()
    %cst_72 = arith.constant dense<0.000000e+00> : vector<8x4x4xf32>
    %135 = tpu.matmul %128, %131, %cst_72 {dimension_numbers = #tpu.dot_dimension_numbers<[2], [2], [1], [1], [0, 0, 0, 1, 1, 1], [0], [0]>} : vector<8x4x16xf32>, vector<8x4x16xf32>, vector<8x4x4xf32> -> vector<8x4x4xf32>
    "tpu.trace_stop"() : () -> ()
    %cst_73 = arith.constant 2.500000e-01 : f32
    %136 = vector.broadcast %cst_73 : f32 to vector<8x4x4xf32>
    %137 = arith.mulf %135, %136 : vector<8x4x4xf32>
    %cst_74 = arith.constant dense<0xFF800000> : vector<8x4xf32>
    %138 = vector.multi_reduction <maximumf>, %137, %cst_74 [2] : vector<8x4x4xf32> to vector<8x4xf32>
    %139 = vector.shape_cast %138 : vector<8x4xf32> to vector<8x4x1xf32>
    %140 = vector.broadcast %139 : vector<8x4x1xf32> to vector<8x4x4xf32>
    %141 = arith.subf %137, %140 : vector<8x4x4xf32>
    %142 = math.exp %141 : vector<8x4x4xf32>
    %cst_75 = arith.constant dense<0.000000e+00> : vector<8x4xf32>
    %143 = vector.multi_reduction <add>, %142, %cst_75 [2] : vector<8x4x4xf32> to vector<8x4xf32>
    %144 = vector.shape_cast %143 : vector<8x4xf32> to vector<8x4x1xf32>
    %145 = vector.broadcast %144 : vector<8x4x1xf32> to vector<8x4x4xf32>
    %146 = arith.divf %142, %145 : vector<8x4x4xf32>
    "tpu.trace_start"() <{level = 10 : i32, message = "hqk,hkd->hqd"}> : () -> ()
    %cst_76 = arith.constant dense<0.000000e+00> : vector<8x4x16xf32>
    %147 = tpu.matmul %146, %134, %cst_76 {dimension_numbers = #tpu.dot_dimension_numbers<[2], [1], [1], [2], [0, 0, 0, 1, 1, 2], [0], [0]>} : vector<8x4x4xf32>, vector<8x4x16xf32>, vector<8x4x16xf32> -> vector<8x4x16xf32>
    "tpu.trace_stop"() : () -> ()
    %148 = tpu.transpose %147, [1, 0, 2] : vector<8x4x16xf32> -> vector<4x8x16xf32>
    %149 = vector.shape_cast %148 : vector<4x8x16xf32> to vector<4x128xf32>
    %c1_77 = arith.constant 1 : index
    %c0_78 = arith.constant 0 : index
    %c0_79 = arith.constant 0 : index
    %150 = vector.load %arg7[%c1_77, %c0_78, %c0_79] : memref<2x128x128xf32, #tpu.memory_space<vmem>>, vector<1x128x128xf32>
    %151 = vector.shape_cast %150 : vector<1x128x128xf32> to vector<128x128xf32>
    %cst_80 = arith.constant dense<0.000000e+00> : vector<4x128xf32>
    %152 = tpu.matmul %149, %151, %cst_80 {dimension_numbers = #tpu.dot_dimension_numbers<[1], [0], [0], [1], [0, 0, 1, 1], [], []>} : vector<4x128xf32>, vector<128x128xf32>, vector<4x128xf32> -> vector<4x128xf32>
    %c1_81 = arith.constant 1 : index
    %c0_82 = arith.constant 0 : index
    %c0_83 = arith.constant 0 : index
    %153 = vector.load %arg8[%c1_81, %c0_82, %c0_83] : memref<2x1x128xf32, #tpu.memory_space<vmem>>, vector<1x1x128xf32>
    %154 = vector.shape_cast %153 : vector<1x1x128xf32> to vector<1x128xf32>
    %155 = vector.broadcast %154 : vector<1x128xf32> to vector<4x128xf32>
    %156 = arith.addf %152, %155 : vector<4x128xf32>
    %157 = arith.addf %118, %156 : vector<4x128xf32>
    %c1_84 = arith.constant 1 : index
    %c0_85 = arith.constant 0 : index
    %c0_86 = arith.constant 0 : index
    %158 = vector.load %arg9[%c1_84, %c0_85, %c0_86] : memref<2x1x128xf32, #tpu.memory_space<vmem>>, vector<1x1x128xf32>
    %159 = vector.shape_cast %158 : vector<1x1x128xf32> to vector<1x128xf32>
    %c1_87 = arith.constant 1 : index
    %c0_88 = arith.constant 0 : index
    %c0_89 = arith.constant 0 : index
    %160 = vector.load %arg10[%c1_87, %c0_88, %c0_89] : memref<2x1x128xf32, #tpu.memory_space<vmem>>, vector<1x1x128xf32>
    %161 = vector.shape_cast %160 : vector<1x1x128xf32> to vector<1x128xf32>
    %cst_90 = arith.constant dense<0.000000e+00> : vector<4xf32>
    %162 = vector.multi_reduction <add>, %157, %cst_90 [1] : vector<4x128xf32> to vector<4xf32>
    %163 = vector.shape_cast %162 : vector<4xf32> to vector<4x1xf32>
    %cst_91 = arith.constant 1.280000e+02 : f32
    %164 = vector.broadcast %cst_91 : f32 to vector<4x1xf32>
    %165 = arith.divf %163, %164 : vector<4x1xf32>
    %166 = vector.broadcast %165 : vector<4x1xf32> to vector<4x128xf32>
    %167 = arith.subf %157, %166 : vector<4x128xf32>
    %168 = arith.mulf %167, %167 : vector<4x128xf32>
    %cst_92 = arith.constant dense<0.000000e+00> : vector<4xf32>
    %169 = vector.multi_reduction <add>, %168, %cst_92 [1] : vector<4x128xf32> to vector<4xf32>
    %170 = vector.shape_cast %169 : vector<4xf32> to vector<4x1xf32>
    %cst_93 = arith.constant 1.280000e+02 : f32
    %171 = vector.broadcast %cst_93 : f32 to vector<4x1xf32>
    %172 = arith.divf %170, %171 : vector<4x1xf32>
    %173 = vector.broadcast %165 : vector<4x1xf32> to vector<4x128xf32>
    %174 = arith.subf %157, %173 : vector<4x128xf32>
    %cst_94 = arith.constant 9.99999974E-6 : f32
    %175 = vector.broadcast %cst_94 : f32 to vector<4x1xf32>
    %176 = arith.addf %172, %175 : vector<4x1xf32>
    %177 = math.rsqrt %176 : vector<4x1xf32>
    %178 = vector.broadcast %177 : vector<4x1xf32> to vector<4x128xf32>
    %179 = arith.mulf %174, %178 : vector<4x128xf32>
    %180 = vector.broadcast %159 : vector<1x128xf32> to vector<4x128xf32>
    %181 = arith.mulf %179, %180 : vector<4x128xf32>
    %182 = vector.broadcast %161 : vector<1x128xf32> to vector<4x128xf32>
    %183 = arith.addf %181, %182 : vector<4x128xf32>
    %c1_95 = arith.constant 1 : index
    %c0_96 = arith.constant 0 : index
    %c0_97 = arith.constant 0 : index
    %184 = vector.load %arg11[%c1_95, %c0_96, %c0_97] : memref<2x128x64xf32, #tpu.memory_space<vmem>>, vector<1x128x64xf32>
    %185 = vector.shape_cast %184 : vector<1x128x64xf32> to vector<128x64xf32>
    %cst_98 = arith.constant dense<0.000000e+00> : vector<4x64xf32>
    %186 = tpu.matmul %183, %185, %cst_98 {dimension_numbers = #tpu.dot_dimension_numbers<[1], [0], [0], [1], [0, 0, 1, 1], [], []>} : vector<4x128xf32>, vector<128x64xf32>, vector<4x64xf32> -> vector<4x64xf32>
    %c1_99 = arith.constant 1 : index
    %c0_100 = arith.constant 0 : index
    %c0_101 = arith.constant 0 : index
    %187 = vector.load %arg12[%c1_99, %c0_100, %c0_101] : memref<2x1x64xf32, #tpu.memory_space<vmem>>, vector<1x1x64xf32>
    %188 = vector.shape_cast %187 : vector<1x1x64xf32> to vector<1x64xf32>
    %189 = vector.broadcast %188 : vector<1x64xf32> to vector<4x64xf32>
    %190 = arith.addf %186, %189 : vector<4x64xf32>
    %cst_102 = arith.constant 0.000000e+00 : f32
    %191 = vector.broadcast %cst_102 : f32 to vector<4x64xf32>
    %192 = arith.maximumf %190, %191 : vector<4x64xf32>
    %c1_103 = arith.constant 1 : index
    %c0_104 = arith.constant 0 : index
    %c0_105 = arith.constant 0 : index
    %193 = vector.load %arg13[%c1_103, %c0_104, %c0_105] : memref<2x64x128xf32, #tpu.memory_space<vmem>>, vector<1x64x128xf32>
    %194 = vector.shape_cast %193 : vector<1x64x128xf32> to vector<64x128xf32>
    %cst_106 = arith.constant dense<0.000000e+00> : vector<4x128xf32>
    %195 = tpu.matmul %192, %194, %cst_106 {dimension_numbers = #tpu.dot_dimension_numbers<[1], [0], [0], [1], [0, 0, 1, 1], [], []>} : vector<4x64xf32>, vector<64x128xf32>, vector<4x128xf32> -> vector<4x128xf32>
    %c1_107 = arith.constant 1 : index
    %c0_108 = arith.constant 0 : index
    %c0_109 = arith.constant 0 : index
    %196 = vector.load %arg14[%c1_107, %c0_108, %c0_109] : memref<2x1x128xf32, #tpu.memory_space<vmem>>, vector<1x1x128xf32>
    %197 = vector.shape_cast %196 : vector<1x1x128xf32> to vector<1x128xf32>
    %198 = vector.broadcast %197 : vector<1x128xf32> to vector<4x128xf32>
    %199 = arith.addf %195, %198 : vector<4x128xf32>
    %200 = arith.addf %183, %199 : vector<4x128xf32>
    %c1_110 = arith.constant 1 : index
    %c0_111 = arith.constant 0 : index
    %c0_112 = arith.constant 0 : index
    %201 = vector.load %arg15[%c1_110, %c0_111, %c0_112] : memref<2x1x128xf32, #tpu.memory_space<vmem>>, vector<1x1x128xf32>
    %202 = vector.shape_cast %201 : vector<1x1x128xf32> to vector<1x128xf32>
    %c1_113 = arith.constant 1 : index
    %c0_114 = arith.constant 0 : index
    %c0_115 = arith.constant 0 : index
    %203 = vector.load %arg16[%c1_113, %c0_114, %c0_115] : memref<2x1x128xf32, #tpu.memory_space<vmem>>, vector<1x1x128xf32>
    %204 = vector.shape_cast %203 : vector<1x1x128xf32> to vector<1x128xf32>
    %cst_116 = arith.constant dense<0.000000e+00> : vector<4xf32>
    %205 = vector.multi_reduction <add>, %200, %cst_116 [1] : vector<4x128xf32> to vector<4xf32>
    %206 = vector.shape_cast %205 : vector<4xf32> to vector<4x1xf32>
    %cst_117 = arith.constant 1.280000e+02 : f32
    %207 = vector.broadcast %cst_117 : f32 to vector<4x1xf32>
    %208 = arith.divf %206, %207 : vector<4x1xf32>
    %209 = vector.broadcast %208 : vector<4x1xf32> to vector<4x128xf32>
    %210 = arith.subf %200, %209 : vector<4x128xf32>
    %211 = arith.mulf %210, %210 : vector<4x128xf32>
    %cst_118 = arith.constant dense<0.000000e+00> : vector<4xf32>
    %212 = vector.multi_reduction <add>, %211, %cst_118 [1] : vector<4x128xf32> to vector<4xf32>
    %213 = vector.shape_cast %212 : vector<4xf32> to vector<4x1xf32>
    %cst_119 = arith.constant 1.280000e+02 : f32
    %214 = vector.broadcast %cst_119 : f32 to vector<4x1xf32>
    %215 = arith.divf %213, %214 : vector<4x1xf32>
    %216 = vector.broadcast %208 : vector<4x1xf32> to vector<4x128xf32>
    %217 = arith.subf %200, %216 : vector<4x128xf32>
    %cst_120 = arith.constant 9.99999974E-6 : f32
    %218 = vector.broadcast %cst_120 : f32 to vector<4x1xf32>
    %219 = arith.addf %215, %218 : vector<4x1xf32>
    %220 = math.rsqrt %219 : vector<4x1xf32>
    %221 = vector.broadcast %220 : vector<4x1xf32> to vector<4x128xf32>
    %222 = arith.mulf %217, %221 : vector<4x128xf32>
    %223 = vector.broadcast %202 : vector<1x128xf32> to vector<4x128xf32>
    %224 = arith.mulf %222, %223 : vector<4x128xf32>
    %225 = vector.broadcast %204 : vector<1x128xf32> to vector<4x128xf32>
    %226 = arith.addf %224, %225 : vector<4x128xf32>
    %c0_121 = arith.constant 0 : index
    %c0_122 = arith.constant 0 : index
    %227 = vector.load %arg17[%c0_121, %c0_122] : memref<128x64xf32, #tpu.memory_space<vmem>>, vector<128x64xf32>
    %cst_123 = arith.constant dense<0.000000e+00> : vector<4x64xf32>
    %228 = tpu.matmul %226, %227, %cst_123 {dimension_numbers = #tpu.dot_dimension_numbers<[1], [0], [0], [1], [0, 0, 1, 1], [], []>} : vector<4x128xf32>, vector<128x64xf32>, vector<4x64xf32> -> vector<4x64xf32>
    %c0_124 = arith.constant 0 : index
    %c0_125 = arith.constant 0 : index
    %229 = vector.load %arg18[%c0_124, %c0_125] : memref<1x64xf32, #tpu.memory_space<vmem>>, vector<1x64xf32>
    %230 = vector.broadcast %229 : vector<1x64xf32> to vector<4x64xf32>
    %231 = arith.addf %228, %230 : vector<4x64xf32>
    %cst_126 = arith.constant 0.000000e+00 : f32
    %232 = vector.broadcast %cst_126 : f32 to vector<4x64xf32>
    %233 = arith.maximumf %231, %232 : vector<4x64xf32>
    %c0_127 = arith.constant 0 : index
    %c0_128 = arith.constant 0 : index
    %234 = vector.load %arg19[%c0_127, %c0_128] : memref<1x64xf32, #tpu.memory_space<vmem>>, vector<1x64xf32>
    %235 = vector.broadcast %234 : vector<1x64xf32> to vector<4x64xf32>
    %236 = arith.mulf %233, %235 : vector<4x64xf32>
    %cst_129 = arith.constant dense<0.000000e+00> : vector<4xf32>
    %237 = vector.multi_reduction <add>, %236, %cst_129 [1] : vector<4x64xf32> to vector<4xf32>
    %238 = vector.shape_cast %237 : vector<4xf32> to vector<4x1xf32>
    %c0_130 = arith.constant 0 : index
    %c0_131 = arith.constant 0 : index
    %239 = vector.load %arg20[%c0_130, %c0_131] : memref<1x1xf32, #tpu.memory_space<vmem>>, vector<1x1xf32>
    %240 = vector.broadcast %239 : vector<1x1xf32> to vector<4x1xf32>
    %241 = arith.addf %238, %240 : vector<4x1xf32>
    %cst_132 = arith.constant dense<0xFF800000> : vector<1xf32>
    %242 = vector.multi_reduction <maximumf>, %241, %cst_132 [0] : vector<4x1xf32> to vector<1xf32>
    %243 = vector.shape_cast %242 : vector<1xf32> to vector<1x1xf32>
    %244 = vector.broadcast %243 : vector<1x1xf32> to vector<4x1xf32>
    %245 = arith.subf %241, %244 : vector<4x1xf32>
    %246 = math.exp %245 : vector<4x1xf32>
    %cst_133 = arith.constant dense<0.000000e+00> : vector<1xf32>
    %247 = vector.multi_reduction <add>, %246, %cst_133 [0] : vector<4x1xf32> to vector<1xf32>
    %248 = vector.shape_cast %247 : vector<1xf32> to vector<1x1xf32>
    %249 = vector.broadcast %248 : vector<1x1xf32> to vector<4x1xf32>
    %250 = arith.divf %246, %249 : vector<4x1xf32>
    %251 = vector.broadcast %250 : vector<4x1xf32> to vector<4x128xf32>
    %252 = arith.mulf %10, %251 : vector<4x128xf32>
    %cst_134 = arith.constant dense<0.000000e+00> : vector<128xf32>
    %253 = vector.multi_reduction <add>, %252, %cst_134 [0] : vector<4x128xf32> to vector<128xf32>
    %254 = vector.shape_cast %253 : vector<128xf32> to vector<1x128xf32>
    %c0_135 = arith.constant 0 : index
    %c0_136 = arith.constant 0 : index
    %c0_137 = arith.constant 0 : index
    %255 = vector.load %arg21[%c0_135, %c0_136, %c0_137] : memref<1x1x128xf32, #tpu.memory_space<vmem>>, vector<1x1x128xf32>
    %256 = vector.shape_cast %255 : vector<1x1x128xf32> to vector<1x128xf32>
    %257 = vector.shape_cast %254 : vector<1x128xf32> to vector<1x1x128xf32>
    tpu.vector_store %arg21[%c0_135, %c0_136, %c0_137], %257 {strides = array<i32>} : memref<1x1x128xf32, #tpu.memory_space<vmem>>, vector<1x1x128xf32>,
    %258 = vector.shape_cast %250 : vector<4x1xf32> to vector<1x4xf32>
    %c0_138 = arith.constant 0 : index
    %c0_139 = arith.constant 0 : index
    %c0_140 = arith.constant 0 : index
    %259 = vector.load %arg22[%c0_138, %c0_139, %c0_140] : memref<1x1x4xf32, #tpu.memory_space<vmem>>, vector<1x1x4xf32>
    %260 = vector.shape_cast %259 : vector<1x1x4xf32> to vector<1x4xf32>
    %261 = vector.shape_cast %258 : vector<1x4xf32> to vector<1x1x4xf32>
    tpu.vector_store %arg22[%c0_138, %c0_139, %c0_140], %261 {strides = array<i32>} : memref<1x1x4xf32, #tpu.memory_space<vmem>>, vector<1x1x4xf32>,
    return
  }
  func.func @transform_0(%arg0: i32) -> (i32, i32, i32) {
    %c0_i32 = arith.constant 0 : i32
    %c0_i32_0 = arith.constant 0 : i32
    %c0_i32_1 = arith.constant 0 : i32
    return %arg0, %c0_i32, %c0_i32_0 : i32, i32, i32
  }
  func.func @transform_1(%arg0: i32) -> (i32, i32) {
    %c0_i32 = arith.constant 0 : i32
    %c0_i32_0 = arith.constant 0 : i32
    %c0_i32_1 = arith.constant 0 : i32
    return %c0_i32, %c0_i32_0 : i32, i32
  }
  func.func @transform_2(%arg0: i32) -> (i32, i32) {
    %c0_i32 = arith.constant 0 : i32
    %c0_i32_0 = arith.constant 0 : i32
    %c0_i32_1 = arith.constant 0 : i32
    return %c0_i32, %c0_i32_0 : i32, i32
  }
  func.func @transform_3(%arg0: i32) -> (i32, i32) {
    %c0_i32 = arith.constant 0 : i32
    %c0_i32_0 = arith.constant 0 : i32
    %c0_i32_1 = arith.constant 0 : i32
    return %c0_i32, %c0_i32_0 : i32, i32
  }
  func.func @transform_4(%arg0: i32) -> (i32, i32, i32) {
    %c0_i32 = arith.constant 0 : i32
    %c0_i32_0 = arith.constant 0 : i32
    %c0_i32_1 = arith.constant 0 : i32
    %c0_i32_2 = arith.constant 0 : i32
    return %c0_i32, %c0_i32_0, %c0_i32_1 : i32, i32, i32
  }
  func.func @transform_5(%arg0: i32) -> (i32, i32, i32) {
    %c0_i32 = arith.constant 0 : i32
    %c0_i32_0 = arith.constant 0 : i32
    %c0_i32_1 = arith.constant 0 : i32
    %c0_i32_2 = arith.constant 0 : i32
    return %c0_i32, %c0_i32_0, %c0_i32_1 : i32, i32, i32
  }
  func.func @transform_6(%arg0: i32) -> (i32, i32, i32) {
    %c0_i32 = arith.constant 0 : i32
    %c0_i32_0 = arith.constant 0 : i32
    %c0_i32_1 = arith.constant 0 : i32
    %c0_i32_2 = arith.constant 0 : i32
    return %c0_i32, %c0_i32_0, %c0_i32_1 : i32, i32, i32
  }
  func.func @transform_7(%arg0: i32) -> (i32, i32, i32) {
    %c0_i32 = arith.constant 0 : i32
    %c0_i32_0 = arith.constant 0 : i32
    %c0_i32_1 = arith.constant 0 : i32
    %c0_i32_2 = arith.constant 0 : i32
    return %c0_i32, %c0_i32_0, %c0_i32_1 : i32, i32, i32
  }
  func.func @transform_8(%arg0: i32) -> (i32, i32, i32) {
    %c0_i32 = arith.constant 0 : i32
    %c0_i32_0 = arith.constant 0 : i32
    %c0_i32_1 = arith.constant 0 : i32
    %c0_i32_2 = arith.constant 0 : i32
    return %c0_i32, %c0_i32_0, %c0_i32_1 : i32, i32, i32
  }
  func.func @transform_9(%arg0: i32) -> (i32, i32, i32) {
    %c0_i32 = arith.constant 0 : i32
    %c0_i32_0 = arith.constant 0 : i32
    %c0_i32_1 = arith.constant 0 : i32
    %c0_i32_2 = arith.constant 0 : i32
    return %c0_i32, %c0_i32_0, %c0_i32_1 : i32, i32, i32
  }
  func.func @transform_10(%arg0: i32) -> (i32, i32, i32) {
    %c0_i32 = arith.constant 0 : i32
    %c0_i32_0 = arith.constant 0 : i32
    %c0_i32_1 = arith.constant 0 : i32
    %c0_i32_2 = arith.constant 0 : i32
    return %c0_i32, %c0_i32_0, %c0_i32_1 : i32, i32, i32
  }
  func.func @transform_11(%arg0: i32) -> (i32, i32, i32) {
    %c0_i32 = arith.constant 0 : i32
    %c0_i32_0 = arith.constant 0 : i32
    %c0_i32_1 = arith.constant 0 : i32
    %c0_i32_2 = arith.constant 0 : i32
    return %c0_i32, %c0_i32_0, %c0_i32_1 : i32, i32, i32
  }
  func.func @transform_12(%arg0: i32) -> (i32, i32, i32) {
    %c0_i32 = arith.constant 0 : i32
    %c0_i32_0 = arith.constant 0 : i32
    %c0_i32_1 = arith.constant 0 : i32
    %c0_i32_2 = arith.constant 0 : i32
    return %c0_i32, %c0_i32_0, %c0_i32_1 : i32, i32, i32
  }
  func.func @transform_13(%arg0: i32) -> (i32, i32, i32) {
    %c0_i32 = arith.constant 0 : i32
    %c0_i32_0 = arith.constant 0 : i32
    %c0_i32_1 = arith.constant 0 : i32
    %c0_i32_2 = arith.constant 0 : i32
    return %c0_i32, %c0_i32_0, %c0_i32_1 : i32, i32, i32
  }
  func.func @transform_14(%arg0: i32) -> (i32, i32, i32) {
    %c0_i32 = arith.constant 0 : i32
    %c0_i32_0 = arith.constant 0 : i32
    %c0_i32_1 = arith.constant 0 : i32
    %c0_i32_2 = arith.constant 0 : i32
    return %c0_i32, %c0_i32_0, %c0_i32_1 : i32, i32, i32
  }
  func.func @transform_15(%arg0: i32) -> (i32, i32, i32) {
    %c0_i32 = arith.constant 0 : i32
    %c0_i32_0 = arith.constant 0 : i32
    %c0_i32_1 = arith.constant 0 : i32
    %c0_i32_2 = arith.constant 0 : i32
    return %c0_i32, %c0_i32_0, %c0_i32_1 : i32, i32, i32
  }
  func.func @transform_16(%arg0: i32) -> (i32, i32) {
    %c0_i32 = arith.constant 0 : i32
    %c0_i32_0 = arith.constant 0 : i32
    %c0_i32_1 = arith.constant 0 : i32
    return %c0_i32, %c0_i32_0 : i32, i32
  }
  func.func @transform_17(%arg0: i32) -> (i32, i32) {
    %c0_i32 = arith.constant 0 : i32
    %c0_i32_0 = arith.constant 0 : i32
    %c0_i32_1 = arith.constant 0 : i32
    return %c0_i32, %c0_i32_0 : i32, i32
  }
  func.func @transform_18(%arg0: i32) -> (i32, i32) {
    %c0_i32 = arith.constant 0 : i32
    %c0_i32_0 = arith.constant 0 : i32
    %c0_i32_1 = arith.constant 0 : i32
    return %c0_i32, %c0_i32_0 : i32, i32
  }
  func.func @transform_19(%arg0: i32) -> (i32, i32) {
    %c0_i32 = arith.constant 0 : i32
    %c0_i32_0 = arith.constant 0 : i32
    %c0_i32_1 = arith.constant 0 : i32
    return %c0_i32, %c0_i32_0 : i32, i32
  }
  func.func @transform_20(%arg0: i32) -> (i32, i32, i32) {
    %c0_i32 = arith.constant 0 : i32
    %c0_i32_0 = arith.constant 0 : i32
    %c0_i32_1 = arith.constant 0 : i32
    return %arg0, %c0_i32, %c0_i32_0 : i32, i32, i32
  }
  func.func @transform_21(%arg0: i32) -> (i32, i32, i32) {
    %c0_i32 = arith.constant 0 : i32
    %c0_i32_0 = arith.constant 0 : i32
    %c0_i32_1 = arith.constant 0 : i32
    return %arg0, %c0_i32, %c0_i32_0 : i32, i32, i32
  }
}

</mosaic_0001>

<bundles_post_ra>
// kernel: rem_crops_encoder_forward.1
= control target key start
LH: loop header
LB: loop body
LE: loop exit
PB: predicated region body
PF: predicated region fallthrough
CT: control target
= control target key end

     0   :  { %s5889_s0 = inlined_call_operand.vmem [shape: f32[2,64,128], index: 0, kind: input, shape index: {}]   ;;  %s5890_s1 = inlined_call_operand.vmem [shape: f32[128,128], index: 1, kind: input, shape index: {}]   ;;  %s5891_s2 = inlined_call_operand.vmem [shape: f32[1,128], index: 2, kind: input, shape index: {}]   ;;  %s5892_s3 = inlined_call_operand.vmem [shape: f32[4,64], index: 3, kind: input, shape index: {}]   ;;  %s5893_s4 = inlined_call_operand.vmem [shape: f32[2,128,384], index: 4, kind: input, shape index: {}]   ;;  %s5894_s5 = inlined_call_operand.vmem [shape: f32[2,1,384], index: 5, kind: input, shape index: {}]   ;;  %s5895_s6 = inlined_call_operand.vmem [shape: f32[2,128,128], index: 6, kind: input, shape index: {}]   ;;  %s5896_s7 = inlined_call_operand.vmem [shape: f32[2,1,128], index: 7, kind: input, shape index: {}]   ;;  %s5897_s8 = inlined_call_operand.vmem [shape: f32[2,1,128], index: 8, kind: input, shape index: {}]   ;;  %s5898_s9 = inlined_call_operand.vmem [shape: f32[2,1,128], index: 9, kind: input, shape index: {}]   ;;  %s5899_s10 = inlined_call_operand.vmem [shape: f32[2,128,64], index: 10, kind: input, shape index: {}]   ;;  %s5900_s11 = inlined_call_operand.vmem [shape: f32[2,1,64], index: 11, kind: input, shape index: {}]   ;;  %s5901_s12 = inlined_call_operand.vmem [shape: f32[2,64,128], index: 12, kind: input, shape index: {}]   ;;  %s5902_s13 = inlined_call_operand.vmem [shape: f32[2,1,128], index: 13, kind: input, shape index: {}]   ;;  %s5903_s14 = inlined_call_operand.vmem [shape: f32[2,1,128], index: 14, kind: input, shape index: {}]   ;;  %s5904_s15 = inlined_call_operand.vmem [shape: f32[2,1,128], index: 15, kind: input, shape index: {}]   ;;  %s5905_s16 = inlined_call_operand.vmem [shape: f32[128,64], index: 16, kind: input, shape index: {}]   ;;  %s5906_s17 = inlined_call_operand.vmem [shape: f32[1,64], index: 17, kind: input, shape index: {}]   ;;  %s5907_s18 = inlined_call_operand.vmem [shape: f32[1,64], index: 18, kind: input, shape index: {}]   ;;  %s5908_s19 = inlined_call_operand.<no memory space> [shape: f32[1,1], index: 19, kind: input, shape index: {}]   ;;  %s5909_s20 = inlined_call_operand.hbm [shape: f32[2,1,128], index: 20, kind: output, shape index: {0}]   ;;  %s5910_s21 = inlined_call_operand.vmem [shape: f32[2,1,4], index: 21, kind: output, shape index: {1}]  }
   0x1   :  { %5941 = sst [smem:[#allocation13_spill]] %s5889_s0  ;;  %v27_v0 = vstv %s5908_s19 }
   0x2   :  { %5942 = sst [smem:[#allocation14_spill]] %s5890_s1  ;;  %28 = vst [vmem:[#allocation2] sm:$0x1] %v27_v0 }
   0x3   :  { %5943 = sst [smem:[#allocation15_spill]] %s5891_s2 }
   0x4   :  { %5944 = sst [smem:[#allocation16_spill]] %s5892_s3 }
   0x5   :  { %5945 = sst [smem:[#allocation17_spill]] %s5893_s4 }
   0x6   :  { %5946 = sst [smem:[#allocation18_spill]] %s5894_s5 }
   0x7   :  { %5947 = sst [smem:[#allocation19_spill]] %s5895_s6 }
   0x8   :  { %5948 = sst [smem:[#allocation20_spill]] %s5909_s20 }
   0x9   :  { %29 = vsyncpa [#allocation4], 0 }
   0xa   :  { %31 = vsyncpa [#allocation4 + $0x1], 0  ;;  %s4431_s26 = smov 0   ;;  %s4433_s27 = smov 0  }
   0xb   :  { %s4435_s3 = smov 0   ;;  %s4437_s28 = smov 0  }
   0xc LB: > { %5949 = sst [smem:[#allocation6_spill]] %s4293_s26  ;;  %s4452_s19 = sadd.s32 4294967295, %s4305_s28   ;;  %s4305_s28 = sphi %s4437_s28, %s5983_s28   ;;  %s4301_s3 = sphi %s4435_s3, %s5985_s3   ;;  %s4297_s27 = sphi %s4433_s27, %s5987_s27   ;;  %s4293_s26 = sphi %s4431_s26, %s5986_s26  }
   0xd   : > { %5950 = sst [smem:[#allocation7_spill]] %s4301_s3  ;;  %s3923_s29 = sadd.s32 4294967294, %s4305_s28  }
   0xe   : > { %5951 = sst [smem:[#allocation8_spill]] %s4305_s28  ;;  %s4456_s0 = sadd.s32 1, %s4305_s28  }
   0xf   : > { %5952 = sst [smem:[#allocation9_spill]] %s4456_s0  ;;  %s469_s4 = sadd.s32 1, %s4301_s3 }
  0x10   : > { %s466_s30 = ssub.s32 %s4305_s28, %s4456_s0  ;;  %p479_p0 = scmp.ne.s32.totalorder %s4301_s3, %s4297_s27 }
  0x11   : > { %p467_p1 = scmp.eq.s32.totalorder %s466_s30, 0  ;;  %p480_p2 = scmp.eq.s32.totalorder %s4452_s19, 1 }
  0x12   : > { %p485_p3 = scmp.ne.s32.totalorder %s4297_s27, %s4293_s26  ;;  %p486_p4 = scmp.eq.s32.totalorder %s3923_s29, 1 }
  0x13   : > { %s4467_s5 = scalar_select %p467_p1, %s4301_s3, %s469_s4  }
  0x14   : > { %p4469_p5 = por %p480_p2, %p479_p0  ;;  %p4473_p6 = por %p486_p4, %p485_p3 }
  0x15   : > { %5953 = sst [smem:[#allocation10_spill]] %s4467_s5  ;;  %p3926_p7 = scmp.ge.s32.totalorder %s4305_s28, 1 }
  0x16   : > { %s5954_s22 = scalar_select %p4469_p5, 1, 0 }
  0x17   : > { %s5956_s23 = scalar_select %p4473_p6, 1, 0 }
  0x18   : > { %5955 = sst [smem:[#allocation11_spill]] %s5954_s22  ;;  %p595_p8 = scmp.lt.s32.totalorder %s4305_s28, 3 }
  0x19   : > { %5957 = sst [smem:[#allocation12_spill]] %s5956_s23 }
  0x1a   : > { %p596_p9 = pnand %p3926_p7, %p595_p8 }
  0x1b   : > { %s5958_s2 = sld [smem:[#allocation14_spill]] (!%p596_p9)  ;;  %p657_p10 = scmp.lt.s32.totalorder (!%p596_p9), %s4452_s19, 1 }
  0x1c   : > { %599 = sbr.rel (%p596_p9) target bundleno = 4719 (0x126f), region = 100  ;;  %s5959_s4 = sld [smem:[#allocation13_spill]] (!%p596_p9) }
  0x1d   : > { %s5960_s22 = sld [smem:[#allocation17_spill]] (!%p596_p9)  ;;  %s5923_s24 = smov (!%p596_p9), 112  }
  0x1e   : > { %s5961_s3 = sld [smem:[#allocation15_spill]] (!%p596_p9)  ;;  %s5935_s29 = smov (!%p596_p9), 32  }
  0x1f   : > { %s5963_s1 = sld [smem:[#allocation18_spill]] (!%p596_p9)  ;;  %s5931_s20 = smov (!%p596_p9), 64  }
  0x20   : > { %s5925_s26 = smov (!%p596_p9), 80   ;;  %s5927_s5 = smov (!%p596_p9), 48  }
  0x21   : > { %v688_v1 = vld [vmem:[%s5958_s2 + $0x78] sm:$0xff]  ;;  %v687_v2 = vld [vmem:[%s5958_s2 + $0x70] sm:$0xff]  ;;  %v686_v3 = vld [vmem:[%s5958_s2 + $0x68] sm:$0xff]  ;;  %s4514_s25 = scalar_select %p657_p10, %s4452_s19, 1  ;;  %vm743_vm0 = vcmask 523264   ;;  %vm906_vm1 = vcmask 1047556  }
  0x22   : > { %693 = vmatpush.msra.mxu0 %v688_v1  ;;  %v685_v4 = vld [vmem:[%s5958_s2 + $0x60] sm:$0xff]  ;;  %v684_v5 = vld [vmem:[%s5958_s2 + $0x58] sm:$0xff]  ;;  %v683_v6 = vld [vmem:[%s5958_s2 + $0x50] sm:$0xff]  ;;  %vm1286_vm2 = vcmask 130048   ;;  %vm1503_vm3 = vcmask 27648   ;;  %vm5938_vm4 = vcmask 1043456  }
  0x23   : > { %v682_v7 = vld [vmem:[%s5958_s2 + $0x48] sm:$0xff]  ;;  %v681_v8 = vld [vmem:[%s5958_s2 + $0x40] sm:$0xff]  ;;  %v680_v9 = vld [vmem:[%s5958_s2 + $0x38] sm:$0xff]  ;;  %s4094_s0 = sshll.u32 %s4514_s25, 6  ;;  %vm1696_vm12 = vcmask 31744   ;;  %s5964_s6 = sld [smem:[#allocation19_spill]] }
  0x24   : > { %694 = vmatpush.msra.mxu0 %v687_v2  ;;  %v679_v10 = vld [vmem:[%s5958_s2 + $0x30] sm:$0xff]  ;;  %v678_v11 = vld [vmem:[%s5958_s2 + $0x28] sm:$0xff]  ;;  %v677_v12 = vld [vmem:[%s5958_s2 + $0x20] sm:$0xff]  ;;  %s661_s28 = scalar_lea.vmem %s5959_s4, %s4094_s0  ;;  %s5962_s0 = sld [smem:[#allocation16_spill]] }
  0x25   : > { %v676_v13 = vld [vmem:[%s5958_s2 + $0x18] sm:$0xff]  ;;  %v675_v14 = vld [vmem:[%s5958_s2 + $0x10] sm:$0xff]  ;;  %v674_v15 = vld [vmem:[%s5958_s2 + $0x8] sm:$0xff]  ;;  %s5933_s4 = smov 96   ;;  %s5969_s23 = smov 64  }
  0x26   : > { %695 = vmatpush.msra.mxu0 %v686_v3  ;;  %v673_v16 = vld [vmem:[%s5958_s2] sm:$0xff]  ;;  %v666_v18 = vld [vmem:[%s661_s28 + $0x8] sm:$0xff]  ;;  %v667_v19 = vld [vmem:[%s661_s28 + $0x10] sm:$0xff]  ;;  %s5970_s30 = smov 16  }
  0x27   : > { %v665_v17 = vld [vmem:[%s661_s28] sm:$0xff]  ;;  %v668_v20 = vld [vmem:[%s661_s28 + $0x18] sm:$0xff]  ;;  %v670_v22 = vld [vmem:[%s661_s28 + $0x28] sm:$0xff] }
  0x28   : > { %696 = vmatpush.msra.mxu0 %v685_v4  ;;  %v669_v21 = vld [vmem:[%s661_s28 + $0x20] sm:$0xff]  ;;  %v671_v23 = vld [vmem:[%s661_s28 + $0x30] sm:$0xff]  ;;  %v672_v24 = vld [vmem:[%s661_s28 + $0x38] sm:$0xff]  ;;  %s5965_s28 = smov 80  }
  0x29   : > { %v812_v31 = vld [vmem:[%s5960_s22 + $0x168] sm:$0xff]  ;;  %v813_v32 = vld [vmem:[%s5960_s22 + $0x170] sm:$0xff]  ;;  %v810_v34 = vld [vmem:[%s5960_s22 + $0x158] sm:$0xff] }
  0x2a   : > { %697 = vmatpush.msra.mxu0 %v684_v5  ;;  %823 = vmatpush.msra.mxu2 %v812_v31  ;;  %v809_v33 = vld [vmem:[%s5960_s22 + $0x150] sm:$0xff]  ;;  %v806_v35 = vld [vmem:[%s5960_s22 + $0x138] sm:$0xff]  ;;  %v807_v36 = vld [vmem:[%s5960_s22 + $0x140] sm:$0xff] }
  0x2b   : > { %843 = vmatpush.msra.mxu3 %v813_v32  ;;  %v803_v38 = vld [vmem:[%s5960_s22 + $0x120] sm:$0xff]  ;;  %v804_v39 = vld [vmem:[%s5960_s22 + $0x128] sm:$0xff]  ;;  %v801_v41 = vld [vmem:[%s5960_s22 + $0x110] sm:$0xff] }
  0x2c   : > { %698 = vmatpush.msra.mxu0 %v683_v6  ;;  %824 = vmatpush.msra.mxu2 %v809_v33  ;;  %v800_v40 = vld [vmem:[%s5960_s22 + $0x108] sm:$0xff]  ;;  %v797_v42 = vld [vmem:[%s5960_s22 + $0xf0] sm:$0xff]  ;;  %v798_v43 = vld [vmem:[%s5960_s22 + $0xf8] sm:$0xff] }
  0x2d   : > { %844 = vmatpush.msra.mxu3 %v810_v34  ;;  %v4147_v44 = vld [vmem:[%s5961_s3] ss:$0 sm:$0xff]  ;;  %v794_v45 = vld [vmem:[%s5960_s22 + $0xd8] sm:$0xff]  ;;  %v792_v51 = vld [vmem:[%s5960_s22 + $0xc8] sm:$0xff]  ;;  %s5929_s3 = smov 16  }
  0x2e   : > { %699 = vmatpush.msra.mxu0 %v682_v7  ;;  %825 = vmatpush.msra.mxu2 %v806_v35  ;;  %v795_v46 = vld [vmem:[%s5960_s22 + $0xe0] sm:$0xff]  ;;  %v788_v54 = vld [vmem:[%s5960_s22 + $0xa8] sm:$0xff]  ;;  %v789_v55 = vld [vmem:[%s5960_s22 + $0xb0] sm:$0xff] }
  0x2f   : > { %845 = vmatpush.msra.mxu3 %v807_v36  ;;  %v791_v50 = vld [vmem:[%s5960_s22 + $0xc0] sm:$0xff]  ;;  %v785_v58 = vld [vmem:[%s5960_s22 + $0x90] sm:$0xff]  ;;  %v786_v59 = vld [vmem:[%s5960_s22 + $0x98] sm:$0xff] }
  0x30   : > { %700 = vmatpush.msra.mxu0 %v681_v8  ;;  %826 = vmatpush.msra.mxu2 %v803_v38  ;;  %v782_v62 = vld [vmem:[%s5960_s22 + $0x78] sm:$0xff]  ;;  %v783_v63 = vld [vmem:[%s5960_s22 + $0x80] sm:$0xff]  ;;  %v780_v3 = vld [vmem:[%s5960_s22 + $0x68] sm:$0xff] }
  0x31   : > { %846 = vmatpush.msra.mxu3 %v804_v39  ;;  %v779_v2 = vld [vmem:[%s5960_s22 + $0x60] sm:$0xff]  ;;  %v776_v6 = vld [vmem:[%s5960_s22 + $0x48] sm:$0xff]  ;;  %v777_v7 = vld [vmem:[%s5960_s22 + $0x50] sm:$0xff] }
  0x32   : > { %701 = vmatpush.msra.mxu0 %v680_v9  ;;  %827 = vmatpush.msra.mxu2 %v800_v40  ;;  %v772_v31 = vld [vmem:[%s5960_s22 + $0x28] sm:$0xff]  ;;  %v767_v32 = vld [vmem:[%s5960_s22] sm:$0xff]  ;;  %v769_v34 = vld [vmem:[%s5960_s22 + $0x10] sm:$0xff] }
  0x33   : > { %847 = vmatpush.msra.mxu3 %v801_v41  ;;  %v768_v33 = vld [vmem:[%s5960_s22 + $0x8] sm:$0xff]  ;;  %v815_v36 = vld [vmem:[%s5963_s1] sm:$0x7] }
  0x34   : > { %702 = vmatpush.msra.mxu0 %v679_v10  ;;  %828 = vmatpush.msra.mxu2 %v797_v42  ;;  %v773_v10 = vld [vmem:[%s5960_s22 + $0x30] sm:$0xff]  ;;  %v817_v40 = vperm.slane %v815_v36, 0 }
  0x35   : > { %848 = vmatpush.msra.mxu3 %v798_v43  ;;  %v819_v43 = vperm.slane %v815_v36, 2 }
  0x36   : > { %703 = vmatpush.msra.mxu0 %v678_v11  ;;  %829 = vmatpush.msra.mxu2 %v794_v45  ;;  %v774_v11 = vld [vmem:[%s5960_s22 + $0x38] sm:$0xff] }
  0x37   : > { %849 = vmatpush.msra.mxu3 %v795_v46 }
  0x38   : > { %704 = vmatpush.msra.mxu0 %v677_v12  ;;  %830 = vmatpush.msra.mxu2 %v791_v50 }
  0x39   : > { %850 = vmatpush.msra.mxu3 %v792_v51 }
  0x3a   : > { %705 = vmatpush.msra.mxu0 %v676_v13  ;;  %831 = vmatpush.msra.mxu2 %v788_v54  ;;  %v770_v13 = vld [vmem:[%s5960_s22 + $0x18] sm:$0xff]  ;;  %v4314_v54 = vmov 1983009808  }
  0x3b   : > { %851 = vmatpush.msra.mxu3 %v789_v55  ;;  %v909_v55 = vunpack.c.l.s4 %v4314_v54 }
  0x3c   : > { %706 = vmatpush.msra.mxu0 %v675_v14  ;;  %832 = vmatpush.msra.mxu2 %v785_v58  ;;  %v771_v14 = vld [vmem:[%s5960_s22 + $0x20] sm:$0xff] }
  0x3d   : > { %852 = vmatpush.msra.mxu3 %v786_v59  ;;  %v4722_v59 = vunpack.c.0.s8 %v909_v55 }
  0x3e   : > { %707 = vmatpush.msra.mxu0 %v674_v15  ;;  %833 = vmatpush.msra.mxu2 %v782_v62 }
  0x3f   : > { %853 = vmatpush.msra.mxu3 %v783_v63 }
  0x40   : > { %708 = vmatpush.msra.mxu0 %v673_v16  ;;  %834 = vmatpush.msra.mxu2 %v779_v2  ;;  %v742_v16 = vld [vmem:[%s5962_s0] sm:$0xf]  ;;  %v4315_v2 = vmov 1934713408   ;;  %s5966_s0 = smov 112  }
  0x41   : > { %709 = vmatmul.f32.vlgmr.msra.gmra.mxu0 %v665_v17  ;;  %854 = vmatpush.msra.mxu3 %v780_v3  ;;  %v814_v17 = vld [vmem:[%s5960_s22 + $0x178] sm:$0xff]  ;;  %v935_v3 = vunpack.c.l.s4 %v4315_v2 }
  0x42   : > { %835 = vmatpush.msra.mxu2 %v776_v6 }
  0x43   : > { %855 = vmatpush.msra.mxu3 %v777_v7 }
  0x44   : > { %836 = vmatpush.msra.mxu2 %v773_v10 }
  0x45   : > { %856 = vmatpush.msra.mxu3 %v774_v11 }
  0x46   : > { %837 = vmatpush.msra.mxu2 %v770_v13 }
  0x47   : > { %857 = vmatpush.msra.mxu3 %v771_v14 }
  0x48   : > { %838 = vmatpush.msra.mxu2 %v767_v32 }
  0x49   : > { %712 = vmatmul.f32.gmra.mxu0 %v666_v18  ;;  %v811_v18 = vld [vmem:[%s5960_s22 + $0x160] sm:$0xff]  ;;  %858 = vmatpush.msra.mxu3 %v768_v33 }
  0x51   : > { %715 = vmatmul.f32.gmra.mxu0 %v667_v19  ;;  %v808_v19 = vld [vmem:[%s5960_s22 + $0x148] sm:$0xff] }
  0x59   : > { %718 = vmatmul.f32.gmra.mxu0 %v668_v20  ;;  %v805_v20 = vld [vmem:[%s5960_s22 + $0x130] sm:$0xff] }
  0x61   : > { %721 = vmatmul.f32.gmra.mxu0 %v669_v21  ;;  %v802_v21 = vld [vmem:[%s5960_s22 + $0x118] sm:$0xff] }
  0x69   : > { %724 = vmatmul.f32.gmra.mxu0 %v670_v22  ;;  %v799_v22 = vld [vmem:[%s5960_s22 + $0x100] sm:$0xff] }
  0x71   : > { %727 = vmatmul.f32.gmra.mxu0 %v671_v23  ;;  %v796_v23 = vld [vmem:[%s5960_s22 + $0xe8] sm:$0xff] }
  0x79   : > { %730 = vmatmul.f32.gmra.mxu0 %v672_v24  ;;  %v793_v24 = vld [vmem:[%s5960_s22 + $0xd0] sm:$0xff] }
  0xbe   : > { %v4535_v25 = vpop.f32.mrf.mxu0 }
  0xbf   : > { %v711_v8 = vadd.f32 %v4147_v44, %v4535_v25  ;;  %v790_v25 = vld [vmem:[%s5960_s22 + $0xb8] sm:$0xff] }
  0xc1   : > { %v734_v15 = vmax.f32 %v711_v8, 0.0  ;;  %v4728_v8 = vunpack.c.0.s8 %v935_v3 }
  0xc6   : > { %v4537_v26 = vpop.f32.mrf.mxu0 }
  0xc7   : > { %v714_v4 = vadd.f32 %v4147_v44, %v4537_v26  ;;  %v787_v26 = vld [vmem:[%s5960_s22 + $0xa0] sm:$0xff] }
  0xc9   : > { %v735_v12 = vmax.f32 %v714_v4, 0.0 }
  0xce   : > { %v716_v27 = vpop.f32.mrf.mxu0 }
  0xcf   : > { %v717_v0 = vadd.f32 %v4147_v44, %v716_v27  ;;  %v784_v27 = vld [vmem:[%s5960_s22 + $0x88] sm:$0xff] }
  0xd1   : > { %v736_v9 = vmax.f32 %v717_v0, 0.0 }
  0xd6   : > { %v719_v28 = vpop.f32.mrf.mxu0 }
  0xd7   : > { %v720_v60 = vadd.f32 %v4147_v44, %v719_v28  ;;  %v781_v28 = vld [vmem:[%s5960_s22 + $0x70] sm:$0xff] }
  0xd9   : > { %v737_v5 = vmax.f32 %v720_v60, 0.0 }
  0xde   : > { %v722_v29 = vpop.f32.mrf.mxu0 }
  0xdf   : > { %v723_v56 = vadd.f32 %v4147_v44, %v722_v29  ;;  %v778_v29 = vld [vmem:[%s5960_s22 + $0x58] sm:$0xff] }
  0xe1   : > { %v738_v1 = vmax.f32 %v723_v56, 0.0 }
  0xe6   : > { %v725_v30 = vpop.f32.mrf.mxu0 }
  0xe7   : > { %v726_v52 = vadd.f32 %v4147_v44, %v725_v30  ;;  %v775_v30 = vld [vmem:[%s5960_s22 + $0x40] sm:$0xff] }
  0xe9   : > { %v739_v61 = vmax.f32 %v726_v52, 0.0 }
  0xee   : > { %v728_v37 = vpop.f32.mrf.mxu0 }
  0xef   : > { %v729_v48 = vadd.f32 %v4147_v44, %v728_v37  ;;  %v818_v37 = vperm.slane %v815_v36, 1 }
  0xf1   : > { %v740_v57 = vmax.f32 %v729_v48, 0.0 }
  0xf6   : > { %v731_v47 = vpop.f32.mrf.mxu0 }
  0xf7   : > { %v732_v49 = vadd.f32 %v4147_v44, %v731_v47 }
  0xf9   : > { %v741_v53 = vmax.f32 %v732_v49, 0.0 }
  0xfb   : > { %755 = vmatpush.msra.mxu1 %v741_v53 }
  0xfd   : > { %756 = vmatpush.msra.mxu1 %v740_v57 }
  0xff   : > { %757 = vmatpush.msra.mxu1 %v739_v61 }
 0x101   : > { %758 = vmatpush.msra.mxu1 %v738_v1 }
 0x103   : > { %759 = vmatpush.msra.mxu1 %v737_v5 }
 0x105   : > { %760 = vmatpush.msra.mxu1 %v736_v9 }
 0x107   : > { %761 = vmatpush.msra.mxu1 %v735_v12 }
 0x109   : > { %762 = vmatpush.msra.mxu1 %v734_v15 }
 0x10a   : > { %3929 = vmatmul.msk.f32.vlgmr.msra.gmra.mxu1 %vm743_vm0, %v742_v16 }
 0x10b   : > { %863 = vmatpush.msrb.mxu1 %v814_v17 }
 0x10d   : > { %864 = vmatpush.msrb.mxu1 %v811_v18 }
 0x10f   : > { %865 = vmatpush.msrb.mxu1 %v808_v19 }
 0x111   : > { %866 = vmatpush.msrb.mxu1 %v805_v20 }
 0x113   : > { %867 = vmatpush.msrb.mxu1 %v802_v21 }
 0x115   : > { %868 = vmatpush.msrb.mxu1 %v799_v22 }
 0x117   : > { %869 = vmatpush.msrb.mxu1 %v796_v23 }
 0x119   : > { %870 = vmatpush.msrb.mxu1 %v793_v24 }
 0x11b   : > { %871 = vmatpush.msrb.mxu1 %v790_v25 }
 0x11d   : > { %872 = vmatpush.msrb.mxu1 %v787_v26 }
 0x11f   : > { %873 = vmatpush.msrb.mxu1 %v784_v27 }
 0x121   : > { %874 = vmatpush.msrb.mxu1 %v781_v28 }
 0x123   : > { %875 = vmatpush.msrb.mxu1 %v778_v29 }
 0x125   : > { %876 = vmatpush.msrb.mxu1 %v775_v30 }
 0x127   : > { %877 = vmatpush.msrb.mxu1 %v772_v31 }
 0x129   : > { %878 = vmatpush.msrb.mxu1 %v769_v34 }
 0x187   : > { %v4692_v35 = vpop.f32.mrf.mxu1 }
 0x188   : > { %839 = vmatmul.f32.vlgmr.msra.gmra.mxu2 %v4692_v35  ;;  %859 = vmatmul.f32.vlgmr.msra.gmra.mxu3 %v4692_v35 }
 0x189   : > { %879 = vmatmul.f32.vlgmr.msrb.gmra.mxu1 %v4692_v35 }
 0x206   : > { %v880_v44 = vpop.f32.mrf.mxu1 }
 0x207   : > { %v4714_v45 = vadd.f32 %v880_v44, %v819_v43 }
 0x20b   : > { %v860_v38 = vpop.f32.mrf.mxu3  ;;  %v840_v41 = vpop.f32.mrf.mxu2 }
 0x20c   : > { %v861_v39 = vadd.f32 %v860_v38, %v818_v37  ;;  %v841_v42 = vadd.f32 %v840_v41, %v817_v40 }
 0x20e   : > { %1019 = vrot.lane.b32.xlu2 %v861_v39, %s5923_s24  ;;  %1034 = vrot.lane.b32.xlu1 %v861_v39, %s5935_s29 }
 0x20f   : > { %1022 = vrot.lane.b32.xlu0 %v861_v39, %s5933_s4 }
 0x216   : > { %1028 = vrot.lane.b32.xlu2 %v861_v39, %s5931_s20  ;;  %887 = vrot.lane.b32.xlu1 %v841_v42, %s5933_s4 }
 0x217   : > { %1025 = vrot.lane.b32.xlu0 %v861_v39, %s5925_s26 }
 0x21e   : > { %899 = vrot.lane.b32.xlu2 %v841_v42, %s5935_s29  ;;  %890 = vrot.lane.b32.xlu1 %v841_v42, %s5925_s26 }
 0x21f   : > { %1037 = vrot.lane.b32.xlu0 %v861_v39, %s5929_s3 }
 0x226   : > { %893 = vrot.lane.b32.xlu2 %v841_v42, %s5931_s20  ;;  %884 = vrot.lane.b32.xlu1 %v841_v42, %s5923_s24 }
 0x227   : > { %1031 = vrot.lane.b32.xlu0 %v861_v39, %s5927_s5 }
 0x22e   : > { %896 = vrot.lane.b32.xlu1 %v841_v42, %s5927_s5 }
 0x22f   : > { %902 = vrot.lane.b32.xlu0 %v841_v42, %s5929_s3 }
 0x236   : > { %1159 = vrot.lane.b32.xlu1 %v4714_v45, %s5925_s26  ;;  %s5968_s26 = smov 96  }
 0x237   : > { %1156 = vrot.lane.b32.xlu0 %v4714_v45, %s5933_s4 }
 0x268   : > { %v1020_v46 = vpop.permute.xlu2 %1019 }
 0x270   : > { %v1029_v49 = vpop.permute.xlu2 %1028 }
 0x278   : > { %v900_v56 = vpop.permute.xlu2 %899 }
 0x279   : > { %v918_v13 = vrot.slane %v900_v56, 4 }
 0x280   : > { %v1035_v47 = vpop.permute.xlu1 %1034  ;;  %v894_v10 = vpop.permute.xlu2 %893 }
 0x281   : > { %v1023_v48 = vpop.permute.xlu0 %1022  ;;  %v1052_v60 = vrot.slane %v1035_v47, 4  ;;  %v919_v20 = vsel %vm906_vm1, %v918_v13, %v894_v10 }
 0x282   : > { %v1040_v52 = vrot.slane %v1023_v48, 4  ;;  %v923_v28 = vperm.slane %v919_v20, %v4722_v59 }
 0x283   : > { %v1053_v4 = vsel %vm906_vm1, %v1052_v60, %v1029_v49 }
 0x284   : > { %v1041_v57 = vsel %vm906_vm1, %v1040_v52, %v861_v39  ;;  %v1057_v9 = vperm.slane %v1053_v4, %v4722_v59  ;;  %v944_v41 = vrot.slane %v923_v28, 4 }
 0x285   : > { %v1045_v62 = vperm.slane %v1041_v57, %v4722_v59 }
 0x286   : > { %v1078_v24 = vrot.slane %v1057_v9, 4 }
 0x287   : > { %v1066_v5 = vrot.slane %v1045_v62, 4 }
 0x288   : > { %v888_v50 = vpop.permute.xlu1 %887 }
 0x289   : > { %v1026_v51 = vpop.permute.xlu0 %1025  ;;  %v905_v0 = vrot.slane %v888_v50, 4 }
 0x28a   : > { %v1046_v53 = vrot.slane %v1026_v51, 4 }
 0x28b   : > { %v907_v7 = vsel %vm906_vm1, %v905_v0, %v841_v42 }
 0x28c   : > { %v1047_v58 = vsel %vm906_vm1, %v1046_v53, %v1020_v46  ;;  %v911_v14 = vperm.slane %v907_v7, %v4722_v59 }
 0x28d   : > { %v1051_v63 = vperm.slane %v1047_v58, %v4722_v59 }
 0x28e   : > { %v932_v27 = vrot.slane %v911_v14, 4 }
 0x28f   : > { %v1064_v6 = vrot.slane %v1051_v63, 4  ;;  %v1067_v11 = vsel %vm906_vm1, %v1051_v63, %v1066_v5 }
 0x290   : > { %v891_v61 = vpop.permute.xlu1 %890  ;;  %v1075_v21 = vperm.slane %v1067_v11, %v4728_v8 }
 0x291   : > { %v1038_v1 = vpop.permute.xlu0 %1037  ;;  %v912_v12 = vrot.slane %v891_v61, 4  ;;  %v1065_v17 = vsel %vm906_vm1, %v1064_v6, %v1045_v62 }
 0x292   : > { %v1058_v15 = vrot.slane %v1038_v1, 4  ;;  %v1071_v26 = vperm.slane %v1065_v17, %v4728_v8  ;;  %v1094_v31 = vrot.slane %v1075_v21, 4 }
 0x294   : > { %v1090_v37 = vrot.slane %v1071_v26, 4 }
 0x298   : > { %v885_v16 = vpop.permute.xlu1 %884 }
 0x299   : > { %v1032_v18 = vpop.permute.xlu0 %1031  ;;  %v913_v19 = vsel %vm906_vm1, %v912_v12, %v885_v16 }
 0x29a   : > { %v1059_v22 = vsel %vm906_vm1, %v1058_v15, %v1032_v18  ;;  %v917_v23 = vperm.slane %v913_v19, %v4722_v59 }
 0x29b   : > { %v1063_v25 = vperm.slane %v1059_v22, %v4722_v59 }
 0x29c   : > { %v933_v33 = vsel %vm906_vm1, %v917_v23, %v932_v27  ;;  %v930_v36 = vrot.slane %v917_v23, 4 }
 0x29d   : > { %v1076_v29 = vrot.slane %v1063_v25, 4  ;;  %v1079_v30 = vsel %vm906_vm1, %v1063_v25, %v1078_v24  ;;  %v941_v43 = vperm.slane %v933_v33, %v4728_v8 }
 0x29e   : > { %v1087_v32 = vperm.slane %v1079_v30, %v4728_v8  ;;  %v931_v50 = vsel %vm906_vm1, %v930_v36, %v911_v14 }
 0x29f   : > { %v1077_v34 = vsel %vm906_vm1, %v1076_v29, %v1057_v9  ;;  %v937_v63 = vperm.slane %v931_v50, %v4728_v8  ;;  %v960_v3 = vrot.slane %v941_v43, 4 }
 0x2a0   : > { %v1083_v38 = vperm.slane %v1077_v34, %v4728_v8  ;;  %v1092_v39 = vrot.slane %v1087_v32, 4  ;;  %v1095_v40 = vsel %vm906_vm1, %v1087_v32, %v1094_v31  ;;  %v897_v51 = vpop.permute.xlu1 %896 }
 0x2a1   : > { %v1108_v42 = vrot.slane %v1095_v40, 4  ;;  %v903_v44 = vpop.permute.xlu0 %902  ;;  %v956_v15 = vrot.slane %v937_v63, 4 }
 0x2a2   : > { %v1088_v46 = vrot.slane %v1083_v38, 4  ;;  %v1093_v47 = vsel %vm906_vm1, %v1092_v39, %v1075_v21  ;;  %v924_v48 = vrot.slane %v903_v44, 4  ;;  %v1091_v49 = vsel %vm906_vm1, %v1083_v38, %v1090_v37 }
 0x2a3   : > { %v1096_v52 = vrot.slane %v1093_v47, 4  ;;  %v1109_v53 = vsel %vm906_vm1, %v1108_v42, %v1091_v49  ;;  %v1110_v54 = vrot.slane %v1091_v49, 4 }
 0x2a4   : > { %v925_v55 = vsel %vm906_vm1, %v924_v48, %v897_v51  ;;  %v1089_v56 = vsel %vm906_vm1, %v1088_v46, %v1071_v26  ;;  %v1115_v57 = vperm.slane %v1109_v53, %v4722_v59 }
 0x2a5   : > { %v929_v58 = vperm.slane %v925_v55, %v4722_v59  ;;  %v1097_v60 = vsel %vm906_vm1, %v1096_v52, %v1089_v56  ;;  %v1098_v61 = vrot.slane %v1089_v56, 4  ;;  %v1111_v62 = vsel %vm906_vm1, %v1095_v40, %v1110_v54 }
 0x2a6   : > { %v1103_v0 = vperm.slane %v1097_v60, %v4722_v59  ;;  %v1120_v1 = vrot.slane %v1115_v57, 4  ;;  %v1119_v2 = vperm.slane %v1111_v62, %v4722_v59 }
 0x2a7   : > { %v942_v4 = vrot.slane %v929_v58, 4  ;;  %v945_v5 = vsel %vm906_vm1, %v929_v58, %v944_v41  ;;  %v1099_v6 = vsel %vm906_vm1, %v1093_v47, %v1098_v61 }
 0x2a8   : > { %v953_v7 = vperm.slane %v945_v5, %v4728_v8  ;;  %v1121_v9 = vsel %vm906_vm1, %v1120_v1, %v1103_v0  ;;  %v1122_v10 = vrot.slane %v1103_v0, 4  ;;  %v1107_v11 = vperm.slane %v1099_v6, %v4722_v59 }
 0x2a9   : > { %v943_v12 = vsel %vm906_vm1, %v942_v4, %v923_v28  ;;  %v1127_v13 = vperm.slane %v1121_v9, %v4728_v8  ;;  %v1132_v14 = vrot.slane %v1119_v2, 4 }
 0x2aa   : > { %v949_v16 = vperm.slane %v943_v12, %v4728_v8  ;;  %v958_v17 = vrot.slane %v953_v7, 4  ;;  %v961_v18 = vsel %vm906_vm1, %v953_v7, %v960_v3  ;;  %v1123_v19 = vsel %vm906_vm1, %v1115_v57, %v1122_v10 }
 0x2ab   : > { %3930 = vmatpush.xpose.msk.msrb.mxu2 %vm1286_vm2, %v1127_v13  ;;  %v1133_v20 = vsel %vm906_vm1, %v1132_v14, %v1107_v11  ;;  %v1144_v21 = vrot.slane %v1127_v13, 4  ;;  %v974_v26 = vrot.slane %v961_v18, 4  ;;  %v1131_v28 = vperm.slane %v1123_v19, %v4728_v8 }
 0x2ac   : > { %v954_v22 = vrot.slane %v949_v16, 4  ;;  %v957_v23 = vsel %vm906_vm1, %v949_v16, %v956_v15  ;;  %v959_v24 = vsel %vm906_vm1, %v958_v17, %v941_v43  ;;  %v1139_v29 = vperm.slane %v1133_v20, %v4728_v8 }
 0x2ad   : > { %v962_v25 = vrot.slane %v959_v24, 4  ;;  %v976_v27 = vrot.slane %v957_v23, 4  ;;  %v1145_v30 = vsel %vm906_vm1, 0.0, %v1144_v21  ;;  %v1134_v31 = vrot.slane %v1107_v11, 4 }
 0x2ae   : > { %v955_v32 = vsel %vm906_vm1, %v954_v22, %v937_v63  ;;  %3932 = vmatpush.xpose.msk.msrb.mxu3 %vm1286_vm2, %v1145_v30  ;;  %v1146_v34 = vrot.slane %v1131_v28, 4  ;;  %3938 = vmatpush.xpose.msk.msra.mxu1 %vm1286_vm2, %v1139_v29  ;;  %v975_v43 = vsel %vm906_vm1, %v974_v26, %v957_v23  ;;  %v1148_v53 = vrot.slane %v1139_v29, 4 }
 0x2af   : > { %v977_v33 = vsel %vm906_vm1, %v961_v18, %v976_v27  ;;  %3934 = vmatpush.xpose.msk.msra.mxu2 %vm1286_vm2, %v1131_v28  ;;  %v963_v36 = vsel %vm906_vm1, %v962_v25, %v955_v32  ;;  %v1135_v38 = vsel %vm906_vm1, %v1119_v2, %v1134_v31  ;;  %v964_v39 = vrot.slane %v955_v32, 4 }
 0x2b0   : > { %v985_v37 = vperm.slane %v977_v33, %v4722_v59  ;;  %v969_v40 = vperm.slane %v963_v36, %v4722_v59  ;;  %v1147_v41 = vsel %vm906_vm1, 0.0, %v1146_v34  ;;  %v1143_v42 = vperm.slane %v1135_v38, %v4728_v8  ;;  %v1160_v34 = vpop.permute.xlu1 %1159 }
 0x2b1   : > { %v981_v44 = vperm.slane %v975_v43, %v4722_v59  ;;  %v965_v46 = vsel %vm906_vm1, %v959_v24, %v964_v39  ;;  %v1149_v63 = vsel %vm906_vm1, 0.0, %v1148_v53 }
 0x2b2   : > { %3936 = vmatpush.xpose.msk.msra.mxu3 %vm1286_vm2, %v1147_v41  ;;  %v998_v47 = vrot.slane %v985_v37, 4  ;;  %v1150_v48 = vrot.slane %v1143_v42, 4  ;;  %v973_v49 = vperm.slane %v965_v46, %v4722_v59  ;;  %v988_v51 = vrot.slane %v969_v40, 4 }
 0x2b3   : > { %v986_v50 = vrot.slane %v981_v44, 4 }
 0x2b4   : > { %v1151_v52 = vsel %vm906_vm1, 0.0, %v1150_v48  ;;  %v999_v54 = vsel %vm906_vm1, %v998_v47, %v973_v49  ;;  %v1000_v55 = vrot.slane %v973_v49, 4  ;;  %v989_v61 = vsel %vm906_vm1, %v981_v44, %v988_v51 }
 0x2b5   : > { %3944 = vmatpush.xpose.msk.msrb.mxu1 %vm1286_vm2, %v1151_v52  ;;  %v987_v56 = vsel %vm906_vm1, %v986_v50, %v969_v40  ;;  %v1005_v57 = vperm.slane %v999_v54, %v4728_v8  ;;  %v997_v2 = vperm.slane %v989_v61, %v4728_v8 }
 0x2b6   : > { %v993_v58 = vperm.slane %v987_v56, %v4728_v8  ;;  %v1001_v60 = vsel %vm906_vm1, %v985_v37, %v1000_v55  ;;  %v1157_v37 = vpop.permute.xlu0 %1156 }
 0x2b7   : > { %3939 = vmatmul.msk.f32.vlgmr.msra.gmra.mxu1 %vm1286_vm2, %v1005_v57  ;;  %v1009_v62 = vperm.slane %v1001_v60, %v4728_v8  ;;  %v1012_v5 = vrot.slane %v997_v2, 4  ;;  %v1014_v7 = vrot.slane %v1005_v57, 4 }
 0x2b8   : > { %3931 = vmatmul.msk.f32.vlgmr.msrb.gmra.mxu2 %vm1286_vm2, %v993_v58  ;;  %v1010_v0 = vrot.slane %v993_v58, 4 }
 0x2b9   : > { %3940 = vmatpush.xpose.msk.msrb.mxu2 %vm1286_vm2, %v1149_v63  ;;  %v1016_v3 = vrot.slane %v1009_v62, 4  ;;  %v1013_v6 = vsel %vm906_vm1, 0.0, %v1012_v5  ;;  %v1015_v9 = vsel %vm906_vm1, 0.0, %v1014_v7  ;;  %v1174_v7 = vrot.slane %v1157_v37, 4 }
 0x2ba   : > { %v1011_v1 = vsel %vm906_vm1, 0.0, %v1010_v0 }
 0x2bb   : > { %3933 = vmatmul.msk.f32.vlgmr.msrb.gmra.mxu3 %vm1286_vm2, %v1011_v1  ;;  %v1017_v4 = vsel %vm906_vm1, 0.0, %v1016_v3 }
 0x2bc   : > { %3942 = vmatpush.xpose.msk.msrb.mxu3 %vm1286_vm2, %v1143_v42 }
 0x2bf   : > { %3945 = vmatmul.msk.f32.vlgmr.msrb.gmra.mxu1 %vm1286_vm2, %v1017_v4 }
 0x2c0   : > { %3935 = vmatmul.msk.f32.vlgmr.msra.gmra.mxu2 %vm1286_vm2, %v997_v2 }
 0x2c3   : > { %3937 = vmatmul.msk.f32.vlgmr.msra.gmra.mxu3 %vm1286_vm2, %v1013_v6 }
 0x2c8   : > { %3941 = vmatmul.msk.f32.vlgmr.msrb.gmra.mxu2 %vm1286_vm2, %v1015_v9 }
 0x2cb   : > { %3943 = vmatmul.msk.f32.vlgmr.msrb.gmra.mxu3 %vm1286_vm2, %v1009_v62 }
 0x334   : > { %v1414_v10 = vpop.f32.mrf.mxu1 }
 0x335   : > { %v1499_v11 = vmul.f32 0.25, %v1414_v10 }
 0x337   : > { %v1516_v12 = vsel %vm1503_vm3, %v1499_v11, -inf }
 0x338   : > { %1517 = vmax.xlane.f32.xlu2 %v1516_v12 }
 0x33b   : > { %v1310_v13 = vpop.f32.mrf.mxu2 }
 0x33c   : > { %v1495_v14 = vmul.f32 0.25, %v1310_v13  ;;  %v1492_v15 = vpop.f32.mrf.mxu1 }
 0x33d   : > { %v1502_v16 = vmul.f32 0.25, %v1492_v15 }
 0x33e   : > { %v1336_v17 = vpop.f32.mrf.mxu3  ;;  %v1504_v20 = vsel %vm1503_vm3, %v1495_v14, -inf }
 0x33f   : > { %v1496_v18 = vmul.f32 0.25, %v1336_v17  ;;  %v1525_v19 = vsel %vm1503_vm3, %v1502_v16, -inf }
 0x340   : > { %1526 = vmax.xlane.f32.xlu1 %v1525_v19  ;;  %1505 = vmax.xlane.f32.xlu2 %v1504_v20 }
 0x341   : > { %v1507_v21 = vsel %vm1503_vm3, %v1496_v18, -inf }
 0x342   : > { %1508 = vmax.xlane.f32.xlu0 %v1507_v21 }
 0x343   : > { %v1362_v22 = vpop.f32.mrf.mxu2 }
 0x344   : > { %v1497_v23 = vmul.f32 0.25, %v1362_v22 }
 0x346   : > { %v1388_v24 = vpop.f32.mrf.mxu3  ;;  %v1510_v26 = vsel %vm1503_vm3, %v1497_v23, -inf }
 0x347   : > { %v1498_v25 = vmul.f32 0.25, %v1388_v24 }
 0x349   : > { %v1513_v27 = vsel %vm1503_vm3, %v1498_v25, -inf }
 0x34a   : > { %1511 = vmax.xlane.f32.xlu0 %v1510_v26  ;;  %1514 = vmax.xlane.f32.xlu1 %v1513_v27 }
 0x34b   : > { %v1440_v28 = vpop.f32.mrf.mxu2 }
 0x34c   : > { %v4826_v29 = vmul.f32 0.25, %v1440_v28 }
 0x34e   : > { %v1519_v30 = vsel %vm1503_vm3, %v4826_v29, -inf  ;;  %v1466_v31 = vpop.f32.mrf.mxu3 }
 0x34f   : > { %1520 = vmax.xlane.f32.xlu2 %v1519_v30  ;;  %v1501_v32 = vmul.f32 0.25, %v1466_v31 }
 0x351   : > { %v1522_v33 = vsel %vm1503_vm3, %v1501_v32, -inf }
 0x357   : > { %1523 = vmax.xlane.f32.xlu2 %v1522_v33 }
 0x35e   : > { %1153 = vrot.lane.b32.xlu0 %v4714_v45, %s5923_s24  ;;  %s5967_s24 = smov 32  }
 0x363   : > { %1162 = vrot.lane.b32.xlu1 %v4714_v45, %s5931_s20 }
 0x366   : > { %1171 = vrot.lane.b32.xlu0 %v4714_v45, %s5929_s3 }
 0x36b   : > { %1165 = vrot.lane.b32.xlu1 %v4714_v45, %s5927_s5 }
 0x36f   : > { %1168 = vrot.lane.b32.xlu2 %v4714_v45, %s5935_s29 }
 0x3ab   : > { %v1518_v36 = vpop.xlane.xlu2 %1517 }
 0x3ac   : > { %v1532_v42 = vsub.f32 %v1499_v11, %v1518_v36  ;;  %v1180_v11 = vrot.slane %v1160_v34, 4 }
 0x3ae   : > { %v1544_v47 = vmul.f32 1.442695, %v1532_v42 }
 0x3b3   : > { %v1506_v38 = vpop.xlane.xlu2 %1505  ;;  %v1527_v39 = vpop.xlane.xlu1 %1526 }
 0x3b4   : > { %v1528_v40 = vsub.f32 %v1495_v14, %v1506_v38  ;;  %v1535_v56 = vsub.f32 %v1502_v16, %v1527_v39  ;;  %v1175_v14 = vsel %vm906_vm1, %v1174_v7, %v4714_v45 }
 0x3b5   : > { %v1509_v41 = vpop.xlane.xlu0 %1508  ;;  %v1179_v19 = vperm.slane %v1175_v14, %v4722_v59 }
 0x3b6   : > { %v1529_v43 = vsub.f32 %v1496_v18, %v1509_v41  ;;  %v1536_v44 = vmul.f32 1.442695, %v1528_v40  ;;  %v1550_v62 = vmul.f32 1.442695, %v1535_v56 }
 0x3b7   : > { %v1200_v24 = vrot.slane %v1179_v19, 4 }
 0x3b8   : > { %v1538_v46 = vmul.f32 1.442695, %v1529_v43  ;;  %4165 = vpow2.f32 %v1536_v44 }
 0x3ba   : > { %4167 = vpow2.f32 %v1538_v46 }
 0x3bb   : > { %4169 = vpow2.f32 %v1544_v47 }
 0x3bd   : > { %v1512_v48 = vpop.xlane.xlu0 %1511  ;;  %v1515_v49 = vpop.xlane.xlu1 %1514 }
 0x3be   : > { %v4841_v50 = vpop.eup %4165  ;;  %v1530_v51 = vsub.f32 %v1497_v23, %v1512_v48  ;;  %v1531_v52 = vsub.f32 %v1498_v25, %v1515_v49 }
 0x3bf   : > { %v1552_v53 = vsel %vm1503_vm3, %v4841_v50, 0.0 }
 0x3c0   : > { %v4845_v54 = vpop.eup %4167  ;;  %v1542_v55 = vmul.f32 1.442695, %v1531_v52  ;;  %1553 = vadd.xlane.f32.xlu2 %v1552_v53  ;;  %v1540_v58 = vmul.f32 1.442695, %v1530_v51 }
 0x3c1   : > { %v1555_v57 = vsel %vm1503_vm3, %v4845_v54, 0.0  ;;  %v4849_v61 = vpop.eup %4169 }
 0x3c2   : > { %v1521_v60 = vpop.xlane.xlu2 %1520  ;;  %1556 = vadd.xlane.f32.xlu0 %v1555_v57  ;;  %4171 = vpow2.f32 %v1542_v55  ;;  %v1564_v63 = vsel %vm1503_vm3, %v4849_v61, 0.0 }
 0x3c3   : > { %4173 = vpow2.f32 %v1540_v58  ;;  %v1533_v5 = vsub.f32 %v4826_v29, %v1521_v60 }
 0x3c4   : > { %4175 = vpow2.f32 %v1550_v62 }
 0x3c5   : > { %v1546_v13 = vmul.f32 1.442695, %v1533_v5 }
 0x3c8   : > { %1565 = vadd.xlane.f32.xlu2 %v1564_v63  ;;  %v4853_v0 = vpop.eup %4171 }
 0x3c9   : > { %v1561_v2 = vsel %vm1503_vm3, %v4853_v0, 0.0  ;;  %v4857_v4 = vpop.eup %4173 }
 0x3ca   : > { %v1524_v1 = vpop.xlane.xlu2 %1523  ;;  %1562 = vadd.xlane.f32.xlu1 %v1561_v2  ;;  %v4860_v9 = vpop.eup %4175  ;;  %v1558_v10 = vsel %vm1503_vm3, %v4857_v4, 0.0 }
 0x3cb   : > { %v1534_v3 = vsub.f32 %v1501_v32, %v1524_v1  ;;  %v1573_v16 = vsel %vm1503_vm3, %v4860_v9, 0.0 }
 0x3cd   : > { %v1548_v6 = vmul.f32 1.442695, %v1534_v3 }
 0x3cf   : > { %4177 = vpow2.f32 %v1548_v6 }
 0x3d0   : > { %v1154_v12 = vpop.permute.xlu0 %1153  ;;  %1559 = vadd.xlane.f32.xlu2 %v1558_v10  ;;  %4179 = vpow2.f32 %v1546_v13 }
 0x3d1   : > { %v1181_v15 = vsel %vm906_vm1, %v1180_v11, %v1154_v12 }
 0x3d2   : > { %v1169_v17 = vpop.permute.xlu2 %1168  ;;  %1574 = vadd.xlane.f32.xlu1 %v1573_v16  ;;  %v1185_v20 = vperm.slane %v1181_v15, %v4722_v59 }
 0x3d3   : > { %v1186_v22 = vrot.slane %v1169_v17, 4 }
 0x3d4   : > { %v1198_v25 = vrot.slane %v1185_v20, 4  ;;  %v1201_v28 = vsel %vm906_vm1, %v1185_v20, %v1200_v24 }
 0x3d5   : > { %v4869_v18 = vpop.eup %4177  ;;  %v1163_v21 = vpop.permute.xlu1 %1162  ;;  %v1209_v33 = vperm.slane %v1201_v28, %v4728_v8 }
 0x3d6   : > { %v1570_v23 = vsel %vm1503_vm3, %v4869_v18, 0.0  ;;  %v1187_v45 = vsel %vm906_vm1, %v1186_v22, %v1163_v21  ;;  %v4876_v27 = vpop.eup %4179  ;;  %v1199_v31 = vsel %vm906_vm1, %v1198_v25, %v1179_v19 }
 0x3d7   : > { %1571 = vadd.xlane.f32.xlu0 %v1570_v23  ;;  %v1191_v29 = vperm.slane %v1187_v45, %v4722_v59  ;;  %v1567_v36 = vsel %vm1503_vm3, %v4876_v27, 0.0  ;;  %v1205_v39 = vperm.slane %v1199_v31, %v4728_v8  ;;  %v1228_v42 = vrot.slane %v1209_v33, 4 }
 0x3d8   : > { %v1172_v26 = vpop.permute.xlu0 %1171 }
 0x3d9   : > { %v1192_v30 = vrot.slane %v1172_v26, 4  ;;  %v1212_v37 = vrot.slane %v1191_v29, 4  ;;  %v1224_v46 = vrot.slane %v1205_v39, 4 }
 0x3dd   : > { %v1166_v32 = vpop.permute.xlu1 %1165 }
 0x3de   : > { %v1193_v34 = vsel %vm906_vm1, %v1192_v30, %v1166_v32 }
 0x3df   : > { %v1197_v38 = vperm.slane %v1193_v34, %v4722_v59  ;;  %1568 = vadd.xlane.f32.xlu0 %v1567_v36 }
 0x3e1   : > { %v1210_v40 = vrot.slane %v1197_v38, 4  ;;  %v1213_v41 = vsel %vm906_vm1, %v1197_v38, %v1212_v37 }
 0x3e2   : > { %v1221_v43 = vperm.slane %v1213_v41, %v4728_v8 }
 0x3e3   : > { %v1211_v44 = vsel %vm906_vm1, %v1210_v40, %v1191_v29 }
 0x3e4   : > { %v1217_v47 = vperm.slane %v1211_v44, %v4728_v8  ;;  %v1226_v48 = vrot.slane %v1221_v43, 4  ;;  %v1229_v49 = vsel %vm906_vm1, %v1221_v43, %v1228_v42 }
 0x3e5   : > { %v1242_v51 = vrot.slane %v1229_v49, 4 }
 0x3e6   : > { %v1222_v52 = vrot.slane %v1217_v47, 4  ;;  %v1225_v53 = vsel %vm906_vm1, %v1217_v47, %v1224_v46  ;;  %v1227_v55 = vsel %vm906_vm1, %v1226_v48, %v1209_v33 }
 0x3e7   : > { %v1230_v56 = vrot.slane %v1227_v55, 4  ;;  %v1243_v57 = vsel %vm906_vm1, %v1242_v51, %v1225_v53  ;;  %v1244_v58 = vrot.slane %v1225_v53, 4 }
 0x3e8   : > { %v1223_v60 = vsel %vm906_vm1, %v1222_v52, %v1205_v39  ;;  %v1249_v62 = vperm.slane %v1243_v57, %v4722_v59 }
 0x3e9   : > { %v1232_v63 = vrot.slane %v1223_v60, 4  ;;  %v1245_v1 = vsel %vm906_vm1, %v1229_v49, %v1244_v58  ;;  %v1231_v2 = vsel %vm906_vm1, %v1230_v56, %v1223_v60 }
 0x3ea   : > { %v1253_v3 = vperm.slane %v1245_v1, %v4722_v59  ;;  %v1237_v5 = vperm.slane %v1231_v2, %v4722_v59  ;;  %v1254_v6 = vrot.slane %v1249_v62, 4 }
 0x3eb   : > { %v1233_v7 = vsel %vm906_vm1, %v1227_v55, %v1232_v63 }
 0x3ec   : > { %v1255_v10 = vsel %vm906_vm1, %v1254_v6, %v1237_v5  ;;  %v1256_v11 = vrot.slane %v1237_v5, 4  ;;  %v1241_v12 = vperm.slane %v1233_v7, %v4722_v59  ;;  %v1266_v13 = vrot.slane %v1253_v3, 4 }
 0x3ed   : > { %v1261_v14 = vperm.slane %v1255_v10, %v4728_v8 }
 0x3ee   : > { %v1257_v15 = vsel %vm906_vm1, %v1249_v62, %v1256_v11  ;;  %v1267_v16 = vsel %vm906_vm1, %v1266_v13, %v1241_v12  ;;  %v1268_v17 = vrot.slane %v1241_v12, 4 }
 0x3ef   : > { %3946 = vmatpush.msk.msra.mxu2 %vm5938_vm4, %v1261_v14  ;;  %v1265_v19 = vperm.slane %v1257_v15, %v4728_v8  ;;  %v1278_v20 = vrot.slane %v1261_v14, 4  ;;  %v1273_v21 = vperm.slane %v1267_v16, %v4728_v8 }
 0x3f0   : > { %v1269_v22 = vsel %vm906_vm1, %v1253_v3, %v1268_v17 }
 0x3f1   : > { %3950 = vmatpush.msk.msra.mxu1 %vm5938_vm4, %v1265_v19  ;;  %v1279_v23 = vsel %vm906_vm1, 0.0, %v1278_v20  ;;  %v1280_v45 = vrot.slane %v1265_v19, 4  ;;  %v1282_v24 = vrot.slane %v1273_v21, 4  ;;  %v1277_v49 = vperm.slane %v1269_v22, %v4728_v8 }
 0x3f2   : > { %3948 = vmatpush.msk.msra.mxu3 %vm5938_vm4, %v1279_v23 }
 0x3f3   : > { %v1281_v25 = vsel %vm906_vm1, 0.0, %v1280_v45  ;;  %v1283_v26 = vsel %vm906_vm1, 0.0, %v1282_v24  ;;  %v1284_v6 = vrot.slane %v1277_v49, 4 }
 0x3f4   : > { %3954 = vmatpush.msk.msrb.mxu3 %vm5938_vm4, %v1273_v21  ;;  %3952 = vmatpush.msk.msrb.mxu2 %vm5938_vm4, %v1281_v25 }
 0x3f5   : > { %3956 = vmatpush.msk.msrb.mxu1 %vm5938_vm4, %v1283_v26  ;;  %v1285_v19 = vsel %vm906_vm1, 0.0, %v1284_v6 }
 0x433   : > { %v1554_v28 = vpop.xlane.xlu2 %1553 }
 0x434   : > { %4181 = vrcp.f32 %v1554_v28  ;;  %v1585_v37 = vand.u32 2147483647, %v1554_v28  ;;  %v1587_v38 = vand.u32 2147483648, %v1554_v28  ;;  %vm1581_vm6 = vweird.f32 %v1554_v28 }
 0x435   : > { %v1557_v29 = vpop.xlane.xlu0 %1556 }
 0x436   : > { %4183 = vrcp.f32 %v1557_v29  ;;  %v1602_v42 = vand.u32 2147483648, %v1557_v29  ;;  %v1600_v44 = vand.u32 2147483647, %v1557_v29  ;;  %vm1596_vm8 = vweird.f32 %v1557_v29 }
 0x437   : > { %v1588_v48 = vor.u32 1.1754944e-38, %v1587_v38  ;;  %vm1586_vm10 = vcmp.eq.f32.partialorder %v1585_v37, 8.507059e+37 }
 0x438   : > { %v1603_v56 = vor.u32 1.1754944e-38, %v1602_v42  ;;  %vm1601_vm13 = vcmp.eq.f32.partialorder %v1600_v44, 8.507059e+37 }
 0x43a   : > { %v4182_v30 = vpop.eup %4181 }
 0x43b   : > { %v1577_v31 = vmul.f32 %v4182_v30, %v1554_v28  ;;  %v4919_v32 = vpop.xlane.xlu2 %1565  ;;  %vm1582_vm5 = vweird.f32 %v4182_v30 }
 0x43c   : > { %v4184_v33 = vpop.eup %4183  ;;  %4185 = vrcp.f32 %v4919_v32  ;;  %vm1583_vm9 = vmor %vm1581_vm6, %vm1582_vm5  ;;  %v1647_v2 = vand.u32 2147483648, %v4919_v32  ;;  %v1645_v10 = vand.u32 2147483647, %v4919_v32  ;;  %vm1641_vm15 = vweird.f32 %v4919_v32 }
 0x43d   : > { %v1592_v34 = vmul.f32 %v4184_v33, %v1557_v29  ;;  %v1578_v36 = vsub.f32 1.0, %v1577_v31  ;;  %v4922_v39 = vpop.xlane.xlu1 %1562  ;;  %vm1597_vm7 = vweird.f32 %v4184_v33 }
 0x43e   : > { %4187 = vrcp.f32 %v4922_v39  ;;  %vm1598_vm11 = vmor %vm1596_vm8, %vm1597_vm7  ;;  %v1630_v13 = vand.u32 2147483647, %v4922_v39  ;;  %v1632_v14 = vand.u32 2147483648, %v4922_v39  ;;  %v1648_v16 = vor.u32 1.1754944e-38, %v1647_v2 }
 0x43f   : > { %v1593_v40 = vsub.f32 1.0, %v1592_v34  ;;  %v1579_v41 = vmul.f32 %v4182_v30, %v1578_v36  ;;  %vm1646_vm7 = vcmp.eq.f32.partialorder %v1645_v10, 8.507059e+37  ;;  %vm1626_vm8 = vweird.f32 %v4922_v39 }
 0x440   : > { %v1633_v24 = vor.u32 1.1754944e-38, %v1632_v14 }
 0x441   : > { %v1594_v43 = vmul.f32 %v4184_v33, %v1593_v40  ;;  %v1580_v46 = vadd.f32 %v4182_v30, %v1579_v41 }
 0x442   : > { %v4186_v47 = vpop.eup %4185 }
 0x443   : > { %v1595_v51 = vadd.f32 %v4184_v33, %v1594_v43  ;;  %v1584_v52 = vsel %vm1583_vm9, %v4182_v30, %v1580_v46  ;;  %v1637_v53 = vmul.f32 %v4186_v47, %v4919_v32  ;;  %v4927_v55 = vpop.xlane.xlu2 %1559  ;;  %vm1642_vm14 = vweird.f32 %v4186_v47 }
 0x444   : > { %v1589_v57 = vsel %vm1586_vm10, %v1588_v48, %v1584_v52  ;;  %4189 = vrcp.f32 %v4927_v55  ;;  %v4188_v58 = vpop.eup %4187  ;;  %vm1643_vm5 = vmor %vm1641_vm15, %vm1642_vm14  ;;  %vm1631_vm10 = vcmp.eq.f32.partialorder %v1630_v13, 8.507059e+37  ;;  %v1617_v28 = vand.u32 2147483648, %v4927_v55 }
 0x445   : > { %v1599_v60 = vsel %vm1598_vm11, %v4184_v33, %v1595_v51  ;;  %v1638_v62 = vsub.f32 1.0, %v1637_v53  ;;  %v1590_v63 = vmul.f32 %v4841_v50, %v1589_v57  ;;  %v1622_v3 = vmul.f32 %v4188_v58, %v4922_v39  ;;  %v4933_v5 = vpop.xlane.xlu1 %1574 }
 0x446   : > { %v1604_v1 = vsel %vm1601_vm13, %v1603_v56, %v1599_v60  ;;  %4191 = vrcp.f32 %v4933_v5  ;;  %vm1627_vm6 = vweird.f32 %v4188_v58  ;;  %v1615_v33 = vand.u32 2147483647, %v4927_v55 }
 0x447   : > { %v1639_v7 = vmul.f32 %v4186_v47, %v1638_v62  ;;  %3947 = vmatmul.msk.f32.vlgmr.msra.gmra.mxu2 %vm1696_vm12, %v1590_v63  ;;  %v1623_v11 = vsub.f32 1.0, %v1622_v3  ;;  %v1605_v12 = vmul.f32 %v4845_v54, %v1604_v1  ;;  %vm1628_vm9 = vmor %vm1626_vm8, %vm1627_vm6  ;;  %vm1611_vm13 = vweird.f32 %v4927_v55 }
 0x448   : > { %3958 = vmatpush.msk.msra.mxu2 %vm5938_vm4, %v1277_v49  ;;  %v1690_v39 = vand.u32 2147483647, %v4933_v5  ;;  %v1692_v40 = vand.u32 2147483648, %v4933_v5  ;;  %v1618_v41 = vor.u32 1.1754944e-38, %v1617_v28  ;;  %vm1686_vm6 = vweird.f32 %v4933_v5 }
 0x449   : > { %v1640_v50 = vadd.f32 %v4186_v47, %v1639_v7  ;;  %v1624_v17 = vmul.f32 %v4188_v58, %v1623_v11  ;;  %3949 = vmatmul.msk.f32.vlgmr.msra.gmra.mxu3 %vm1696_vm12, %v1605_v12 }
 0x44a   : > { %v4190_v15 = vpop.eup %4189  ;;  %v4945_v20 = vpop.xlane.xlu0 %1571  ;;  %3960 = vmatpush.msk.msra.mxu3 %vm5938_vm4, %v1285_v19  ;;  %vm1691_vm8 = vcmp.eq.f32.partialorder %v1690_v39, 8.507059e+37  ;;  %v1693_v48 = vor.u32 1.1754944e-38, %v1692_v40  ;;  %v2073_v40 = vld [vmem:[%s5964_s6 + $0x78] sm:$0xff] }
 0x44b   : > { %v1644_v54 = vsel %vm1643_vm5, %v4186_v47, %v1640_v50  ;;  %v1607_v21 = vmul.f32 %v4190_v15, %v4927_v55  ;;  %4193 = vrcp.f32 %v4945_v20  ;;  %v1625_v23 = vadd.f32 %v4188_v58, %v1624_v17  ;;  %2078 = vmatpush.msrb.mxu0 %v2073_v40 }
 0x44c   : > { %v1649_v22 = vsel %vm1646_vm7, %v1648_v16, %v1644_v54  ;;  %v4192_v45 = vpop.eup %4191  ;;  %vm1612_vm11 = vweird.f32 %v4190_v15  ;;  %vm1616_vm5 = vcmp.eq.f32.partialorder %v1615_v33, 8.507059e+37  ;;  %v1677_v49 = vand.u32 2147483648, %v4945_v20 }
 0x44d   : > { %v1608_v25 = vsub.f32 1.0, %v1607_v21  ;;  %v1629_v26 = vsel %vm1628_vm9, %v4188_v58, %v1625_v23  ;;  %v1682_v29 = vmul.f32 %v4192_v45, %v4933_v5  ;;  %v1650_v30 = vmul.f32 %v4849_v61, %v1649_v22  ;;  %vm1613_vm14 = vmor %vm1611_vm13, %vm1612_vm11 }
 0x44e   : > { %v1634_v31 = vsel %vm1631_vm10, %v1633_v24, %v1629_v26  ;;  %vm1687_vm15 = vweird.f32 %v4192_v45  ;;  %v1675_v55 = vand.u32 2147483647, %v4945_v20  ;;  %vm1671_vm10 = vweird.f32 %v4945_v20 }
 0x44f   : > { %v1609_v32 = vmul.f32 %v4190_v15, %v1608_v25  ;;  %v1683_v34 = vsub.f32 1.0, %v1682_v29  ;;  %v1635_v36 = vmul.f32 %v4853_v0, %v1634_v31  ;;  %vm1688_vm7 = vmor %vm1686_vm6, %vm1687_vm15  ;;  %v1678_v62 = vor.u32 1.1754944e-38, %v1677_v49 }
 0x450   : > { %vm1676_vm13 = vcmp.eq.f32.partialorder %v1675_v55, 8.507059e+37 }
 0x451   : > { %v4194_v37 = vpop.eup %4193  ;;  %v1610_v38 = vadd.f32 %v4190_v15, %v1609_v32  ;;  %v1684_v42 = vmul.f32 %v4192_v45, %v1683_v34  ;;  %3953 = vmatmul.msk.f32.vlgmr.msrb.gmra.mxu2 %vm1696_vm12, %v1635_v36  ;;  %3955 = vmatmul.msk.f32.vlgmr.msrb.gmra.mxu3 %vm1696_vm12, %v1650_v30 }
 0x452   : > { %v1667_v61 = vmul.f32 %v4194_v37, %v4945_v20  ;;  %v1569_v43 = vpop.xlane.xlu0 %1568  ;;  %vm1672_vm9 = vweird.f32 %v4194_v37 }
 0x453   : > { %v1614_v0 = vsel %vm1613_vm14, %v4190_v15, %v1610_v38  ;;  %4195 = vrcp.f32 %v1569_v43  ;;  %v1685_v46 = vadd.f32 %v4192_v45, %v1684_v42  ;;  %vm1673_vm11 = vmor %vm1671_vm10, %vm1672_vm9  ;;  %v1662_v5 = vand.u32 2147483648, %v1569_v43 }
 0x454   : > { %v1619_v44 = vsel %vm1616_vm5, %v1618_v41, %v1614_v0  ;;  %v1668_v47 = vsub.f32 1.0, %v1667_v61  ;;  %v1660_v7 = vand.u32 2147483647, %v1569_v43  ;;  %vm1656_vm15 = vweird.f32 %v1569_v43  ;;  %v2072_v41 = vld [vmem:[%s5964_s6 + $0x70] sm:$0xff] }
 0x455   : > { %v1620_v51 = vmul.f32 %v4857_v4, %v1619_v44  ;;  %v1689_v52 = vsel %vm1688_vm7, %v4192_v45, %v1685_v46  ;;  %2079 = vmatpush.msrb.mxu0 %v2072_v41  ;;  %vm2047_vm7 = vcmask 261120   ;;  %vm2052_vm9 = vcmask 654336  }
 0x456   : > { %v1669_v53 = vmul.f32 %v4194_v37, %v1668_v47  ;;  %v1694_v56 = vsel %vm1691_vm8, %v1693_v48, %v1689_v52  ;;  %vm1661_vm6 = vcmp.eq.f32.partialorder %v1660_v7, 8.507059e+37  ;;  %v2070_v48 = vld [vmem:[%s5964_s6 + $0x60] sm:$0xff]  ;;  %vm2049_vm8 = vcmask 392192  }
 0x457   : > { %3951 = vmatmul.msk.f32.vlgmr.msra.gmra.mxu1 %vm1696_vm12, %v1620_v51  ;;  %v1695_v58 = vmul.f32 %v4860_v9, %v1694_v56  ;;  %v1663_v9 = vor.u32 1.1754944e-38, %v1662_v5  ;;  %vm2054_vm10 = vcmask 785408  }
 0x458   : > { %v1670_v57 = vadd.f32 %v4194_v37, %v1669_v53 }
 0x459   : > { %v4196_v60 = vpop.eup %4195  ;;  %3961 = vmatmul.msk.f32.vlgmr.msra.gmra.mxu3 %vm1696_vm12, %v1695_v58 }
 0x45a   : > { %v1674_v63 = vsel %vm1673_vm11, %v4194_v37, %v1670_v57  ;;  %v1652_v1 = vmul.f32 %v4196_v60, %v1569_v43  ;;  %vm1657_vm14 = vweird.f32 %v4196_v60  ;;  %v2071_v43 = vld [vmem:[%s5964_s6 + $0x68] sm:$0xff]  ;;  %v2069_v57 = vld [vmem:[%s5964_s6 + $0x58] sm:$0xff]  ;;  %vm5939_vm11 = vcmask 916480  }
 0x45b   : > { %v1679_v4 = vsel %vm1676_vm13, %v1678_v62, %v1674_v63  ;;  %vm1658_vm5 = vmor %vm1656_vm15, %vm1657_vm14  ;;  %2080 = vmatpush.msrb.mxu0 %v2071_v43 }
 0x45c   : > { %v1653_v2 = vsub.f32 1.0, %v1652_v1  ;;  %v1680_v3 = vmul.f32 %v4869_v18, %v1679_v4 }
 0x45d   : > { %2081 = vmatpush.msrb.mxu0 %v2070_v48 }
 0x45e   : > { %v1654_v6 = vmul.f32 %v4196_v60, %v1653_v2  ;;  %3959 = vmatmul.msk.f32.vlgmr.msra.gmra.mxu2 %vm1696_vm12, %v1680_v3  ;;  %v2068_v2 = vld [vmem:[%s5964_s6 + $0x50] sm:$0xff] }
 0x45f   : > { %2082 = vmatpush.msrb.mxu0 %v2069_v57 }
 0x460   : > { %v1655_v10 = vadd.f32 %v4196_v60, %v1654_v6 }
 0x461   : > { %2083 = vmatpush.msrb.mxu0 %v2068_v2 }
 0x462   : > { %v1659_v11 = vsel %vm1658_vm5, %v4196_v60, %v1655_v10 }
 0x463   : > { %v1664_v12 = vsel %vm1661_vm6, %v1663_v9, %v1659_v11 }
 0x464   : > { %v1665_v50 = vmul.f32 %v4876_v27, %v1664_v12 }
 0x466   : > { %3957 = vmatmul.msk.f32.vlgmr.msrb.gmra.mxu1 %vm1696_vm12, %v1665_v50 }
 0x4ca   : > { %v1721_v13 = vpop.f32.mrf.mxu2 }
 0x4cc   : > { %v1747_v14 = vpop.f32.mrf.mxu3 }
 0x4d4   : > { %v1773_v18 = vpop.f32.mrf.mxu1  ;;  %v1799_v15 = vpop.f32.mrf.mxu2 }
 0x4d5   : > { %v1825_v16 = vpop.f32.mrf.mxu3  ;;  %v1906_v17 = vrot.slane %v1773_v18, 4  ;;  %v1912_v19 = vrot.slane %v1799_v15, 4 }
 0x4d7   : > { %v1913_v20 = vsel %vm906_vm1, %v1912_v19, %v1747_v14  ;;  %v1907_v54 = vsel %vm906_vm1, %v1906_v17, %v1721_v13 }
 0x4d8   : > { %v1917_v21 = vperm.slane %v1913_v20, %v4722_v59  ;;  %v1911_v22 = vperm.slane %v1907_v54, %v4722_v59 }
 0x4da   : > { %v1930_v23 = vrot.slane %v1917_v21, 4  ;;  %v1932_v45 = vrot.slane %v1911_v22, 4 }
 0x4dc   : > { %v1931_v28 = vsel %vm906_vm1, %v1930_v23, %v1911_v22  ;;  %v1933_v29 = vsel %vm906_vm1, %v1917_v21, %v1932_v45 }
 0x4dd   : > { %v1903_v27 = vpop.f32.mrf.mxu3  ;;  %v1937_v36 = vperm.slane %v1931_v28, %v4728_v8  ;;  %v1941_v37 = vperm.slane %v1933_v29, %v4728_v8  ;;  %v2067_v28 = vld [vmem:[%s5964_s6 + $0x48] sm:$0xff]  ;;  %v2066_v29 = vld [vmem:[%s5964_s6 + $0x40] sm:$0xff] }
 0x4de   : > { %v1924_v25 = vrot.slane %v1903_v27, 4  ;;  %2084 = vmatpush.msrb.mxu0 %v2067_v28 }
 0x4df   : > { %v1956_v0 = vrot.slane %v1937_v36, 4  ;;  %v1960_v44 = vrot.slane %v1941_v37, 4 }
 0x4e0   : > { %2085 = vmatpush.msrb.mxu0 %v2066_v29  ;;  %v2183_v29 = vld [vmem:[%s5901_s12 + $0x20] sm:$0xff] }
 0x4e1   : > { %v1877_v24 = vpop.f32.mrf.mxu2 }
 0x4e2   : > { %v1918_v26 = vrot.slane %v1877_v24, 4 }
 0x4e3   : > { %v1851_v30 = vpop.f32.mrf.mxu1 }
 0x4e4   : > { %v1919_v31 = vsel %vm906_vm1, %v1918_v26, %v1825_v16  ;;  %v1925_v32 = vsel %vm906_vm1, %v1924_v25, %v1851_v30  ;;  %v2065_v30 = vld [vmem:[%s5964_s6 + $0x38] sm:$0xff] }
 0x4e5   : > { %v1923_v33 = vperm.slane %v1919_v31, %v4722_v59  ;;  %v1929_v34 = vperm.slane %v1925_v32, %v4722_v59  ;;  %v2064_v31 = vld [vmem:[%s5964_s6 + $0x30] sm:$0xff]  ;;  %2086 = vmatpush.msrb.mxu0 %v2065_v30  ;;  %v2063_v32 = vld [vmem:[%s5964_s6 + $0x28] sm:$0xff] }
 0x4e7   : > { %v1944_v38 = vrot.slane %v1923_v33, 4  ;;  %v1942_v39 = vrot.slane %v1929_v34, 4  ;;  %2087 = vmatpush.msrb.mxu0 %v2064_v31  ;;  %v2182_v31 = vld [vmem:[%s5901_s12 + $0x18] sm:$0xff] }
 0x4e9   : > { %v1943_v42 = vsel %vm906_vm1, %v1942_v39, %v1923_v33  ;;  %v1945_v61 = vsel %vm906_vm1, %v1929_v34, %v1944_v38  ;;  %v2062_v33 = vld [vmem:[%s5964_s6 + $0x20] sm:$0xff]  ;;  %2088 = vmatpush.msrb.mxu0 %v2063_v32  ;;  %v2061_v34 = vld [vmem:[%s5964_s6 + $0x18] sm:$0xff] }
 0x4ea   : > { %v1949_v46 = vperm.slane %v1943_v42, %v4728_v8  ;;  %v1953_v47 = vperm.slane %v1945_v61, %v4728_v8  ;;  %v2058_v38 = vld [vmem:[%s5964_s6] sm:$0xff] }
 0x4eb   : > { %2089 = vmatpush.msrb.mxu0 %v2062_v33 }
 0x4ec   : > { %v1954_v49 = vrot.slane %v1949_v46, 4  ;;  %v1957_v51 = vsel %vm906_vm1, %v1949_v46, %v1956_v0  ;;  %v1958_v52 = vrot.slane %v1953_v47, 4  ;;  %v1961_v53 = vsel %vm906_vm1, %v1953_v47, %v1960_v44 }
 0x4ed   : > { %v1974_v55 = vrot.slane %v1961_v53, 4  ;;  %v1976_v56 = vrot.slane %v1957_v51, 4  ;;  %2090 = vmatpush.msrb.mxu0 %v2061_v34 }
 0x4ee   : > { %v1955_v58 = vsel %vm906_vm1, %v1954_v49, %v1937_v36  ;;  %v1959_v60 = vsel %vm906_vm1, %v1958_v52, %v1941_v37  ;;  %v2060_v36 = vld [vmem:[%s5964_s6 + $0x10] sm:$0xff]  ;;  %v2059_v37 = vld [vmem:[%s5964_s6 + $0x8] sm:$0xff] }
 0x4ef   : > { %v1962_v62 = vrot.slane %v1959_v60, 4  ;;  %v1964_v63 = vrot.slane %v1955_v58, 4  ;;  %v1977_v1 = vsel %vm906_vm1, %v1961_v53, %v1976_v56  ;;  %v1975_v4 = vsel %vm906_vm1, %v1974_v55, %v1957_v51  ;;  %2091 = vmatpush.msrb.mxu0 %v2060_v36  ;;  %v4148_v53 = vld [vmem:[%s5896_s7] ss:$0 sm:$0xff] }
 0x4f0   : > { %v1985_v3 = vperm.slane %v1977_v1, %v4722_v59  ;;  %v1981_v5 = vperm.slane %v1975_v4, %v4722_v59 }
 0x4f1   : > { %v1965_v6 = vsel %vm906_vm1, %v1959_v60, %v1964_v63  ;;  %v1963_v7 = vsel %vm906_vm1, %v1962_v62, %v1955_v58  ;;  %2092 = vmatpush.msrb.mxu0 %v2059_v37  ;;  %v4316_v60 = vmov 128.0   ;;  %v2153_v62 = vld [vmem:[%s5899_s10 + $0x78] sm:$0xff]  ;;  %v2152_v63 = vld [vmem:[%s5899_s10 + $0x70] sm:$0xff] }
 0x4f2   : > { %v1973_v10 = vperm.slane %v1965_v6, %v4722_v59  ;;  %v1998_v9 = vrot.slane %v1985_v3, 4  ;;  %v1969_v11 = vperm.slane %v1963_v7, %v4722_v59  ;;  %v1986_v12 = vrot.slane %v1981_v5, 4  ;;  %2158 = vmatpush.msra.mxu1 %v2153_v62  ;;  %v4010_v62 = vld [vmem:[%s5960_s22 + $0x2f8] sm:$0xff] }
 0x4f3   : > { %2093 = vmatpush.msrb.mxu0 %v2058_v38  ;;  %4197 = vrcp.f32 %v4316_v60  ;;  %v4009_v60 = vld [vmem:[%s5960_s22 + $0x2f0] sm:$0xff] }
 0x4f4   : > { %v1999_v50 = vsel %vm906_vm1, %v1998_v9, %v1973_v10  ;;  %v1988_v13 = vrot.slane %v1969_v11, 4  ;;  %v1987_v14 = vsel %vm906_vm1, %v1986_v12, %v1969_v11  ;;  %v2000_v19 = vrot.slane %v1973_v10, 4  ;;  %2159 = vmatpush.msra.mxu1 %v2152_v63  ;;  %v4005_v63 = vld [vmem:[%s5960_s22 + $0x2d0] sm:$0xff] }
 0x4f5   : > { %v2005_v18 = vperm.slane %v1999_v50, %v4728_v8  ;;  %v1993_v16 = vperm.slane %v1987_v14, %v4728_v8  ;;  %v2151_v50 = vld [vmem:[%s5899_s10 + $0x68] sm:$0xff]  ;;  %v2149_v14 = vld [vmem:[%s5899_s10 + $0x58] sm:$0xff]  ;;  %2325 = vmatpush.msra.mxu0 %v4009_v60 }
 0x4f6   : > { %v1989_v15 = vsel %vm906_vm1, %v1981_v5, %v1988_v13  ;;  %v2001_v22 = vsel %vm906_vm1, %v1985_v3, %v2000_v19  ;;  %2160 = vmatpush.msra.mxu1 %v2151_v50  ;;  %v2150_v13 = vld [vmem:[%s5899_s10 + $0x60] sm:$0xff]  ;;  %v2144_v19 = vld [vmem:[%s5899_s10 + $0x30] sm:$0xff] }
 0x4f7   : > { %2031 = vrot.lane.b32.xlu2 %v2005_v18, %s5931_s20  ;;  %v1997_v17 = vperm.slane %v1989_v15, %v4728_v8  ;;  %v2010_v54 = vrot.slane %v1993_v16, 4  ;;  %v2009_v45 = vperm.slane %v2001_v22, %v4728_v8  ;;  %v2014_v27 = vrot.slane %v2005_v18, 4  ;;  %v2148_v18 = vld [vmem:[%s5899_s10 + $0x50] sm:$0xff]  ;;  %v2147_v15 = vld [vmem:[%s5899_s10 + $0x48] sm:$0xff]  ;;  %v3999_v50 = vld [vmem:[%s5960_s22 + $0x2a0] sm:$0xff]  ;;  %s650_s20 = sand.u32 1, %s4297_s27  }
 0x4f8   : > { %2161 = vmatpush.msra.mxu1 %v2150_v13  ;;  %v2140_v22 = vld [vmem:[%s5899_s10 + $0x10] sm:$0xff]  ;;  %v4000_v13 = vld [vmem:[%s5960_s22 + $0x2a8] sm:$0xff] }
 0x4f9   : > { %2023 = vrot.lane.b32.xlu1 %v1997_v17, %s5935_s29  ;;  %v2012_v20 = vrot.slane %v1997_v17, 4  ;;  %v2011_v23 = vsel %vm906_vm1, 0.0, %v2010_v54  ;;  %v2016_v24 = vrot.slane %v2009_v45, 4  ;;  %v2015_v25 = vsel %vm906_vm1, 0.0, %v2014_v27  ;;  %v4198_v1 = vpop.eup %4197  ;;  %v2145_v17 = vld [vmem:[%s5899_s10 + $0x38] sm:$0xff]  ;;  %v2142_v54 = vld [vmem:[%s5899_s10 + $0x20] sm:$0xff] }
 0x4fa   : > { %v2105_v4 = vmul.f32 128.0, %v4198_v1  ;;  %vm2109_vm13 = vweird.f32 %v4198_v1  ;;  %2162 = vmatpush.msra.mxu1 %v2149_v14  ;;  %v2186_v27 = vld [vmem:[%s5901_s12 + $0x38] sm:$0xff]  ;;  %v4001_v14 = vld [vmem:[%s5960_s22 + $0x2b0] sm:$0xff]  ;;  %s5978_s29 = sld [smem:[#allocation20_spill]] }
 0x4fb   : > { %v2013_v21 = vsel %vm906_vm1, 0.0, %v2012_v20  ;;  %v2017_v26 = vsel %vm906_vm1, 0.0, %v2016_v24  ;;  %v2143_v20 = vld [vmem:[%s5899_s10 + $0x28] sm:$0xff]  ;;  %v2185_v24 = vld [vmem:[%s5901_s12 + $0x30] sm:$0xff]  ;;  %2202 = vmatpush.msrb.mxu2 %v2186_v27 }
 0x4fc   : > { %2027 = vrot.lane.b32.xlu0 %v2013_v21, %s5927_s5  ;;  %v2106_v2 = vsub.f32 1.0, %v2105_v4  ;;  %2163 = vmatpush.msra.mxu1 %v2148_v18  ;;  %v2141_v21 = vld [vmem:[%s5899_s10 + $0x18] sm:$0xff]  ;;  %v4007_v4 = vld [vmem:[%s5960_s22 + $0x2e0] sm:$0xff]  ;;  %v3996_v18 = vld [vmem:[%s5960_s22 + $0x288] sm:$0xff] }
 0x4fd   : > { %2203 = vmatpush.msrb.mxu2 %v2185_v24  ;;  %v3989_v27 = vld [vmem:[%s5960_s22 + $0x250] sm:$0xff]  ;;  %v3984_v24 = vld [vmem:[%s5960_s22 + $0x228] sm:$0xff] }
 0x4fe   : > { %v2107_v3 = vmul.f32 %v4198_v1, %v2106_v2  ;;  %2164 = vmatpush.msra.mxu1 %v2147_v15  ;;  %v3997_v15 = vld [vmem:[%s5960_s22 + $0x290] sm:$0xff] }
 0x4ff   : > { %2019 = vrot.lane.b32.xlu2 %v2011_v23, %s5929_s3  ;;  %v2139_v23 = vld [vmem:[%s5899_s10 + $0x8] sm:$0xff]  ;;  %s5971_s3 = smov 48  }
 0x500   : > { %v2108_v5 = vadd.f32 %v4198_v1, %v2107_v3 }
 0x501   : > { %2039 = vrot.lane.b32.xlu1 %v2009_v45, %s5933_s4  ;;  %v2138_v45 = vld [vmem:[%s5899_s10] sm:$0xff]  ;;  %s664_s4 = scalar_lea.vmem %s5910_s21, %s4514_s25 }
 0x502   : > { %v5087_v6 = vsel %vm2109_vm13, %v4198_v1, %v2108_v5  ;;  %v4006_v1 = vld [vmem:[%s5960_s22 + $0x2d8] sm:$0xff] }
 0x503   : > { %2326 = vmatpush.msra.mxu0 %v4006_v1 }
 0x504   : > { %2035 = vrot.lane.b32.xlu0 %v2015_v25, %s5965_s28  ;;  %v2184_v25 = vld [vmem:[%s5901_s12 + $0x28] sm:$0xff] }
 0x505   : > { %2204 = vmatpush.msrb.mxu2 %v2184_v25  ;;  %v3985_v25 = vld [vmem:[%s5960_s22 + $0x230] sm:$0xff] }
 0x507   : > { %2043 = vrot.lane.b32.xlu2 %v2017_v26, %s5966_s0  ;;  %2205 = vmatpush.msrb.mxu2 %v2183_v29  ;;  %v3982_v29 = vld [vmem:[%s5960_s22 + $0x218] sm:$0xff] }
 0x509   : > { %2206 = vmatpush.msrb.mxu2 %v2182_v31  ;;  %v3978_v31 = vld [vmem:[%s5960_s22 + $0x1f8] sm:$0xff] }
 0x551   : > { %v2032_v39 = vpop.permute.xlu2 %2031 }
 0x559   : > { %v2020_v41 = vpop.permute.xlu2 %2019 }
 0x55a   : > { %v2046_v61 = vsel %vm1286_vm2, %v1993_v16, %v2020_v41  ;;  %v2146_v16 = vld [vmem:[%s5899_s10 + $0x40] sm:$0xff] }
 0x55b   : > { %2165 = vmatpush.msra.mxu1 %v2146_v16  ;;  %v3998_v16 = vld [vmem:[%s5960_s22 + $0x298] sm:$0xff] }
 0x55d   : > { %2166 = vmatpush.msra.mxu1 %v2145_v17  ;;  %v3993_v17 = vld [vmem:[%s5960_s22 + $0x270] sm:$0xff] }
 0x55f   : > { %2167 = vmatpush.msra.mxu1 %v2144_v19  ;;  %v3994_v19 = vld [vmem:[%s5960_s22 + $0x278] sm:$0xff] }
 0x561   : > { %v2044_v49 = vpop.permute.xlu2 %2043  ;;  %2168 = vmatpush.msra.mxu1 %v2143_v20  ;;  %v3995_v20 = vld [vmem:[%s5960_s22 + $0x280] sm:$0xff] }
 0x563   : > { %2169 = vmatpush.msra.mxu1 %v2142_v54  ;;  %v3990_v54 = vld [vmem:[%s5960_s22 + $0x258] sm:$0xff] }
 0x565   : > { %2170 = vmatpush.msra.mxu1 %v2141_v21  ;;  %v3991_v21 = vld [vmem:[%s5960_s22 + $0x260] sm:$0xff] }
 0x567   : > { %2171 = vmatpush.msra.mxu1 %v2140_v22  ;;  %v3992_v22 = vld [vmem:[%s5960_s22 + $0x268] sm:$0xff] }
 0x569   : > { %2172 = vmatpush.msra.mxu1 %v2139_v23  ;;  %v3987_v23 = vld [vmem:[%s5960_s22 + $0x240] sm:$0xff] }
 0x56b   : > { %v2024_v40 = vpop.permute.xlu1 %2023  ;;  %2173 = vmatpush.msra.mxu1 %v2138_v45  ;;  %v3988_v45 = vld [vmem:[%s5960_s22 + $0x248] sm:$0xff] }
 0x56c   : > { %v2048_v43 = vsel %vm2047_vm7, %v2046_v61, %v2024_v40 }
 0x56e   : > { %v2028_v42 = vpop.permute.xlu0 %2027 }
 0x56f   : > { %v2050_v0 = vsel %vm2049_vm8, %v2048_v43, %v2028_v42  ;;  %v4150_v42 = vld [vmem:[%s5898_s9] ss:$0 sm:$0xff] }
 0x570   : > { %v2051_v46 = vsel %vm743_vm0, %v2050_v0, %v2032_v39  ;;  %v4149_v39 = vld [vmem:[%s5897_s8] ss:$0 sm:$0xff]  ;;  %v2181_v0 = vld [vmem:[%s5901_s12 + $0x10] sm:$0xff] }
 0x571   : > { %2207 = vmatpush.msrb.mxu2 %v2181_v0  ;;  %v3967_v0 = vld [vmem:[%s5960_s22 + $0x1a0] sm:$0xff] }
 0x573   : > { %v2040_v47 = vpop.permute.xlu1 %2039 }
 0x576   : > { %v2036_v44 = vpop.permute.xlu0 %2035 }
 0x577   : > { %v2053_v48 = vsel %vm2052_vm9, %v2051_v46, %v2036_v44  ;;  %v2180_v44 = vld [vmem:[%s5901_s12 + $0x8] sm:$0xff]  ;;  %v2179_v46 = vld [vmem:[%s5901_s12] sm:$0xff] }
 0x578   : > { %v2055_v51 = vsel %vm2054_vm10, %v2053_v48, %v2040_v47  ;;  %2208 = vmatpush.msrb.mxu2 %v2180_v44  ;;  %v4151_v47 = vld [vmem:[%s5900_s11] ss:$0 sm:$0xff]  ;;  %v3968_v44 = vld [vmem:[%s5960_s22 + $0x1a8] sm:$0xff] }
 0x579   : > { %v2057_v52 = vsel %vm5939_vm11, %v2055_v51, %v2044_v49 }
 0x57a   : > { %2094 = vmatmul.f32.vlgmr.msrb.gmra.mxu0 %v2057_v52  ;;  %2209 = vmatpush.msrb.mxu2 %v2179_v46  ;;  %v4152_v52 = vld [vmem:[%s5902_s13] ss:$0 sm:$0xff] }
 0x57b   : > { %v3963_v46 = vld [vmem:[%s5960_s22 + $0x180] sm:$0xff] }
 0x57c   : > { %2345 = vmatpush.msra.mxu2 %v4010_v62  ;;  %v4153_v62 = vld [vmem:[%s5903_s14] ss:$0 sm:$0xff] }
 0x57e   : > { %2346 = vmatpush.msra.mxu2 %v4007_v4  ;;  %v4154_v4 = vld [vmem:[%s5904_s15] ss:$0 sm:$0xff] }
 0x5f7   : > { %v2095_v55 = vpop.f32.mrf.mxu0 }
 0x5f8   : > { %v2096_v56 = vadd.f32 %v4148_v53, %v2095_v55 }
 0x5fa   : > { %v2098_v57 = vadd.f32 %v2096_v56, %v4692_v35 }
 0x5fc   : > { %v2101_v58 = vsel %vm5938_vm4, %v2098_v57, 0.0 }
 0x5fd   : > { %2102 = vadd.xlane.f32.xlu0 %v2101_v58  ;;  %v4008_v58 = vld [vmem:[%s5960_s22 + $0x2e8] sm:$0xff] }
 0x5fe   : > { %2305 = vmatpush.msrb.mxu3 %v4008_v58 }
 0x600   : > { %2306 = vmatpush.msrb.mxu3 %v4005_v63 }
 0x670   : > { %v2103_v7 = vpop.xlane.xlu0 %2102 }
 0x671   : > { %v2111_v10 = vmul.f32 %v5087_v6, %v2103_v7 }
 0x673   : > { %v2112_v9 = vsub.f32 %v2098_v57, %v2111_v10 }
 0x675   : > { %v2113_v11 = vmul.f32 %v2112_v9, %v2112_v9 }
 0x677   : > { %v2114_v12 = vsel %vm5938_vm4, %v2113_v11, 0.0  ;;  %v4003_v11 = vld [vmem:[%s5960_s22 + $0x2c0] sm:$0xff] }
 0x678   : > { %2115 = vadd.xlane.f32.xlu1 %v2114_v12  ;;  %v4004_v12 = vld [vmem:[%s5960_s22 + $0x2c8] sm:$0xff]  ;;  %2327 = vmatpush.msra.mxu0 %v4003_v11 }
 0x679   : > { %2347 = vmatpush.msra.mxu2 %v4004_v12 }
 0x67a   : > { %2328 = vmatpush.msra.mxu0 %v4000_v13 }
 0x67b   : > { %2348 = vmatpush.msra.mxu2 %v4001_v14 }
 0x67c   : > { %2329 = vmatpush.msra.mxu0 %v3997_v15 }
 0x67d   : > { %2349 = vmatpush.msra.mxu2 %v3998_v16 }
 0x67e   : > { %2330 = vmatpush.msra.mxu0 %v3994_v19 }
 0x67f   : > { %2350 = vmatpush.msra.mxu2 %v3995_v20 }
 0x680   : > { %2331 = vmatpush.msra.mxu0 %v3991_v21 }
 0x681   : > { %2351 = vmatpush.msra.mxu2 %v3992_v22 }
 0x682   : > { %2332 = vmatpush.msra.mxu0 %v3988_v45 }
 0x683   : > { %2352 = vmatpush.msra.mxu2 %v3989_v27 }
 0x684   : > { %2333 = vmatpush.msra.mxu0 %v3985_v25 }
 0x686   : > { %2334 = vmatpush.msra.mxu0 %v3982_v29 }
 0x6eb   : > { %v2116_v26 = vpop.xlane.xlu1 %2115 }
 0x6ec   : > { %v2117_v28 = vmul.f32 %v2116_v26, %v5087_v6  ;;  %v3986_v26 = vld [vmem:[%s5960_s22 + $0x238] sm:$0xff] }
 0x6ed   : > { %2353 = vmatpush.msra.mxu2 %v3986_v26 }
 0x6ee   : > { %v2118_v30 = vadd.f32 1e-05, %v2117_v28  ;;  %v3981_v28 = vld [vmem:[%s5960_s22 + $0x210] sm:$0xff] }
 0x6f0   : > { %4199 = vrsqrt.f32 %v2118_v30  ;;  %vm2125_vm15 = vweird.f32 %v2118_v30 }
 0x6f6   : > { %v4200_v32 = vpop.eup %4199 }
 0x6f7   : > { %v2120_v33 = vmul.f32 %v4200_v32, %v2118_v30  ;;  %vm2126_vm14 = vweird.f32 %v4200_v32  ;;  %v3983_v30 = vld [vmem:[%s5960_s22 + $0x220] sm:$0xff] }
 0x6f8   : > { %vm2127_vm5 = vmor %vm2125_vm15, %vm2126_vm14  ;;  %2354 = vmatpush.msra.mxu2 %v3983_v30 }
 0x6f9   : > { %v2121_v34 = vmul.f32 %v4200_v32, %v2120_v33  ;;  %v3980_v33 = vld [vmem:[%s5960_s22 + $0x208] sm:$0xff] }
 0x6fa   : > { %2355 = vmatpush.msra.mxu2 %v3980_v33 }
 0x6fb   : > { %v2122_v36 = vmul.f32 0.5, %v2121_v34  ;;  %v3975_v34 = vld [vmem:[%s5960_s22 + $0x1e0] sm:$0xff] }
 0x6fd   : > { %v2123_v37 = vsub.f32 1.5, %v2122_v36  ;;  %v3976_v36 = vld [vmem:[%s5960_s22 + $0x1e8] sm:$0xff] }
 0x6ff   : > { %v2124_v38 = vmul.f32 %v4200_v32, %v2123_v37  ;;  %v3977_v37 = vld [vmem:[%s5960_s22 + $0x1f0] sm:$0xff] }
 0x700   : > { %2356 = vmatpush.msra.mxu2 %v3977_v37 }
 0x701   : > { %v2128_v40 = vsel %vm2127_vm5, %v4200_v32, %v2124_v38  ;;  %v3979_v32 = vld [vmem:[%s5960_s22 + $0x200] sm:$0xff]  ;;  %v3972_v38 = vld [vmem:[%s5960_s22 + $0x1c8] sm:$0xff] }
 0x702   : > { %v2129_v41 = vmul.f32 %v2128_v40, %v2112_v9  ;;  %v4002_v9 = vld [vmem:[%s5960_s22 + $0x2b8] sm:$0xff]  ;;  %2335 = vmatpush.msra.mxu0 %v3979_v32 }
 0x703   : > { %2307 = vmatpush.msrb.mxu3 %v4002_v9  ;;  %v3974_v40 = vld [vmem:[%s5960_s22 + $0x1d8] sm:$0xff] }
 0x704   : > { %v2133_v61 = vmul.f32 %v4149_v39, %v2129_v41  ;;  %2336 = vmatpush.msra.mxu0 %v3976_v36  ;;  %v3973_v39 = vld [vmem:[%s5960_s22 + $0x1d0] sm:$0xff]  ;;  %2357 = vmatpush.msra.mxu2 %v3974_v40 }
 0x705   : > { %2308 = vmatpush.msrb.mxu3 %v3999_v50  ;;  %v3969_v41 = vld [vmem:[%s5960_s22 + $0x1b0] sm:$0xff] }
 0x706   : > { %v2137_v43 = vadd.f32 %v4150_v42, %v2133_v61  ;;  %2337 = vmatpush.msra.mxu0 %v3973_v39  ;;  %v3970_v42 = vld [vmem:[%s5960_s22 + $0x1b8] sm:$0xff]  ;;  %v3971_v61 = vld [vmem:[%s5960_s22 + $0x1c0] sm:$0xff] }
 0x707   : > { %2309 = vmatpush.msrb.mxu3 %v3996_v18  ;;  %2358 = vmatpush.msra.mxu2 %v3971_v61 }
 0x708   : > { %2174 = vmatmul.f32.vlgmr.msra.gmra.mxu1 %v2137_v43  ;;  %2338 = vmatpush.msra.mxu0 %v3970_v42 }
 0x709   : > { %2310 = vmatpush.msrb.mxu3 %v3993_v17  ;;  %2359 = vmatpush.msra.mxu2 %v3968_v44 }
 0x70a   : > { %2339 = vmatpush.msra.mxu0 %v3967_v0 }
 0x70b   : > { %2311 = vmatpush.msrb.mxu3 %v3990_v54 }
 0x70d   : > { %2312 = vmatpush.msrb.mxu3 %v3987_v23 }
 0x70f   : > { %2313 = vmatpush.msrb.mxu3 %v3984_v24 }
 0x711   : > { %2314 = vmatpush.msrb.mxu3 %v3981_v28 }
 0x713   : > { %2315 = vmatpush.msrb.mxu3 %v3978_v31 }
 0x715   : > { %2316 = vmatpush.msrb.mxu3 %v3975_v34 }
 0x717   : > { %2317 = vmatpush.msrb.mxu3 %v3972_v38 }
 0x719   : > { %2318 = vmatpush.msrb.mxu3 %v3969_v41 }
 0x785   : > { %v2175_v48 = vpop.f32.mrf.mxu1 }
 0x786   : > { %v2176_v49 = vadd.f32 %v4151_v47, %v2175_v48  ;;  %v3964_v47 = vld [vmem:[%s5960_s22 + $0x188] sm:$0xff]  ;;  %v3965_v48 = vld [vmem:[%s5960_s22 + $0x190] sm:$0xff] }
 0x787   : > { %2340 = vmatpush.msra.mxu0 %v3964_v47  ;;  %2360 = vmatpush.msra.mxu2 %v3965_v48 }
 0x788   : > { %v2178_v51 = vmax.f32 %v2176_v49, 0.0 }
 0x78a   : > { %3962 = vmatmul.msk.f32.vlgmr.msrb.gmra.mxu2 %vm743_vm0, %v2178_v51 }
 0x80d   : > { %v2211_v53 = vpop.f32.mrf.mxu2 }
 0x80e   : > { %v2212_v55 = vadd.f32 %v4152_v52, %v2211_v53 }
 0x810   : > { %v2214_v56 = vadd.f32 %v2212_v55, %v2137_v43  ;;  %v3966_v43 = vld [vmem:[%s5960_s22 + $0x198] sm:$0xff] }
 0x811   : > { %2319 = vmatpush.msrb.mxu3 %v3966_v43 }
 0x812   : > { %v2217_v57 = vsel %vm5938_vm4, %v2214_v56, 0.0 }
 0x813   : > { %2218 = vadd.xlane.f32.xlu2 %v2217_v57  ;;  %2320 = vmatpush.msrb.mxu3 %v3963_v46 }
 0x886   : > { %v2219_v2 = vpop.xlane.xlu2 %2218 }
 0x887   : > { %v2220_v3 = vmul.f32 %v2219_v2, %v5087_v6 }
 0x889   : > { %v5191_v5 = vsub.f32 %v2214_v56, %v2220_v3 }
 0x88b   : > { %v2222_v7 = vmul.f32 %v5191_v5, %v5191_v5 }
 0x88d   : > { %v2223_v10 = vsel %vm5938_vm4, %v2222_v7, 0.0  ;;  %v4011_v7 = vld [vmem:[%s5963_s1 + $0x3] sm:$0x7] }
 0x88e   : > { %2224 = vadd.xlane.f32.xlu0 %v2223_v10  ;;  %v2300_v10 = vperm.slane %v4011_v7, 1  ;;  %v2299_v11 = vperm.slane %v4011_v7, 0  ;;  %v2301_v13 = vperm.slane %v4011_v7, 2 }
 0x901   : > { %v2225_v49 = vpop.xlane.xlu0 %2224 }
 0x902   : > { %v2226_v51 = vmul.f32 %v2225_v49, %v5087_v6 }
 0x904   : > { %v2227_v52 = vadd.f32 1e-05, %v2226_v51 }
 0x906   : > { %4201 = vrsqrt.f32 %v2227_v52  ;;  %vm2234_vm13 = vweird.f32 %v2227_v52 }
 0x90c   : > { %v4202_v53 = vpop.eup %4201 }
 0x90d   : > { %v2229_v55 = vmul.f32 %v4202_v53, %v2227_v52  ;;  %vm2235_vm6 = vweird.f32 %v4202_v53 }
 0x90e   : > { %vm2236_vm14 = vmor %vm2234_vm13, %vm2235_vm6 }
 0x90f   : > { %v2230_v56 = vmul.f32 %v4202_v53, %v2229_v55 }
 0x911   : > { %v2231_v57 = vmul.f32 0.5, %v2230_v56 }
 0x913   : > { %v2232_v58 = vsub.f32 1.5, %v2231_v57 }
 0x915   : > { %v2233_v60 = vmul.f32 %v4202_v53, %v2232_v58 }
 0x917   : > { %v2237_v63 = vsel %vm2236_vm14, %v4202_v53, %v2233_v60 }
 0x918   : > { %v2238_v1 = vmul.f32 %v2237_v63, %v5191_v5 }
 0x91a   : > { %v2242_v2 = vmul.f32 %v4153_v62, %v2238_v1 }
 0x91c   : > { %v5330_v3 = vadd.f32 %v4154_v4, %v2242_v2 }
 0x91e   : > { %2321 = vmatmul.f32.vlgmr.msrb.gmra.mxu3 %v5330_v3  ;;  %2341 = vmatmul.f32.vlgmr.msra.gmra.mxu0 %v5330_v3 }
 0x91f   : > { %2361 = vmatmul.f32.vlgmr.msra.gmra.mxu2 %v5330_v3 }
 0x99b   : > { %v2342_v9 = vpop.f32.mrf.mxu0 }
 0x99c   : > { %v2343_v5 = vadd.f32 %v2342_v9, %v2300_v10 }
 0x99e   : > { %2515 = vrot.lane.b32.xlu0 %v2343_v5, %s5967_s24  ;;  %2506 = vrot.lane.b32.xlu2 %v2343_v5, %s5965_s28 }
 0x99f   : > { %2503 = vrot.lane.b32.xlu1 %v2343_v5, %s5968_s26 }
 0x9a1   : > { %v2322_v12 = vpop.f32.mrf.mxu3 }
 0x9a2   : > { %v5344_v50 = vadd.f32 %v2322_v12, %v2299_v11  ;;  %v2362_v14 = vpop.f32.mrf.mxu2 }
 0x9a3   : > { %v5357_v18 = vadd.f32 %v2362_v14, %v2301_v13 }
 0x9a6   : > { %2500 = vrot.lane.b32.xlu0 %v2343_v5, %s5966_s0  ;;  %2509 = vrot.lane.b32.xlu2 %v2343_v5, %s5969_s23 }
 0x9a7   : > { %2518 = vrot.lane.b32.xlu1 %v2343_v5, %s5970_s30 }
 0x9ae   : > { %2381 = vrot.lane.b32.xlu2 %v5344_v50, %s5967_s24  ;;  %2372 = vrot.lane.b32.xlu0 %v5344_v50, %s5965_s28 }
 0x9af   : > { %2512 = vrot.lane.b32.xlu1 %v2343_v5, %s5971_s3 }
 0x9b6   : > { %2375 = vrot.lane.b32.xlu2 %v5344_v50, %s5969_s23  ;;  %2366 = vrot.lane.b32.xlu0 %v5344_v50, %s5966_s0 }
 0x9b7   : > { %2369 = vrot.lane.b32.xlu1 %v5344_v50, %s5968_s26 }
 0x9be   : > { %2637 = vrot.lane.b32.xlu2 %v5357_v18, %s5968_s26  ;;  %2378 = vrot.lane.b32.xlu0 %v5344_v50, %s5971_s3 }
 0x9bf   : > { %2384 = vrot.lane.b32.xlu1 %v5344_v50, %s5970_s30 }
 0x9c6   : > { %2649 = vrot.lane.b32.xlu0 %v5357_v18, %s5967_s24 }
 0x9f8   : > { %v2507_v15 = vpop.permute.xlu2 %2506 }
 0x9f9   : > { %v2527_v21 = vrot.slane %v2507_v15, 4 }
 0xa00   : > { %v2510_v20 = vpop.permute.xlu2 %2509 }
 0xa08   : > { %v2382_v30 = vpop.permute.xlu2 %2381 }
 0xa09   : > { %v2399_v55 = vrot.slane %v2382_v30, 4 }
 0xa10   : > { %v2516_v16 = vpop.permute.xlu0 %2515  ;;  %v2376_v56 = vpop.permute.xlu2 %2375 }
 0xa11   : > { %v2504_v17 = vpop.permute.xlu1 %2503  ;;  %v2533_v22 = vrot.slane %v2516_v16, 4 }
 0xa12   : > { %v2521_v19 = vrot.slane %v2504_v17, 4 }
 0xa13   : > { %v2534_v26 = vsel %vm906_vm1, %v2533_v22, %v2510_v20 }
 0xa14   : > { %v2522_v54 = vsel %vm906_vm1, %v2521_v19, %v2343_v5  ;;  %v2538_v31 = vperm.slane %v2534_v26, %v4722_v59  ;;  %v2400_v5 = vsel %vm906_vm1, %v2399_v55, %v2376_v56 }
 0xa15   : > { %v2526_v45 = vperm.slane %v2522_v54, %v4722_v59 }
 0xa16   : > { %v2559_v40 = vrot.slane %v2538_v31, 4 }
 0xa17   : > { %v2547_v28 = vrot.slane %v2526_v45, 4 }
 0xa18   : > { %v2501_v23 = vpop.permute.xlu0 %2500 }
 0xa19   : > { %v2528_v27 = vsel %vm906_vm1, %v2527_v21, %v2501_v23  ;;  %v2519_v24 = vpop.permute.xlu1 %2518 }
 0xa1a   : > { %v2532_v25 = vperm.slane %v2528_v27, %v4722_v59  ;;  %v2539_v33 = vrot.slane %v2519_v24, 4  ;;  %v2404_v24 = vperm.slane %v2400_v5, %v4722_v59 }
 0xa1c   : > { %v2545_v29 = vrot.slane %v2532_v25, 4  ;;  %v2548_v32 = vsel %vm906_vm1, %v2532_v25, %v2547_v28 }
 0xa1d   : > { %v2556_v38 = vperm.slane %v2548_v32, %v4728_v8 }
 0xa1e   : > { %v2546_v36 = vsel %vm906_vm1, %v2545_v29, %v2526_v45 }
 0xa1f   : > { %v2552_v42 = vperm.slane %v2546_v36, %v4728_v8  ;;  %v2575_v0 = vrot.slane %v2556_v38, 4 }
 0xa20   : > { %v2373_v34 = vpop.permute.xlu0 %2372 }
 0xa21   : > { %v2513_v37 = vpop.permute.xlu1 %2512  ;;  %v2393_v47 = vrot.slane %v2373_v34, 4  ;;  %v2571_v48 = vrot.slane %v2552_v42, 4 }
 0xa22   : > { %v2540_v39 = vsel %vm906_vm1, %v2539_v33, %v2513_v37 }
 0xa23   : > { %v2544_v41 = vperm.slane %v2540_v39, %v4722_v59 }
 0xa25   : > { %v2557_v61 = vrot.slane %v2544_v41, 4  ;;  %v2560_v43 = vsel %vm906_vm1, %v2544_v41, %v2559_v40 }
 0xa26   : > { %v2568_v44 = vperm.slane %v2560_v43, %v4728_v8 }
 0xa27   : > { %v2558_v46 = vsel %vm906_vm1, %v2557_v61, %v2538_v31 }
 0xa28   : > { %v2564_v49 = vperm.slane %v2558_v46, %v4728_v8  ;;  %v2573_v51 = vrot.slane %v2568_v44, 4  ;;  %v2576_v52 = vsel %vm906_vm1, %v2568_v44, %v2575_v0  ;;  %v2367_v53 = vpop.permute.xlu0 %2366 }
 0xa29   : > { %v2589_v57 = vrot.slane %v2576_v52, 4  ;;  %v2394_v58 = vsel %vm906_vm1, %v2393_v47, %v2367_v53  ;;  %v2370_v60 = vpop.permute.xlu1 %2369 }
 0xa2a   : > { %v2569_v62 = vrot.slane %v2564_v49, 4  ;;  %v2572_v63 = vsel %vm906_vm1, %v2564_v49, %v2571_v48  ;;  %v2574_v1 = vsel %vm906_vm1, %v2573_v51, %v2556_v38  ;;  %v2398_v4 = vperm.slane %v2394_v58, %v4722_v59 }
 0xa2b   : > { %v2577_v2 = vrot.slane %v2574_v1, 4  ;;  %v2590_v7 = vsel %vm906_vm1, %v2589_v57, %v2572_v63  ;;  %v2591_v10 = vrot.slane %v2572_v63, 4  ;;  %v2387_v9 = vrot.slane %v2370_v60, 4 }
 0xa2c   : > { %v2570_v11 = vsel %vm906_vm1, %v2569_v62, %v2552_v42  ;;  %v2596_v12 = vperm.slane %v2590_v7, %v4722_v59  ;;  %v2411_v22 = vrot.slane %v2398_v4, 4  ;;  %v2425_v42 = vrot.slane %v2404_v24, 4 }
 0xa2d   : > { %v2579_v13 = vrot.slane %v2570_v11, 4  ;;  %v2592_v14 = vsel %vm906_vm1, %v2576_v52, %v2591_v10  ;;  %v2388_v15 = vsel %vm906_vm1, %v2387_v9, %v5344_v50  ;;  %v2578_v16 = vsel %vm906_vm1, %v2577_v2, %v2570_v11 }
 0xa2e   : > { %v2600_v17 = vperm.slane %v2592_v14, %v4722_v59  ;;  %v2392_v19 = vperm.slane %v2388_v15, %v4722_v59  ;;  %v2584_v20 = vperm.slane %v2578_v16, %v4722_v59  ;;  %v2601_v54 = vrot.slane %v2596_v12, 4 }
 0xa2f   : > { %v2580_v21 = vsel %vm906_vm1, %v2574_v1, %v2579_v13 }
 0xa30   : > { %v2413_v23 = vrot.slane %v2392_v19, 4  ;;  %v2602_v45 = vsel %vm906_vm1, %v2601_v54, %v2584_v20  ;;  %v2603_v27 = vrot.slane %v2584_v20, 4  ;;  %v2588_v26 = vperm.slane %v2580_v21, %v4722_v59  ;;  %v2379_v34 = vpop.permute.xlu0 %2378 }
 0xa31   : > { %v2385_v25 = vpop.permute.xlu1 %2384  ;;  %v2608_v50 = vperm.slane %v2602_v45, %v4728_v8  ;;  %v2613_v28 = vrot.slane %v2600_v17, 4  ;;  %v2412_v32 = vsel %vm906_vm1, %v2411_v22, %v2392_v19 }
 0xa32   : > { %v2414_v29 = vsel %vm906_vm1, %v2398_v4, %v2413_v23  ;;  %v2405_v30 = vrot.slane %v2385_v25, 4  ;;  %v2604_v31 = vsel %vm906_vm1, %v2596_v12, %v2603_v27  ;;  %v2615_v41 = vrot.slane %v2588_v26, 4 }
 0xa33   : > { %v2422_v33 = vperm.slane %v2414_v29, %v4728_v8  ;;  %4012 = vmatpush.xpose.msk.msrb.mxu1 %vm1286_vm2, %v2608_v50  ;;  %v2612_v36 = vperm.slane %v2604_v31, %v4728_v8  ;;  %v2614_v37 = vsel %vm906_vm1, %v2613_v28, %v2588_v26  ;;  %v2625_v40 = vrot.slane %v2608_v50, 4 }
 0xa34   : > { %v2406_v38 = vsel %vm906_vm1, %v2405_v30, %v2379_v34  ;;  %v2620_v39 = vperm.slane %v2614_v37, %v4728_v8  ;;  %v2418_v0 = vperm.slane %v2412_v32, %v4728_v8  ;;  %v2616_v46 = vsel %vm906_vm1, %v2600_v17, %v2615_v41 }
 0xa35   : > { %v2410_v61 = vperm.slane %v2406_v38, %v4722_v59  ;;  %v2627_v43 = vrot.slane %v2612_v36, 4  ;;  %v2626_v44 = vsel %vm906_vm1, 0.0, %v2625_v40  ;;  %v2624_v49 = vperm.slane %v2616_v46, %v4728_v8 }
 0xa36   : > { %4020 = vmatpush.xpose.msk.msrb.mxu2 %vm1286_vm2, %v2620_v39  ;;  %4014 = vmatpush.xpose.msk.msra.mxu3 %vm1286_vm2, %v2626_v44  ;;  %v2441_v52 = vrot.slane %v2422_v33, 4  ;;  %v2437_v56 = vrot.slane %v2418_v0, 4  ;;  %v2629_v17 = vrot.slane %v2620_v39, 4 }
 0xa37   : > { %4016 = vmatpush.xpose.msk.msra.mxu1 %vm1286_vm2, %v2612_v36  ;;  %v2423_v47 = vrot.slane %v2410_v61, 4  ;;  %v2426_v48 = vsel %vm906_vm1, %v2410_v61, %v2425_v42  ;;  %v2628_v51 = vsel %vm906_vm1, 0.0, %v2627_v43  ;;  %v2631_v27 = vrot.slane %v2624_v49, 4 }
 0xa38   : > { %v2434_v53 = vperm.slane %v2426_v48, %v4728_v8  ;;  %v2630_v25 = vsel %vm906_vm1, 0.0, %v2629_v17 }
 0xa39   : > { %v2424_v55 = vsel %vm906_vm1, %v2423_v47, %v2404_v24  ;;  %v2632_v31 = vsel %vm906_vm1, 0.0, %v2631_v27 }
 0xa3a   : > { %4018 = vmatpush.xpose.msk.msrb.mxu3 %vm1286_vm2, %v2628_v51  ;;  %4024 = vmatpush.xpose.msk.msra.mxu2 %vm1286_vm2, %v2624_v49  ;;  %v2430_v57 = vperm.slane %v2424_v55, %v4728_v8  ;;  %v2439_v58 = vrot.slane %v2434_v53, 4  ;;  %v2442_v60 = vsel %vm906_vm1, %v2434_v53, %v2441_v52 }
 0xa3b   : > { %v2455_v62 = vrot.slane %v2442_v60, 4 }
 0xa3c   : > { %v2435_v63 = vrot.slane %v2430_v57, 4  ;;  %v2438_v1 = vsel %vm906_vm1, %v2430_v57, %v2437_v56  ;;  %v2440_v4 = vsel %vm906_vm1, %v2439_v58, %v2422_v33 }
 0xa3d   : > { %v2443_v2 = vrot.slane %v2440_v4, 4  ;;  %v2456_v7 = vsel %vm906_vm1, %v2455_v62, %v2438_v1  ;;  %v2457_v10 = vrot.slane %v2438_v1, 4 }
 0xa3e   : > { %v2436_v9 = vsel %vm906_vm1, %v2435_v63, %v2418_v0  ;;  %v2462_v5 = vperm.slane %v2456_v7, %v4722_v59 }
 0xa3f   : > { %v2445_v11 = vrot.slane %v2436_v9, 4  ;;  %v2458_v12 = vsel %vm906_vm1, %v2442_v60, %v2457_v10  ;;  %v2444_v13 = vsel %vm906_vm1, %v2443_v2, %v2436_v9  ;;  %v5482_v10 = vpop.permute.xlu0 %2649  ;;  %v2638_v9 = vpop.permute.xlu2 %2637 }
 0xa40   : > { %v2466_v14 = vperm.slane %v2458_v12, %v4722_v59  ;;  %v2450_v15 = vperm.slane %v2444_v13, %v4722_v59  ;;  %v2467_v16 = vrot.slane %v2462_v5, 4 }
 0xa41   : > { %v2446_v19 = vsel %vm906_vm1, %v2440_v4, %v2445_v11 }
 0xa42   : > { %v2468_v20 = vsel %vm906_vm1, %v2467_v16, %v2450_v15  ;;  %v2454_v54 = vperm.slane %v2446_v19, %v4722_v59  ;;  %v2479_v21 = vrot.slane %v2466_v14, 4  ;;  %v2469_v22 = vrot.slane %v2450_v15, 4 }
 0xa43   : > { %v2474_v23 = vperm.slane %v2468_v20, %v4728_v8 }
 0xa44   : > { %v2480_v45 = vsel %vm906_vm1, %v2479_v21, %v2454_v54  ;;  %v2470_v24 = vsel %vm906_vm1, %v2462_v5, %v2469_v22  ;;  %v2481_v28 = vrot.slane %v2454_v54, 4 }
 0xa45   : > { %4013 = vmatmul.msk.f32.vlgmr.msrb.gmra.mxu1 %vm1286_vm2, %v2474_v23  ;;  %v2486_v50 = vperm.slane %v2480_v45, %v4728_v8  ;;  %v2491_v26 = vrot.slane %v2474_v23, 4  ;;  %v2478_v30 = vperm.slane %v2470_v24, %v4728_v8 }
 0xa46   : > { %4022 = vmatpush.xpose.msk.msrb.mxu1 %vm1286_vm2, %v2630_v25  ;;  %v2482_v32 = vsel %vm906_vm1, %v2466_v14, %v2481_v28 }
 0xa47   : > { %4021 = vmatmul.msk.f32.vlgmr.msrb.gmra.mxu2 %vm1286_vm2, %v2486_v50  ;;  %v2492_v29 = vsel %vm906_vm1, 0.0, %v2491_v26  ;;  %v2493_v33 = vrot.slane %v2478_v30, 4  ;;  %v2490_v34 = vperm.slane %v2482_v32, %v4728_v8  ;;  %v2495_v37 = vrot.slane %v2486_v50, 4 }
 0xa48   : > { %4015 = vmatmul.msk.f32.vlgmr.msra.gmra.mxu3 %vm1286_vm2, %v2492_v29 }
 0xa49   : > { %4026 = vmatpush.xpose.msk.msra.mxu3 %vm1286_vm2, %v2632_v31  ;;  %v2494_v36 = vsel %vm906_vm1, 0.0, %v2493_v33  ;;  %v2497_v38 = vrot.slane %v2490_v34, 4  ;;  %v2496_v39 = vsel %vm906_vm1, 0.0, %v2495_v37 }
 0xa4b   : > { %v2498_v40 = vsel %vm906_vm1, 0.0, %v2497_v38 }
 0xa4d   : > { %4017 = vmatmul.msk.f32.vlgmr.msra.gmra.mxu1 %vm1286_vm2, %v2478_v30 }
 0xa4f   : > { %4025 = vmatmul.msk.f32.vlgmr.msra.gmra.mxu2 %vm1286_vm2, %v2490_v34 }
 0xa50   : > { %4019 = vmatmul.msk.f32.vlgmr.msrb.gmra.mxu3 %vm1286_vm2, %v2494_v36 }
 0xa55   : > { %4023 = vmatmul.msk.f32.vlgmr.msrb.gmra.mxu1 %vm1286_vm2, %v2496_v39 }
 0xa58   : > { %4027 = vmatmul.msk.f32.vlgmr.msra.gmra.mxu3 %vm1286_vm2, %v2498_v40 }
 0xac2   : > { %v2790_v41 = vpop.f32.mrf.mxu1 }
 0xac3   : > { %v2975_v42 = vmul.f32 0.25, %v2790_v41 }
 0xac5   : > { %v2983_v61 = vsel %vm1503_vm3, %v2975_v42, -inf }
 0xac6   : > { %2984 = vmax.xlane.f32.xlu0 %v2983_v61 }
 0xaca   : > { %v2842_v43 = vpop.f32.mrf.mxu1  ;;  %v2894_v0 = vpop.f32.mrf.mxu2 }
 0xacb   : > { %v2979_v44 = vmul.f32 0.25, %v2894_v0  ;;  %v2816_v46 = vpop.f32.mrf.mxu3  ;;  %v2977_v51 = vmul.f32 0.25, %v2842_v43 }
 0xacc   : > { %v2976_v47 = vmul.f32 0.25, %v2816_v46 }
 0xacd   : > { %v2995_v48 = vsel %vm1503_vm3, %v2979_v44, -inf  ;;  %v2989_v55 = vsel %vm1503_vm3, %v2977_v51, -inf }
 0xace   : > { %2996 = vmax.xlane.f32.xlu2 %v2995_v48  ;;  %v2986_v49 = vsel %vm1503_vm3, %v2976_v47, -inf  ;;  %v2655_v48 = vrot.slane %v2638_v9, 4 }
 0xacf   : > { %2987 = vmax.xlane.f32.xlu1 %v2986_v49 }
 0xad2   : > { %v2920_v52 = vpop.f32.mrf.mxu1  ;;  %v2946_v57 = vpop.f32.mrf.mxu2 }
 0xad3   : > { %v2980_v53 = vmul.f32 0.25, %v2920_v52  ;;  %v2868_v58 = vpop.f32.mrf.mxu3  ;;  %v2981_v60 = vmul.f32 0.25, %v2946_v57  ;;  %v2656_v52 = vsel %vm906_vm1, %v2655_v48, %v5357_v18 }
 0xad4   : > { %v2978_v62 = vmul.f32 0.25, %v2868_v58 }
 0xad5   : > { %v2998_v56 = vsel %vm1503_vm3, %v2980_v53, -inf  ;;  %v3001_v63 = vsel %vm1503_vm3, %v2981_v60, -inf }
 0xad6   : > { %2990 = vmax.xlane.f32.xlu2 %v2989_v55  ;;  %v2992_v1 = vsel %vm1503_vm3, %v2978_v62, -inf }
 0xad7   : > { %2999 = vmax.xlane.f32.xlu1 %v2998_v56  ;;  %v2660_v56 = vperm.slane %v2656_v52, %v4722_v59 }
 0xada   : > { %2652 = vrot.lane.b32.xlu0 %v5357_v18, %s5970_s30 }
 0xadb   : > { %v2972_v4 = vpop.f32.mrf.mxu3 }
 0xadc   : > { %v2982_v2 = vmul.f32 0.25, %v2972_v4 }
 0xade   : > { %3002 = vmax.xlane.f32.xlu2 %v3001_v63  ;;  %v3004_v7 = vsel %vm1503_vm3, %v2982_v2, -inf }
 0xadf   : > { %2993 = vmax.xlane.f32.xlu1 %v2992_v1  ;;  %v2681_v1 = vrot.slane %v2660_v56, 4 }
 0xaf6   : > { %2640 = vrot.lane.b32.xlu2 %v5357_v18, %s5965_s28 }
 0xaf8   : > { %2643 = vrot.lane.b32.xlu1 %v5357_v18, %s5969_s23 }
 0xafe   : > { %2634 = vrot.lane.b32.xlu2 %v5357_v18, %s5966_s0 }
 0xb04   : > { %3005 = vmax.xlane.f32.xlu0 %v3004_v7 }
 0xb18   : > { %2646 = vrot.lane.b32.xlu0 %v5357_v18, %s5971_s3 }
 0xb39   : > { %v2985_v5 = vpop.xlane.xlu0 %2984 }
 0xb3a   : > { %v3007_v11 = vsub.f32 %v2975_v42, %v2985_v5 }
 0xb3c   : > { %v3015_v12 = vmul.f32 1.442695, %v3007_v11 }
 0xb3e   : > { %4203 = vpow2.f32 %v3015_v12 }
 0xb41   : > { %v2997_v13 = vpop.xlane.xlu2 %2996 }
 0xb42   : > { %v2988_v14 = vpop.xlane.xlu1 %2987  ;;  %v3011_v24 = vsub.f32 %v2979_v44, %v2997_v13 }
 0xb43   : > { %v3008_v50 = vsub.f32 %v2976_v47, %v2988_v14 }
 0xb44   : > { %v5484_v15 = vpop.eup %4203  ;;  %v3023_v29 = vmul.f32 1.442695, %v3011_v24 }
 0xb45   : > { %v3031_v16 = vsel %vm1503_vm3, %v5484_v15, 0.0  ;;  %v3017_v30 = vmul.f32 1.442695, %v3008_v50 }
 0xb46   : > { %3032 = vadd.xlane.f32.xlu2 %v3031_v16 }
 0xb49   : > { %v2991_v17 = vpop.xlane.xlu2 %2990 }
 0xb4a   : > { %v3009_v19 = vsub.f32 %v2977_v51, %v2991_v17  ;;  %v3000_v20 = vpop.xlane.xlu1 %2999 }
 0xb4b   : > { %v3012_v33 = vsub.f32 %v2980_v53, %v3000_v20 }
 0xb4c   : > { %v3019_v54 = vmul.f32 1.442695, %v3009_v19  ;;  %v2653_v43 = vpop.permute.xlu0 %2652 }
 0xb4d   : > { %v3025_v37 = vmul.f32 1.442695, %v3012_v33  ;;  %v2673_v7 = vrot.slane %v2653_v43, 4 }
 0xb4e   : > { %4205 = vpow2.f32 %v3019_v54 }
 0xb51   : > { %v3003_v21 = vpop.xlane.xlu2 %3002 }
 0xb52   : > { %v3013_v22 = vsub.f32 %v2981_v60, %v3003_v21  ;;  %v2994_v23 = vpop.xlane.xlu1 %2993  ;;  %v2667_v60 = vrot.slane %v5482_v10, 4 }
 0xb53   : > { %v3010_v45 = vsub.f32 %v2978_v62, %v2994_v23 }
 0xb54   : > { %v5488_v27 = vpop.eup %4205  ;;  %v3027_v25 = vmul.f32 1.442695, %v3013_v22 }
 0xb55   : > { %v3021_v26 = vmul.f32 1.442695, %v3010_v45  ;;  %v3037_v28 = vsel %vm1503_vm3, %v5488_v27, 0.0 }
 0xb56   : > { %4207 = vpow2.f32 %v3027_v25  ;;  %3038 = vadd.xlane.f32.xlu1 %v3037_v28 }
 0xb57   : > { %4209 = vpow2.f32 %v3021_v26 }
 0xb58   : > { %4211 = vpow2.f32 %v3023_v29 }
 0xb59   : > { %4213 = vpow2.f32 %v3017_v30  ;;  %v2641_v0 = vpop.permute.xlu2 %2640 }
 0xb5a   : > { %4215 = vpow2.f32 %v3025_v37  ;;  %v2661_v51 = vrot.slane %v2641_v0, 4 }
 0xb5c   : > { %v5492_v31 = vpop.eup %4207 }
 0xb5d   : > { %v5494_v32 = vpop.eup %4209  ;;  %v3049_v34 = vsel %vm1503_vm3, %v5492_v31, 0.0 }
 0xb5e   : > { %3050 = vadd.xlane.f32.xlu1 %v3049_v34  ;;  %v3040_v36 = vsel %vm1503_vm3, %v5494_v32, 0.0  ;;  %v5500_v38 = vpop.eup %4211 }
 0xb5f   : > { %3041 = vadd.xlane.f32.xlu0 %v3040_v36  ;;  %v5502_v39 = vpop.eup %4213  ;;  %v3043_v40 = vsel %vm1503_vm3, %v5500_v38, 0.0 }
 0xb60   : > { %v3034_v41 = vsel %vm1503_vm3, %v5502_v39, 0.0  ;;  %v5508_v42 = vpop.eup %4215 }
 0xb61   : > { %v3046_v61 = vsel %vm1503_vm3, %v5508_v42, 0.0  ;;  %v2635_v49 = vpop.permute.xlu2 %2634 }
 0xb62   : > { %v2662_v53 = vsel %vm906_vm1, %v2661_v51, %v2635_v49 }
 0xb63   : > { %v2666_v57 = vperm.slane %v2662_v53, %v4722_v59 }
 0xb65   : > { %v2679_v4 = vrot.slane %v2666_v57, 4  ;;  %v2682_v18 = vsel %vm906_vm1, %v2666_v57, %v2681_v1 }
 0xb66   : > { %3044 = vadd.xlane.f32.xlu1 %v3043_v40  ;;  %v2690_v11 = vperm.slane %v2682_v18, %v4728_v8 }
 0xb67   : > { %3035 = vadd.xlane.f32.xlu0 %v3034_v41  ;;  %v2680_v9 = vsel %vm906_vm1, %v2679_v4, %v2660_v56 }
 0xb68   : > { %v2686_v14 = vperm.slane %v2680_v9, %v4728_v8  ;;  %v2709_v19 = vrot.slane %v2690_v11, 4 }
 0xb6a   : > { %v2644_v58 = vpop.permute.xlu1 %2643  ;;  %v2705_v21 = vrot.slane %v2686_v14, 4 }
 0xb6b   : > { %v2668_v63 = vsel %vm906_vm1, %v2667_v60, %v2644_v58 }
 0xb6f   : > { %3047 = vadd.xlane.f32.xlu0 %v3046_v61 }
 0xb77   : > { %v3006_v44 = vpop.xlane.xlu0 %3005 }
 0xb78   : > { %v3014_v46 = vsub.f32 %v2982_v2, %v3006_v44  ;;  %v2672_v2 = vperm.slane %v2668_v63, %v4722_v59 }
 0xb7a   : > { %v3029_v47 = vmul.f32 1.442695, %v3014_v46  ;;  %v2693_v12 = vrot.slane %v2672_v2, 4 }
 0xb7c   : > { %4217 = vpow2.f32 %v3029_v47 }
 0xb82   : > { %v5515_v55 = vpop.eup %4217 }
 0xb83   : > { %v3052_v62 = vsel %vm1503_vm3, %v5515_v55, 0.0 }
 0xb84   : > { %3053 = vadd.xlane.f32.xlu2 %v3052_v62 }
 0xb8a   : > { %v2647_v5 = vpop.permute.xlu0 %2646 }
 0xb8b   : > { %v2674_v10 = vsel %vm906_vm1, %v2673_v7, %v2647_v5 }
 0xb8c   : > { %v2678_v13 = vperm.slane %v2674_v10, %v4722_v59 }
 0xb8e   : > { %v2691_v16 = vrot.slane %v2678_v13, 4  ;;  %v2694_v17 = vsel %vm906_vm1, %v2678_v13, %v2693_v12 }
 0xb8f   : > { %v2702_v20 = vperm.slane %v2694_v17, %v4728_v8 }
 0xb90   : > { %v2692_v54 = vsel %vm906_vm1, %v2691_v16, %v2672_v2 }
 0xb91   : > { %v2698_v22 = vperm.slane %v2692_v54, %v4728_v8  ;;  %v2707_v23 = vrot.slane %v2702_v20, 4  ;;  %v2710_v45 = vsel %vm906_vm1, %v2702_v20, %v2709_v19 }
 0xb92   : > { %v2723_v24 = vrot.slane %v2710_v45, 4 }
 0xb93   : > { %v2703_v25 = vrot.slane %v2698_v22, 4  ;;  %v2706_v50 = vsel %vm906_vm1, %v2698_v22, %v2705_v21  ;;  %v2708_v26 = vsel %vm906_vm1, %v2707_v23, %v2690_v11 }
 0xb94   : > { %v2711_v28 = vrot.slane %v2708_v26, 4  ;;  %v2724_v29 = vsel %vm906_vm1, %v2723_v24, %v2706_v50  ;;  %v2725_v30 = vrot.slane %v2706_v50, 4 }
 0xb95   : > { %v2704_v33 = vsel %vm906_vm1, %v2703_v25, %v2686_v14  ;;  %v2730_v34 = vperm.slane %v2724_v29, %v4722_v59 }
 0xb96   : > { %v2713_v36 = vrot.slane %v2704_v33, 4  ;;  %v2726_v37 = vsel %vm906_vm1, %v2710_v45, %v2725_v30  ;;  %v2712_v40 = vsel %vm906_vm1, %v2711_v28, %v2704_v33 }
 0xb97   : > { %v2734_v41 = vperm.slane %v2726_v37, %v4722_v59  ;;  %v2718_v61 = vperm.slane %v2712_v40, %v4722_v59  ;;  %v2735_v43 = vrot.slane %v2730_v34, 4 }
 0xb98   : > { %v2714_v0 = vsel %vm906_vm1, %v2708_v26, %v2713_v36 }
 0xb99   : > { %v2736_v44 = vsel %vm906_vm1, %v2735_v43, %v2718_v61  ;;  %v2737_v46 = vrot.slane %v2718_v61, 4  ;;  %v2722_v47 = vperm.slane %v2714_v0, %v4722_v59  ;;  %v2747_v48 = vrot.slane %v2734_v41, 4 }
 0xb9a   : > { %v2742_v49 = vperm.slane %v2736_v44, %v4728_v8 }
 0xb9b   : > { %v2738_v51 = vsel %vm906_vm1, %v2730_v34, %v2737_v46  ;;  %v2748_v52 = vsel %vm906_vm1, %v2747_v48, %v2722_v47  ;;  %v2749_v53 = vrot.slane %v2722_v47, 4 }
 0xb9c   : > { %4028 = vmatpush.msk.msrb.mxu0 %vm5938_vm4, %v2742_v49  ;;  %v2746_v56 = vperm.slane %v2738_v51, %v4728_v8  ;;  %v2754_v57 = vperm.slane %v2748_v52, %v4728_v8  ;;  %v2759_v58 = vrot.slane %v2742_v49, 4 }
 0xb9d   : > { %v2750_v60 = vsel %vm906_vm1, %v2734_v41, %v2749_v53 }
 0xb9e   : > { %4032 = vmatpush.msk.msrb.mxu2 %vm5938_vm4, %v2746_v56  ;;  %4036 = vmatpush.msk.msra.mxu0 %vm5938_vm4, %v2754_v57  ;;  %v2760_v62 = vsel %vm906_vm1, 0.0, %v2759_v58  ;;  %v2758_v63 = vperm.slane %v2750_v60, %v4728_v8  ;;  %v2761_v1 = vrot.slane %v2746_v56, 4  ;;  %v2763_v4 = vrot.slane %v2754_v57, 4 }
 0xb9f   : > { %4030 = vmatpush.msk.msra.mxu1 %vm5938_vm4, %v2760_v62 }
 0xba0   : > { %4040 = vmatpush.msk.msra.mxu2 %vm5938_vm4, %v2758_v63  ;;  %v2762_v18 = vsel %vm906_vm1, 0.0, %v2761_v1  ;;  %v2764_v2 = vsel %vm906_vm1, 0.0, %v2763_v4  ;;  %v2765_v7 = vrot.slane %v2758_v63, 4 }
 0xba1   : > { %4034 = vmatpush.msk.msrb.mxu3 %vm5938_vm4, %v2762_v18  ;;  %4038 = vmatpush.msk.msrb.mxu1 %vm5938_vm4, %v2764_v2 }
 0xba2   : > { %v2766_v9 = vsel %vm906_vm1, 0.0, %v2765_v7 }
 0xba3   : > { %4042 = vmatpush.msk.msra.mxu3 %vm5938_vm4, %v2766_v9 }
 0xbb9   : > { %v3033_v5 = vpop.xlane.xlu2 %3032 }
 0xbba   : > { %4219 = vrcp.f32 %v3033_v5  ;;  %v3066_v13 = vand.u32 2147483648, %v3033_v5  ;;  %v3064_v16 = vand.u32 2147483647, %v3033_v5  ;;  %vm3060_vm15 = vweird.f32 %v3033_v5 }
 0xbbc   : > { %v3067_v19 = vor.u32 1.1754944e-38, %v3066_v13  ;;  %vm3065_vm6 = vcmp.eq.f32.partialorder %v3064_v16, 8.507059e+37 }
 0xbc0   : > { %v4220_v11 = vpop.eup %4219 }
 0xbc1   : > { %v3056_v10 = vmul.f32 %v4220_v11, %v3033_v5  ;;  %vm3061_vm3 = vweird.f32 %v4220_v11 }
 0xbc2   : > { %vm3062_vm5 = vmor %vm3060_vm15, %vm3061_vm3 }
 0xbc3   : > { %v3057_v12 = vsub.f32 1.0, %v3056_v10 }
 0xbc5   : > { %v3058_v14 = vmul.f32 %v4220_v11, %v3057_v12 }
 0xbc7   : > { %v3059_v17 = vadd.f32 %v4220_v11, %v3058_v14 }
 0xbc9   : > { %v3063_v20 = vsel %vm3062_vm5, %v4220_v11, %v3059_v17  ;;  %v3039_v54 = vpop.xlane.xlu1 %3038 }
 0xbca   : > { %v3068_v21 = vsel %vm3065_vm6, %v3067_v19, %v3063_v20  ;;  %4221 = vrcp.f32 %v3039_v54  ;;  %v3096_v28 = vand.u32 2147483648, %v3039_v54  ;;  %v3094_v29 = vand.u32 2147483647, %v3039_v54 }
 0xbcb   : > { %v3069_v22 = vmul.f32 %v5484_v15, %v3068_v21  ;;  %vm3090_vm14 = vweird.f32 %v3039_v54 }
 0xbcc   : > { %v3097_v15 = vor.u32 1.1754944e-38, %v3096_v28  ;;  %vm3095_vm15 = vcmp.eq.f32.partialorder %v3094_v29, 8.507059e+37 }
 0xbcd   : > { %4029 = vmatmul.msk.f32.vlgmr.msrb.gmra.mxu0 %vm1696_vm12, %v3069_v22 }
 0xbd0   : > { %v4222_v23 = vpop.eup %4221 }
 0xbd1   : > { %v3086_v45 = vmul.f32 %v4222_v23, %v3039_v54  ;;  %v3051_v24 = vpop.xlane.xlu1 %3050  ;;  %vm3091_vm13 = vweird.f32 %v4222_v23 }
 0xbd2   : > { %4223 = vrcp.f32 %v3051_v24  ;;  %v3042_v25 = vpop.xlane.xlu0 %3041  ;;  %vm3092_vm3 = vmor %vm3090_vm14, %vm3091_vm13  ;;  %v3156_v44 = vand.u32 2147483648, %v3051_v24  ;;  %v3154_v48 = vand.u32 2147483647, %v3051_v24  ;;  %vm3150_vm13 = vweird.f32 %v3051_v24 }
 0xbd3   : > { %v3087_v50 = vsub.f32 1.0, %v3086_v45  ;;  %4225 = vrcp.f32 %v3042_v25  ;;  %v3111_v49 = vand.u32 2147483648, %v3042_v25  ;;  %v3109_v52 = vand.u32 2147483647, %v3042_v25 }
 0xbd4   : > { %v3157_v58 = vor.u32 1.1754944e-38, %v3156_v44 }
 0xbd5   : > { %v3088_v26 = vmul.f32 %v4222_v23, %v3087_v50  ;;  %v3112_v63 = vor.u32 1.1754944e-38, %v3111_v49  ;;  %vm3110_vm11 = vcmp.eq.f32.partialorder %v3109_v52, 8.507059e+37 }
 0xbd7   : > { %v3089_v30 = vadd.f32 %v4222_v23, %v3088_v26 }
 0xbd8   : > { %v4224_v33 = vpop.eup %4223 }
 0xbd9   : > { %v4226_v34 = vpop.eup %4225  ;;  %v3093_v36 = vsel %vm3092_vm3, %v4222_v23, %v3089_v30  ;;  %v3146_v37 = vmul.f32 %v4224_v33, %v3051_v24  ;;  %v3045_v40 = vpop.xlane.xlu1 %3044  ;;  %vm3151_vm5 = vweird.f32 %v4224_v33  ;;  %vm3105_vm3 = vweird.f32 %v3042_v25 }
 0xbda   : > { %v3101_v41 = vmul.f32 %v4226_v34, %v3042_v25  ;;  %4227 = vrcp.f32 %v3045_v40  ;;  %v5568_v61 = vpop.xlane.xlu0 %3035  ;;  %v3098_v43 = vsel %vm3095_vm15, %v3097_v15, %v3093_v36  ;;  %vm3106_vm6 = vweird.f32 %v4226_v34  ;;  %vm3152_vm14 = vmor %vm3150_vm13, %vm3151_vm5 }
 0xbdb   : > { %v3147_v0 = vsub.f32 1.0, %v3146_v37  ;;  %4229 = vrcp.f32 %v5568_v61  ;;  %v3099_v53 = vmul.f32 %v5488_v27, %v3098_v43  ;;  %vm3155_vm15 = vcmp.eq.f32.partialorder %v3154_v48, 8.507059e+37  ;;  %vm3107_vm4 = vmor %vm3105_vm3, %vm3106_vm6 }
 0xbdc   : > { %v3102_v46 = vsub.f32 1.0, %v3101_v41  ;;  %v3124_v11 = vand.u32 2147483647, %v3045_v40  ;;  %v3126_v10 = vand.u32 2147483648, %v3045_v40  ;;  %vm3120_vm6 = vweird.f32 %v3045_v40 }
 0xbdd   : > { %v3148_v47 = vmul.f32 %v4224_v33, %v3147_v0  ;;  %4033 = vmatmul.msk.f32.vlgmr.msrb.gmra.mxu2 %vm1696_vm12, %v3099_v53  ;;  %v3081_v17 = vand.u32 2147483648, %v5568_v61  ;;  %v3079_v54 = vand.u32 2147483647, %v5568_v61 }
 0xbde   : > { %v3103_v51 = vmul.f32 %v4226_v34, %v3102_v46  ;;  %v3127_v21 = vor.u32 1.1754944e-38, %v3126_v10  ;;  %vm3125_vm13 = vcmp.eq.f32.partialorder %v3124_v11, 8.507059e+37 }
 0xbdf   : > { %v3149_v56 = vadd.f32 %v4224_v33, %v3148_v47  ;;  %v3082_v45 = vor.u32 1.1754944e-38, %v3081_v17 }
 0xbe0   : > { %v4228_v57 = vpop.eup %4227  ;;  %v3104_v60 = vadd.f32 %v4226_v34, %v3103_v51 }
 0xbe1   : > { %v3153_v62 = vsel %vm3152_vm14, %v4224_v33, %v3149_v56  ;;  %v3116_v1 = vmul.f32 %v4228_v57, %v3045_v40  ;;  %v4230_v4 = vpop.eup %4229  ;;  %vm3121_vm5 = vweird.f32 %v4228_v57  ;;  %vm3075_vm14 = vweird.f32 %v5568_v61 }
 0xbe2   : > { %v3158_v18 = vsel %vm3155_vm15, %v3157_v58, %v3153_v62  ;;  %v3108_v2 = vsel %vm3107_vm4, %v4226_v34, %v3104_v60  ;;  %v3048_v7 = vpop.xlane.xlu0 %3047  ;;  %v3071_v5 = vmul.f32 %v4230_v4, %v5568_v61  ;;  %vm3076_vm4 = vweird.f32 %v4230_v4 }
 0xbe3   : > { %v3113_v27 = vsel %vm3110_vm11, %v3112_v63, %v3108_v2  ;;  %v3117_v9 = vsub.f32 1.0, %v3116_v1  ;;  %4231 = vrcp.f32 %v3048_v7  ;;  %v3159_v14 = vmul.f32 %v5492_v31, %v3158_v18  ;;  %vm3122_vm11 = vmor %vm3120_vm6, %vm3121_vm5 }
 0xbe4   : > { %v3072_v13 = vsub.f32 1.0, %v3071_v5  ;;  %v3114_v16 = vmul.f32 %v5494_v32, %v3113_v27  ;;  %vm3077_vm3 = vmor %vm3075_vm14, %vm3076_vm4  ;;  %vm3080_vm15 = vcmp.eq.f32.partialorder %v3079_v54, 8.507059e+37  ;;  %v3141_v30 = vand.u32 2147483648, %v3048_v7 }
 0xbe5   : > { %v3118_v12 = vmul.f32 %v4228_v57, %v3117_v9  ;;  %4041 = vmatmul.msk.f32.vlgmr.msra.gmra.mxu2 %vm1696_vm12, %v3159_v14  ;;  %v3139_v34 = vand.u32 2147483647, %v3048_v7  ;;  %vm3135_vm6 = vweird.f32 %v3048_v7 }
 0xbe6   : > { %v3073_v20 = vmul.f32 %v4230_v4, %v3072_v13  ;;  %4035 = vmatmul.msk.f32.vlgmr.msrb.gmra.mxu3 %vm1696_vm12, %v3114_v16  ;;  %v3142_v15 = vor.u32 1.1754944e-38, %v3141_v30 }
 0xbe7   : > { %v3119_v19 = vadd.f32 %v4228_v57, %v3118_v12 }
 0xbe8   : > { %v3074_v31 = vadd.f32 %v4230_v4, %v3073_v20 }
 0xbe9   : > { %v3123_v22 = vsel %vm3122_vm11, %v4228_v57, %v3119_v19  ;;  %v4232_v32 = vpop.eup %4231  ;;  %vm3140_vm11 = vcmp.eq.f32.partialorder %v3139_v34, 8.507059e+37 }
 0xbea   : > { %v3128_v23 = vsel %vm3125_vm13, %v3127_v21, %v3123_v22  ;;  %v3078_v24 = vsel %vm3077_vm3, %v4230_v4, %v3074_v31  ;;  %v3131_v25 = vmul.f32 %v4232_v32, %v3048_v7  ;;  %vm3136_vm5 = vweird.f32 %v4232_v32 }
 0xbeb   : > { %v3129_v50 = vmul.f32 %v5500_v38, %v3128_v23  ;;  %v3083_v26 = vsel %vm3080_vm15, %v3082_v45, %v3078_v24  ;;  %vm3137_vm4 = vmor %vm3135_vm6, %vm3136_vm5 }
 0xbec   : > { %v3132_v28 = vsub.f32 1.0, %v3131_v25  ;;  %v3084_v29 = vmul.f32 %v5502_v39, %v3083_v26 }
 0xbed   : > { %4037 = vmatmul.msk.f32.vlgmr.msra.gmra.mxu0 %vm1696_vm12, %v3129_v50 }
 0xbee   : > { %v3133_v33 = vmul.f32 %v4232_v32, %v3132_v28  ;;  %4031 = vmatmul.msk.f32.vlgmr.msra.gmra.mxu1 %vm1696_vm12, %v3084_v29 }
 0xbf0   : > { %v3134_v36 = vadd.f32 %v4232_v32, %v3133_v33 }
 0xbf2   : > { %v3138_v37 = vsel %vm3137_vm4, %v4232_v32, %v3134_v36 }
 0xbf3   : > { %v3143_v40 = vsel %vm3140_vm11, %v3142_v15, %v3138_v37  ;;  %vm3768_vm11 = vcmask 519168  }
 0xbf4   : > { %v3144_v38 = vmul.f32 %v5508_v42, %v3143_v40 }
 0xbf6   : > { %4039 = vmatmul.msk.f32.vlgmr.msrb.gmra.mxu1 %vm1696_vm12, %v3144_v38 }
 0xbf7   : > { %v3054_v41 = vpop.xlane.xlu2 %3053 }
 0xbf8   : > { %4233 = vrcp.f32 %v3054_v41  ;;  %v3171_v0 = vand.u32 2147483648, %v3054_v41  ;;  %v3169_v46 = vand.u32 2147483647, %v3054_v41  ;;  %vm3165_vm14 = vweird.f32 %v3054_v41 }
 0xbfa   : > { %v3172_v48 = vor.u32 1.1754944e-38, %v3171_v0  ;;  %vm3170_vm15 = vcmp.eq.f32.partialorder %v3169_v46, 8.507059e+37 }
 0xbfe   : > { %v4234_v39 = vpop.eup %4233 }
 0xbff   : > { %v3161_v61 = vmul.f32 %v4234_v39, %v3054_v41  ;;  %vm3166_vm13 = vweird.f32 %v4234_v39 }
 0xc00   : > { %vm3167_vm3 = vmor %vm3165_vm14, %vm3166_vm13  ;;  %vm3777_vm13 = vcmask 3072  }
 0xc01   : > { %v3162_v43 = vsub.f32 1.0, %v3161_v61 }
 0xc03   : > { %v3163_v44 = vmul.f32 %v4234_v39, %v3162_v43 }
 0xc05   : > { %v3164_v47 = vadd.f32 %v4234_v39, %v3163_v44 }
 0xc07   : > { %v3168_v49 = vsel %vm3167_vm3, %v4234_v39, %v3164_v47 }
 0xc08   : > { %v3173_v51 = vsel %vm3170_vm15, %v3172_v48, %v3168_v49 }
 0xc09   : > { %v3174_v42 = vmul.f32 %v5515_v55, %v3173_v51 }
 0xc0b   : > { %4043 = vmatmul.msk.f32.vlgmr.msra.gmra.mxu3 %vm1696_vm12, %v3174_v42 }
 0xc4a   : > { %v3198_v56 = vpop.f32.mrf.mxu0 }
 0xc60   : > { %v3250_v52 = vpop.f32.mrf.mxu2 }
 0xc61   : > { %v3383_v57 = vrot.slane %v3250_v52, 4 }
 0xc63   : > { %v3384_v63 = vsel %vm906_vm1, %v3383_v57, %v3198_v56 }
 0xc64   : > { %v3388_v18 = vperm.slane %v3384_v63, %v4722_v59 }
 0xc66   : > { %v3409_v27 = vrot.slane %v3388_v18, 4 }
 0xc68   : > { %v3354_v62 = vpop.f32.mrf.mxu2 }
 0xc69   : > { %v3276_v53 = vpop.f32.mrf.mxu3  ;;  %v3395_v4 = vrot.slane %v3354_v62, 4 }
 0xc6a   : > { %v3389_v58 = vrot.slane %v3276_v53, 4  ;;  %v3302_v2 = vpop.f32.mrf.mxu0 }
 0xc6b   : > { %v3224_v60 = vpop.f32.mrf.mxu1  ;;  %v3396_v55 = vsel %vm906_vm1, %v3395_v4, %v3302_v2 }
 0xc6c   : > { %v3390_v1 = vsel %vm906_vm1, %v3389_v58, %v3224_v60  ;;  %v3400_v5 = vperm.slane %v3396_v55, %v4722_v59  ;;  %v4057_v55 = vld [vmem:[%s5964_s6 + $0xe8] sm:$0xff] }
 0xc6d   : > { %v3394_v7 = vperm.slane %v3390_v1, %v4722_v59 }
 0xc6e   : > { %v3421_v19 = vrot.slane %v3400_v5, 4 }
 0xc6f   : > { %v3407_v9 = vrot.slane %v3394_v7, 4  ;;  %v3410_v11 = vsel %vm906_vm1, %v3394_v7, %v3409_v27  ;;  %v4058_v7 = vld [vmem:[%s5964_s6 + $0xf0] sm:$0xff]  ;;  %v4056_v27 = vld [vmem:[%s5964_s6 + $0xe0] sm:$0xff] }
 0xc70   : > { %v3418_v16 = vperm.slane %v3410_v11, %v4728_v8  ;;  %v4053_v11 = vld [vmem:[%s5964_s6 + $0xc8] sm:$0xff] }
 0xc71   : > { %v3408_v13 = vsel %vm906_vm1, %v3407_v9, %v3388_v18  ;;  %v4055_v9 = vld [vmem:[%s5964_s6 + $0xd8] sm:$0xff] }
 0xc72   : > { %v3414_v54 = vperm.slane %v3408_v13, %v4728_v8  ;;  %v3437_v31 = vrot.slane %v3418_v16, 4  ;;  %v4050_v13 = vld [vmem:[%s5964_s6 + $0xb0] sm:$0xff] }
 0xc73   : > { %v3328_v14 = vpop.f32.mrf.mxu1 }
 0xc74   : > { %v3433_v45 = vrot.slane %v3414_v54, 4 }
 0xc8e   : > { %v3380_v10 = vpop.f32.mrf.mxu3 }
 0xc8f   : > { %v3401_v12 = vrot.slane %v3380_v10, 4  ;;  %v4052_v10 = vld [vmem:[%s5964_s6 + $0xc0] sm:$0xff] }
 0xc91   : > { %v3402_v17 = vsel %vm906_vm1, %v3401_v12, %v3328_v14  ;;  %v4051_v12 = vld [vmem:[%s5964_s6 + $0xb8] sm:$0xff]  ;;  %v4049_v14 = vld [vmem:[%s5964_s6 + $0xa8] sm:$0xff] }
 0xc92   : > { %v3406_v20 = vperm.slane %v3402_v17, %v4722_v59  ;;  %v4047_v17 = vld [vmem:[%s5964_s6 + $0x98] sm:$0xff] }
 0xc94   : > { %v3419_v21 = vrot.slane %v3406_v20, 4  ;;  %v3422_v22 = vsel %vm906_vm1, %v3406_v20, %v3421_v19  ;;  %v4046_v19 = vld [vmem:[%s5964_s6 + $0x90] sm:$0xff]  ;;  %v4045_v20 = vld [vmem:[%s5964_s6 + $0x88] sm:$0xff] }
 0xc95   : > { %v3430_v32 = vperm.slane %v3422_v22, %v4728_v8 }
 0xc96   : > { %v3420_v23 = vsel %vm906_vm1, %v3419_v21, %v3400_v5  ;;  %v4054_v5 = vld [vmem:[%s5964_s6 + $0xd0] sm:$0xff] }
 0xc97   : > { %v3426_v24 = vperm.slane %v3420_v23, %v4728_v8  ;;  %v3435_v25 = vrot.slane %v3430_v32, 4  ;;  %v3438_v50 = vsel %vm906_vm1, %v3430_v32, %v3437_v31 }
 0xc98   : > { %v3451_v26 = vrot.slane %v3438_v50, 4 }
 0xc99   : > { %v3431_v28 = vrot.slane %v3426_v24, 4  ;;  %v3434_v29 = vsel %vm906_vm1, %v3426_v24, %v3433_v45  ;;  %v3436_v30 = vsel %vm906_vm1, %v3435_v25, %v3418_v16  ;;  %v4048_v16 = vld [vmem:[%s5964_s6 + $0xa0] sm:$0xff] }
 0xc9a   : > { %v3439_v33 = vrot.slane %v3436_v30, 4  ;;  %v3453_v34 = vrot.slane %v3434_v29, 4  ;;  %v3452_v36 = vsel %vm906_vm1, %v3451_v26, %v3434_v29 }
 0xc9b   : > { %v3432_v15 = vsel %vm906_vm1, %v3431_v28, %v3414_v54  ;;  %v3458_v37 = vperm.slane %v3452_v36, %v4722_v59  ;;  %v4044_v54 = vld [vmem:[%s5964_s6 + $0x80] sm:$0xff] }
 0xc9c   : > { %v3441_v40 = vrot.slane %v3432_v15, 4  ;;  %v3454_v38 = vsel %vm906_vm1, %v3438_v50, %v3453_v34  ;;  %v3440_v41 = vsel %vm906_vm1, %v3439_v33, %v3432_v15  ;;  %v4155_v34 = vld [vmem:[%s5896_s7 + $0x1] ss:$0 sm:$0xff] }
 0xc9d   : > { %v3462_v39 = vperm.slane %v3454_v38, %v4722_v59  ;;  %v3446_v61 = vperm.slane %v3440_v41, %v4722_v59  ;;  %v3463_v43 = vrot.slane %v3458_v37, 4  ;;  %v4078_v38 = vld [vmem:[%s5899_s10 + $0xf8] sm:$0xff]  ;;  %v4077_v41 = vld [vmem:[%s5899_s10 + $0xf0] sm:$0xff] }
 0xc9e   : > { %v3442_v0 = vsel %vm906_vm1, %v3436_v30, %v3441_v40  ;;  %3629 = vmatpush.msra.mxu1 %v4078_v38  ;;  %v3733_v38 = vld [vmem:[%s5905_s16 + $0x58] sm:$0xff] }
 0xc9f   : > { %v3450_v44 = vperm.slane %v3442_v0, %v4722_v59  ;;  %v3475_v46 = vrot.slane %v3462_v39, 4  ;;  %v3465_v47 = vrot.slane %v3446_v61, 4  ;;  %v3464_v48 = vsel %vm906_vm1, %v3463_v43, %v3446_v61 }
 0xca0   : > { %v3470_v56 = vperm.slane %v3464_v48, %v4728_v8  ;;  %3630 = vmatpush.msra.mxu1 %v4077_v41  ;;  %v4073_v48 = vld [vmem:[%s5899_s10 + $0xd0] sm:$0xff] }
 0xca1   : > { %v3476_v49 = vsel %vm906_vm1, %v3475_v46, %v3450_v44  ;;  %v3466_v51 = vsel %vm906_vm1, %v3458_v37, %v3465_v47  ;;  %v3477_v53 = vrot.slane %v3450_v44, 4  ;;  %v4076_v44 = vld [vmem:[%s5899_s10 + $0xe8] sm:$0xff]  ;;  %v4075_v46 = vld [vmem:[%s5899_s10 + $0xe0] sm:$0xff]  ;;  %v4074_v47 = vld [vmem:[%s5899_s10 + $0xd8] sm:$0xff] }
 0xca2   : > { %v3482_v42 = vperm.slane %v3476_v49, %v4728_v8  ;;  %v3474_v52 = vperm.slane %v3466_v51, %v4728_v8  ;;  %v3487_v60 = vrot.slane %v3470_v56, 4  ;;  %3631 = vmatpush.msra.mxu1 %v4076_v44  ;;  %v4072_v49 = vld [vmem:[%s5899_s10 + $0xc8] sm:$0xff]  ;;  %v4071_v51 = vld [vmem:[%s5899_s10 + $0xc0] sm:$0xff]  ;;  %v3732_v41 = vld [vmem:[%s5905_s16 + $0x50] sm:$0xff] }
 0xca3   : > { %v3478_v58 = vsel %vm906_vm1, %v3462_v39, %v3477_v53  ;;  %v4068_v53 = vld [vmem:[%s5899_s10 + $0xa8] sm:$0xff]  ;;  %v3726_v44 = vld [vmem:[%s5905_s16 + $0x20] sm:$0xff] }
 0xca4   : > { %3508 = vrot.lane.b32.xlu2 %v3482_v42, %s5969_s23  ;;  %3500 = vrot.lane.b32.xlu1 %v3474_v52, %s5967_s24  ;;  %v3489_v59 = vrot.slane %v3474_v52, 4  ;;  %v3486_v62 = vperm.slane %v3478_v58, %v4728_v8  ;;  %v3491_v63 = vrot.slane %v3482_v42, 4  ;;  %v3488_v1 = vsel %vm906_vm1, 0.0, %v3487_v60  ;;  %v4059_v8 = vld [vmem:[%s5964_s6 + $0xf8] sm:$0xff]  ;;  %v4069_v52 = vld [vmem:[%s5899_s10 + $0xb0] sm:$0xff]  ;;  %s3831_s23 = scalar_lea.sflag [#allocation4], %s650_s20 }
 0xca5   : > { %3552 = vmatpush.msrb.mxu0 %v4059_v8  ;;  %3632 = vmatpush.msra.mxu1 %v4075_v46  ;;  %v4070_v42 = vld [vmem:[%s5899_s10 + $0xb8] sm:$0xff]  ;;  %v4064_v58 = vld [vmem:[%s5899_s10 + $0x88] sm:$0xff]  ;;  %v4063_v60 = vld [vmem:[%s5899_s10 + $0x80] sm:$0xff] }
 0xca6   : > { %v3490_v57 = vsel %vm906_vm1, 0.0, %v3489_v59  ;;  %v3492_v4 = vsel %vm906_vm1, 0.0, %v3491_v63  ;;  %v3493_v18 = vrot.slane %v3486_v62, 4  ;;  %v4066_v59 = vld [vmem:[%s5899_s10 + $0x98] sm:$0xff]  ;;  %v4086_v63 = vld [vmem:[%s5901_s12 + $0x70] sm:$0xff] }
 0xca7   : > { %3504 = vrot.lane.b32.xlu0 %v3490_v57, %s5971_s3  ;;  %3553 = vmatpush.msrb.mxu0 %v4058_v7  ;;  %v4065_v57 = vld [vmem:[%s5899_s10 + $0x90] sm:$0xff]  ;;  %v4083_v7 = vld [vmem:[%s5901_s12 + $0x58] sm:$0xff] }
 0xca8   : > { %v3494_v2 = vsel %vm906_vm1, 0.0, %v3493_v18  ;;  %vm5972_vm1 = vcmask 916480   ;;  %3633 = vmatpush.msra.mxu1 %v4074_v47  ;;  %v3725_v46 = vld [vmem:[%s5905_s16 + $0x18] sm:$0xff]  ;;  %v3724_v47 = vld [vmem:[%s5905_s16 + $0x10] sm:$0xff] }
 0xca9   : > { %3554 = vmatpush.msrb.mxu0 %v4057_v55 }
 0xcaa   : > { %3634 = vmatpush.msra.mxu1 %v4073_v48  ;;  %v3723_v48 = vld [vmem:[%s5905_s16 + $0x8] sm:$0xff] }
 0xcab   : > { %3555 = vmatpush.msrb.mxu0 %v4056_v27 }
 0xcac   : > { %3516 = vrot.lane.b32.xlu1 %v3486_v62, %s5968_s26  ;;  %3496 = vrot.lane.b32.xlu2 %v3488_v1, %s5970_s30  ;;  %v4087_v62 = vld [vmem:[%s5901_s12 + $0x78] sm:$0xff]  ;;  %v4085_v1 = vld [vmem:[%s5901_s12 + $0x68] sm:$0xff]  ;;  %s651_s26 = scalar_lea.vmem [#allocation3], %s650_s20 }
 0xcad   : > { %3556 = vmatpush.msrb.mxu0 %v4055_v9  ;;  %3635 = vmatpush.msra.mxu1 %v4072_v49  ;;  %v3722_v49 = vld [vmem:[%s5905_s16] sm:$0xff]  ;;  %s3844_s25 = sshll.u32 %s651_s26, 4  ;;  %s3845_s25 = int_to_ptr.vmem [resolvable:$true] %s3844_s25 }
 0xcae   : > { %3675 = vmatpush.msrb.mxu2 %v4087_v62  ;;  %v4160_v62 = vld [vmem:[%s5903_s14 + $0x1] ss:$0 sm:$0xff] }
 0xcaf   : > { %3512 = vrot.lane.b32.xlu0 %v3492_v4, %s5965_s28  ;;  %3557 = vmatpush.msrb.mxu0 %v4054_v5  ;;  %s3842_s28 = scalar_lea.hbm %s5978_s29, %s4452_s19  ;;  %s4263_s19 = scalar_lea.hbm %s5978_s29, 2 }
 0xcb0   : > { %3636 = vmatpush.msra.mxu1 %v4071_v51  ;;  %3676 = vmatpush.msrb.mxu2 %v4086_v63 }
 0xcb1   : > { %3558 = vmatpush.msrb.mxu0 %v4053_v11 }
 0xcb2   : > { %3637 = vmatpush.msra.mxu1 %v4070_v42  ;;  %3677 = vmatpush.msrb.mxu2 %v4085_v1 }
 0xcb3   : > { %3559 = vmatpush.msrb.mxu0 %v4052_v10 }
 0xcb4   : > { %3520 = vrot.lane.b32.xlu2 %v3494_v2, %s5966_s0  ;;  %3638 = vmatpush.msra.mxu1 %v4069_v52  ;;  %v4084_v2 = vld [vmem:[%s5901_s12 + $0x60] sm:$0xff]  ;;  %s3846_s0 = sshll.u32 %s3842_s28, 4  ;;  %s3847_s0 = int_to_ptr.hbm [resolvable:$true] %s3846_s0 }
 0xcb5   : > { %3560 = vmatpush.msrb.mxu0 %v4051_v12  ;;  %3678 = vmatpush.msrb.mxu2 %v4084_v2  ;;  %v4156_v12 = vld [vmem:[%s5897_s8 + $0x1] ss:$0 sm:$0xff]  ;;  %v4162_v2 = vld [vmem:[%s5906_s17] ss:$0 sm:$0xff]  ;;  %s4257_s30 = sshra.s32 %s3847_s0, 4  ;;  %s4258_s30 = int_to_ptr.hbm [resolvable:$true] %s4257_s30 }
 0xcb6   : > { %3639 = vmatpush.msra.mxu1 %v4068_v53  ;;  %s4259_s3 = scalar_lea.hbm %s4258_s30, 1  ;;  %p4264_p0 = scmp.lt.s32.totalorder %s4258_s30, %s5978_s29 }
 0xcb7   : > { %3561 = vmatpush.msrb.mxu0 %v4050_v13  ;;  %3679 = vmatpush.msrb.mxu2 %v4083_v7  ;;  %p4260_p11 = scmp.ne.s32.totalorder %s4258_s30, %s4259_s3  ;;  %p4265_p1 = scmp.lt.s32.totalorder %s4263_s19, %s4259_s3 }
 0xcb9   : > { %3562 = vmatpush.msrb.mxu0 %v4049_v14  ;;  %p4261_p12 = pnand %p4260_p11, %p4469_p5  ;;  %p4266_p2 = por %p4265_p1, %p4264_p0 }
 0xcbb   : > { %3563 = vmatpush.msrb.mxu0 %v4048_v16  ;;  %v4157_v16 = vld [vmem:[%s5898_s9 + $0x1] ss:$0 sm:$0xff]  ;;  %p4262_p13 = pneg %p4261_p12 }
 0xcbd   : > { %3564 = vmatpush.msrb.mxu0 %v4047_v17  ;;  %p4267_p3 = pnand %p4266_p2, %p4262_p13 }
 0xcbf   : > { %3565 = vmatpush.msrb.mxu0 %v4046_v19 }
 0xcc1   : > { %3566 = vmatpush.msrb.mxu0 %v4045_v20  ;;  %v4082_v20 = vld [vmem:[%s5901_s12 + $0x50] sm:$0xff] }
 0xcc2   : > { %3680 = vmatpush.msrb.mxu2 %v4082_v20 }
 0xcc3   : > { %3567 = vmatpush.msrb.mxu0 %v4044_v54  ;;  %v4081_v54 = vld [vmem:[%s5901_s12 + $0x48] sm:$0xff] }
 0xcc4   : > { %3681 = vmatpush.msrb.mxu2 %v4081_v54 }
 0xcfe   : > { %v3509_v21 = vpop.permute.xlu2 %3508 }
 0xd06   : > { %v3497_v31 = vpop.permute.xlu2 %3496 }
 0xd07   : > { %v3523_v23 = vsel %vm1286_vm2, %v3470_v56, %v3497_v31  ;;  %vm5973_vm2 = vcmask 1043456   ;;  %v4067_v56 = vld [vmem:[%s5899_s10 + $0xa0] sm:$0xff] }
 0xd08   : > { %vm5974_vm12 = vmmov %vm5973_vm2  ;;  %3640 = vmatpush.msra.mxu1 %v4067_v56 }
 0xd0a   : > { %3641 = vmatpush.msra.mxu1 %v4066_v59 }
 0xd0c   : > { %3642 = vmatpush.msra.mxu1 %v4065_v57 }
 0xd0e   : > { %v3521_v29 = vpop.permute.xlu2 %3520  ;;  %3643 = vmatpush.msra.mxu1 %v4064_v58 }
 0xd10   : > { %3644 = vmatpush.msra.mxu1 %v4063_v60 }
 0xd16   : > { %v3501_v22 = vpop.permute.xlu1 %3500 }
 0xd17   : > { %v3524_v45 = vsel %vm2047_vm7, %v3523_v23, %v3501_v22  ;;  %v4158_v22 = vld [vmem:[%s5900_s11 + $0x1] ss:$0 sm:$0xff] }
 0xd19   : > { %v3505_v32 = vpop.permute.xlu0 %3504 }
 0xd1a   : > { %v3525_v24 = vsel %vm2049_vm8, %v3524_v45, %v3505_v32  ;;  %v4159_v45 = vld [vmem:[%s5902_s13 + $0x1] ss:$0 sm:$0xff] }
 0xd1b   : > { %v3526_v50 = vsel %vm743_vm0, %v3525_v24, %v3509_v21  ;;  %v4080_v21 = vld [vmem:[%s5901_s12 + $0x40] sm:$0xff] }
 0xd1c   : > { %3682 = vmatpush.msrb.mxu2 %v4080_v21 }
 0xd1e   : > { %v3517_v26 = vpop.permute.xlu1 %3516 }
 0xd21   : > { %v3513_v25 = vpop.permute.xlu0 %3512 }
 0xd22   : > { %v3527_v28 = vsel %vm2052_vm9, %v3526_v50, %v3513_v25 }
 0xd23   : > { %v3528_v30 = vsel %vm2054_vm10, %v3527_v28, %v3517_v26  ;;  %vm5975_vm10 = vmmov %vm5973_vm2  ;;  %v3737_v28 = vld [vmem:[%s5905_s16 + $0x78] sm:$0xff] }
 0xd24   : > { %v3529_v33 = vsel %vm5972_vm1, %v3528_v30, %v3521_v29  ;;  %v3736_v29 = vld [vmem:[%s5905_s16 + $0x70] sm:$0xff]  ;;  %3742 = vmatpush.msrb.mxu3 %v3737_v28 }
 0xd25   : > { %3568 = vmatmul.f32.vlgmr.msrb.gmra.mxu0 %v3529_v33 }
 0xd26   : > { %3743 = vmatpush.msrb.mxu3 %v3736_v29 }
 0xda2   : > { %v3569_v36 = vpop.f32.mrf.mxu0 }
 0xda3   : > { %v3570_v15 = vadd.f32 %v4155_v34, %v3569_v36 }
 0xda5   : > { %v3572_v37 = vadd.f32 %v3570_v15, %v5330_v3 }
 0xda7   : > { %v3577_v40 = vsel %vm5973_vm2, %v3572_v37, 0.0 }
 0xda8   : > { %3578 = vadd.xlane.f32.xlu0 %v3577_v40  ;;  %v3734_v40 = vld [vmem:[%s5905_s16 + $0x60] sm:$0xff] }
 0xe1b   : > { %v3579_v39 = vpop.xlane.xlu0 %3578 }
 0xe1c   : > { %v3580_v61 = vmul.f32 %v3579_v39, %v5087_v6  ;;  %v3731_v39 = vld [vmem:[%s5905_s16 + $0x48] sm:$0xff] }
 0xe1e   : > { %v3581_v43 = vsub.f32 %v3572_v37, %v3580_v61  ;;  %v3735_v37 = vld [vmem:[%s5905_s16 + $0x68] sm:$0xff]  ;;  %v3730_v61 = vld [vmem:[%s5905_s16 + $0x40] sm:$0xff] }
 0xe1f   : > { %3744 = vmatpush.msrb.mxu3 %v3735_v37 }
 0xe20   : > { %v3582_v0 = vmul.f32 %v3581_v43, %v3581_v43 }
 0xe21   : > { %3745 = vmatpush.msrb.mxu3 %v3734_v40 }
 0xe22   : > { %v3583_v3 = vsel %vm5974_vm12, %v3582_v0, 0.0  ;;  %v3728_v0 = vld [vmem:[%s5905_s16 + $0x30] sm:$0xff] }
 0xe23   : > { %3584 = vadd.xlane.f32.xlu1 %v3583_v3  ;;  %3746 = vmatpush.msrb.mxu3 %v3733_v38  ;;  %v3727_v3 = vld [vmem:[%s5905_s16 + $0x28] sm:$0xff] }
 0xe25   : > { %3747 = vmatpush.msrb.mxu3 %v3732_v41 }
 0xe27   : > { %3748 = vmatpush.msrb.mxu3 %v3731_v39 }
 0xe29   : > { %3749 = vmatpush.msrb.mxu3 %v3730_v61  ;;  %v3824_v61 = vlaneseq }
 0xe96   : > { %v3585_v4 = vpop.xlane.xlu1 %3584 }
 0xe97   : > { %v3586_v18 = vmul.f32 %v3585_v4, %v5087_v6 }
 0xe99   : > { %v3587_v8 = vadd.f32 1e-05, %v3586_v18 }
 0xe9b   : > { %4235 = vrsqrt.f32 %v3587_v8  ;;  %vm3594_vm8 = vweird.f32 %v3587_v8 }
 0xea1   : > { %v4236_v55 = vpop.eup %4235 }
 0xea2   : > { %v3589_v27 = vmul.f32 %v4236_v55, %v3587_v8  ;;  %vm3595_vm7 = vweird.f32 %v4236_v55 }
 0xea3   : > { %vm3596_vm9 = vmor %vm3594_vm8, %vm3595_vm7 }
 0xea4   : > { %v3590_v9 = vmul.f32 %v4236_v55, %v3589_v27 }
 0xea6   : > { %v3591_v5 = vmul.f32 0.5, %v3590_v9 }
 0xea8   : > { %v3592_v11 = vsub.f32 1.5, %v3591_v5 }
 0xeaa   : > { %v3593_v10 = vmul.f32 %v4236_v55, %v3592_v11  ;;  %v4164_v11 = vld [vmem:[#allocation2] ss:$0 sm:$0xff] }
 0xeac   : > { %v3597_v13 = vsel %vm3596_vm9, %v4236_v55, %v3593_v10  ;;  %v4163_v55 = vld [vmem:[%s5907_s18] ss:$0 sm:$0xff] }
 0xead   : > { %v3598_v14 = vmul.f32 %v3597_v13, %v3581_v43  ;;  %v3729_v43 = vld [vmem:[%s5905_s16 + $0x38] sm:$0xff] }
 0xeae   : > { %3750 = vmatpush.msrb.mxu3 %v3729_v43  ;;  %v3825_v43 = vand.u32 127, %v3824_v61 }
 0xeaf   : > { %v3602_v17 = vmul.f32 %v4156_v12, %v3598_v14 }
 0xeb0   : > { %3751 = vmatpush.msrb.mxu3 %v3728_v0 }
 0xeb1   : > { %v3606_v19 = vadd.f32 %v4157_v16, %v3602_v17 }
 0xeb2   : > { %3752 = vmatpush.msrb.mxu3 %v3727_v3 }
 0xeb3   : > { %3645 = vmatmul.f32.vlgmr.msra.gmra.mxu1 %v3606_v19 }
 0xeb4   : > { %3753 = vmatpush.msrb.mxu3 %v3726_v44 }
 0xeb6   : > { %3754 = vmatpush.msrb.mxu3 %v3725_v46 }
 0xeb8   : > { %3755 = vmatpush.msrb.mxu3 %v3724_v47 }
 0xeba   : > { %3756 = vmatpush.msrb.mxu3 %v3723_v48 }
 0xebc   : > { %3757 = vmatpush.msrb.mxu3 %v3722_v49 }
 0xf30   : > { %v3646_v31 = vpop.f32.mrf.mxu1 }
 0xf31   : > { %v3647_v32 = vadd.f32 %v4158_v22, %v3646_v31 }
 0xf33   : > { %v3649_v23 = vmax.f32 %v3647_v32, 0.0 }
 0xf35   : > { %4089 = vmatmul.msk.f32.vlgmr.msrb.gmra.mxu2 %vm743_vm0, %v3649_v23  ;;  %vm5976_vm0 = vmmov %vm5973_vm2  ;;  %vm3828_vm2 = vcmask 24576  }
 0xf36   : > { %vm5977_vm12 = vmmov %vm5976_vm0 }
 0xfb8   : > { %v3684_v24 = vpop.f32.mrf.mxu2 }
 0xfb9   : > { %v3685_v25 = vadd.f32 %v4159_v45, %v3684_v24 }
 0xfbb   : > { %v3687_v50 = vadd.f32 %v3685_v25, %v3606_v19  ;;  %v4317_v19 = vmov 0  }
 0xfbc   : > { %4145 = vset.pattern.permute.xlu2 %v4317_v19  ;;  %4146 = vset.pattern.permute.xlu0 %v4317_v19 }
 0xfbd   : > { %v3692_v26 = vsel %vm5975_vm10, %v3687_v50, 0.0 }
 0xfbe   : > { %3693 = vadd.xlane.f32.xlu2 %v3692_v26 }
0x1031   : > { %v3694_v30 = vpop.xlane.xlu2 %3693 }
0x1032   : > { %v3695_v33 = vmul.f32 %v3694_v30, %v5087_v6 }
0x1034   : > { %v3696_v34 = vsub.f32 %v3687_v50, %v3695_v33 }
0x1036   : > { %v3697_v36 = vmul.f32 %v3696_v34, %v3696_v34 }
0x1038   : > { %v3698_v15 = vsel %vm5976_vm0, %v3697_v36, 0.0 }
0x1039   : > { %3699 = vadd.xlane.f32.xlu0 %v3698_v15 }
0x10ac   : > { %v3700_v51 = vpop.xlane.xlu0 %3699 }
0x10ad   : > { %v3701_v42 = vmul.f32 %v3700_v51, %v5087_v6  ;;  %v4161_v6 = vld [vmem:[%s5904_s15 + $0x1] ss:$0 sm:$0xff] }
0x10af   : > { %v3702_v52 = vadd.f32 1e-05, %v3701_v42 }
0x10b1   : > { %4237 = vrsqrt.f32 %v3702_v52  ;;  %vm3709_vm6 = vweird.f32 %v3702_v52 }
0x10b7   : > { %v4238_v53 = vpop.eup %4237 }
0x10b8   : > { %v3704_v56 = vmul.f32 %v4238_v53, %v3702_v52  ;;  %vm3710_vm5 = vweird.f32 %v4238_v53 }
0x10b9   : > { %vm3711_vm4 = vmor %vm3709_vm6, %vm3710_vm5 }
0x10ba   : > { %v3705_v59 = vmul.f32 %v4238_v53, %v3704_v56 }
0x10bc   : > { %v3706_v57 = vmul.f32 0.5, %v3705_v59 }
0x10be   : > { %v3707_v58 = vsub.f32 1.5, %v3706_v57 }
0x10c0   : > { %v3708_v60 = vmul.f32 %v4238_v53, %v3707_v58 }
0x10c2   : > { %v3712_v63 = vsel %vm3711_vm4, %v4238_v53, %v3708_v60 }
0x10c3   : > { %v3713_v1 = vmul.f32 %v3712_v63, %v3696_v34 }
0x10c5   : > { %v3717_v4 = vmul.f32 %v4160_v62, %v3713_v1 }
0x10c7   : > { %v3721_v18 = vadd.f32 %v4161_v6, %v3717_v4 }
0x10c9   : > { %3758 = vmatmul.f32.vlgmr.msrb.gmra.mxu3 %v3721_v18 }
0x114c   : > { %v3759_v8 = vpop.f32.mrf.mxu3 }
0x114d   : > { %v3760_v7 = vadd.f32 %v4162_v2, %v3759_v8 }
0x114f   : > { %v3762_v27 = vmax.f32 %v3760_v7, 0.0 }
0x1151   : > { %v3767_v9 = vmul.f32 %v4163_v55, %v3762_v27 }
0x1153   : > { %v3769_v5 = vsel %vm3768_vm11, %v3767_v9, 0.0 }
0x1154   : > { %3770 = vadd.xlane.f32.xlu1 %v3769_v5 }
0x11c7   : > { %v3771_v10 = vpop.xlane.xlu1 %3770 }
0x11c8   : > { %v3776_v12 = vadd.f32 %v4164_v11, %v3771_v10 }
0x11ca   : > { %v3778_v13 = vsel %vm3777_vm13, %v3776_v12, -inf }
0x11cb   : > { %v3779_v14 = vrot.slane %v3778_v13, 4 }
0x11cd   : > { %v3780_v16 = vmax.f32 %v3778_v13, %v3779_v14 }
0x11cf   : > { %v3781_v17 = vrot.slane %v3780_v16, 2 }
0x11d1   : > { %v3782_v20 = vmax.f32 %v3780_v16, %v3781_v17 }
0x11d3   : > { %v3783_v54 = vrot.slane %v3782_v20, 1 }
0x11d5   : > { %v3784_v21 = vmax.f32 %v3782_v20, %v3783_v54 }
0x11d7   : > { %v3785_v22 = vsub.f32 %v3776_v12, %v3784_v21 }
0x11d9   : > { %v3786_v31 = vmul.f32 1.442695, %v3785_v22 }
0x11db   : > { %4239 = vpow2.f32 %v3786_v31 }
0x11e1   : > { %v4240_v32 = vpop.eup %4239 }
0x11e2   : > { %v3788_v23 = vsel %vm3777_vm13, %v4240_v32, 0.0 }
0x11e3   : > { %v3789_v45 = vrot.slane %v3788_v23, 4 }
0x11e5   : > { %v3790_v24 = vadd.f32 %v3789_v45, %v3788_v23 }
0x11e7   : > { %v3791_v25 = vrot.slane %v3790_v24, 2 }
0x11e9   : > { %v3792_v50 = vadd.f32 %v3791_v25, %v3790_v24 }
0x11eb   : > { %v3793_v26 = vrot.slane %v3792_v50, 1 }
0x11ed   : > { %v3794_v28 = vadd.f32 %v3793_v26, %v3792_v50 }
0x11ef   : > { %4241 = vrcp.f32 %v3794_v28  ;;  %v3806_v34 = vand.u32 2147483648, %v3794_v28  ;;  %v3804_v15 = vand.u32 2147483647, %v3794_v28  ;;  %vm3800_vm3 = vweird.f32 %v3794_v28 }
0x11f1   : > { %v3807_v40 = vor.u32 1.1754944e-38, %v3806_v34  ;;  %vm3805_vm1 = vcmp.eq.f32.partialorder %v3804_v15, 8.507059e+37 }
0x11f5   : > { %v4242_v29 = vpop.eup %4241 }
0x11f6   : > { %v3796_v30 = vmul.f32 %v4242_v29, %v3794_v28  ;;  %vm3801_vm14 = vweird.f32 %v4242_v29 }
0x11f7   : > { %vm3802_vm15 = vmor %vm3800_vm3, %vm3801_vm14 }
0x11f8   : > { %v3797_v33 = vsub.f32 1.0, %v3796_v30 }
0x11fa   : > { %v3798_v36 = vmul.f32 %v4242_v29, %v3797_v33 }
0x11fc   : > { %v3799_v37 = vadd.f32 %v4242_v29, %v3798_v36 }
0x11fe   : > { %v3803_v38 = vsel %vm3802_vm15, %v4242_v29, %v3799_v37 }
0x11ff   : > { %v3808_v41 = vsel %vm3805_vm1, %v3807_v40, %v3803_v38 }
0x1200   : > { %v3809_v39 = vmul.f32 %v4240_v32, %v3808_v41 }
0x1202   : > { %3812 = vperm.xlu2 %4145, %v3809_v39  }
0x125c   : > { %v3813_v0 = vpop.permute.xlu2 %3812 }
0x125d   : > { %v3815_v3 = vmul.f32 %v3813_v0, %v4692_v35  ;;  %v3826_v44 = vperm.slane %v3813_v0, %v3825_v43 }
0x125f   : > { %v3816_v46 = vsel %vm5977_vm12, %v3815_v3, 0.0  ;;  %3829 = vst.msk [vmem:[%s664_s4] sm:$0x1] %vm3828_vm2, %v3826_v44 }
0x1260   : > { %v3817_v47 = vrot.slane %v3816_v46, 4 }
0x1262   : > { %v3818_v48 = vadd.f32 %v3817_v47, %v3816_v46 }
0x1264   : > { %v3819_v49 = vrot.slane %v3818_v48, 2 }
0x1266   : > { %v3820_v51 = vadd.f32 %v3819_v49, %v3818_v48 }
0x1268   : > { %v3821_v42 = vrot.slane %v3820_v51, 1 }
0x126a   : > { %v3822_v52 = vadd.f32 %v3821_v42, %v3820_v51 }
0x126c   : > { %3823 = vst [vmem:[%s651_s26] sm:$0x1] %v3822_v52 }
0x126d   : > { %4270 = shalt.err (!%p4267_p3)
}
0x126e   : > { %4095 = dma.vmem_to_hbm [thread:$0]  (%p4469_p5), %s3845_s25, 16, %s3847_s0, %s3831_s23  }
0x126f PF: > { %s5980_s20 = sld [smem:[#allocation8_spill]] }
0x1270   : > { %s5981_s28 = sld [smem:[#allocation6_spill]] }
0x1275   : > { %p4101_p4 = scmp.ge.s32.totalorder %s5980_s20, 2 }
0x1276   : > { %s3861_s6 = sand.u32 1, %s5981_s28  }
0x1277   : > { %p4098_p7 = pnand %p4101_p4, %p4473_p6  ;;  %s3862_s4 = scalar_lea.sflag [#allocation4], %s3861_s6 }
0x1279   : > { %p4099_p8 = pneg %p4098_p7 }
0x127b   : > { %4288 = dma.done.wait (%p4099_p8), %s3862_s4, 16  }
0x127c   : > { %4290 = vsyncadd (%p4099_p8), %s3862_s4, 4294967280  ;;  %s5983_s28 = sld [smem:[#allocation9_spill]]  ;;  %s5986_s26 = smov %s4297_s27 }
0x127d   : > { %s5984_s1 = sld [smem:[#allocation7_spill]] }
0x127e   : > { %s5985_s3 = sld [smem:[#allocation10_spill]] }
0x1282   : > { %p34_p9 = scmp.ge.s32.totalorder %s5983_s28, 4  }
0x1283   : > { %s5987_s27 = smov %s5984_s1 }
0x1284   :  { %36 = sbr.rel (!%p34_p9) target bundleno = 12 (0xc), region = 159 }
0x1289   :  { %3873 = vsyncpa [#allocation4], 1 }
0x128a   :  { %3875 = vsyncpa [#allocation4 + $0x1], 1 }

</bundles_post_ra>
